<compile_context>
chip_gen: v7x
topology: tpu7x:2x2x1
jax: 0.10.0
libtpu: 0.0.40
codegen_flags: <defaults>
</compile_context>

<pallas_src>
import functools

import jax
import jax.numpy as jnp
from jax.experimental import pallas as pl
from jax.experimental.pallas import tpu as pltpu


def _convlstm_cell_kernel(p_ref, w_ref, b_ref, c_ref, h_out_ref, c_out_ref,
                          *, hid, th, out_w, kh, kw):
    """One ConvLSTM step for a (th, out_w) tile of output pixels.

    p_ref:     (th+kh-1, out_w+kw-1, Cin) bf16  SAME-padded [x|h] activations
    w_ref:     (kh*kw, Cin, 4*hid)        bf16  conv weights, one block per tap
    b_ref:     (1, 4*hid)                 f32   bias
    c_ref:     (th*out_w, hid)            f32   current cell state (this tile)
    h_out_ref / c_out_ref: (th*out_w, hid) f32
    """
    cin = w_ref.shape[1]
    m = th * out_w

    # Convolution as kh*kw shifted-tap matmuls accumulated in f32.  Taps are
    # gathered from the padded activation tile already resident in VMEM, so
    # the im2col duplication never touches HBM.  Grouping by dw keeps the
    # sublane-misaligned width shift to kw relayouts instead of kh*kw.
    acc = jnp.broadcast_to(b_ref[...], (m, 4 * hid))           # f32 (m, 4*hid)
    for dw in range(kw):
        cols = p_ref[:, dw:dw + out_w, :]                      # (th+kh-1, out_w, Cin)
        for dh in range(kh):
            lhs = cols[dh:dh + th].reshape(m, cin)             # (m, Cin) bf16
            acc = acc + jnp.dot(lhs, w_ref[dh * kw + dw],
                                preferred_element_type=jnp.float32)

    # Gate nonlinearities on contiguous lane blocks (EUP): one sigmoid pass
    # over the [i | f | o] 3*hid lanes, one tanh pass over the g lanes.
    sig = jax.nn.sigmoid(acc[:, :3 * hid])
    g = jnp.tanh(acc[:, 3 * hid:])
    i = sig[:, :hid]
    f = sig[:, hid:2 * hid]
    o = sig[:, 2 * hid:]

    # LSTM state update in f32 on the VPU.
    c_next = f * c_ref[...] + i * g
    h_next = o * jnp.tanh(c_next)

    # TODO(synk): hid=32 keeps these stores 32-lane masked (vst.msk); packing
    # to a lane-dense (m//4, 128) view needs a sublane->lane relayout
    # (einshape / shape-cast) that is not guaranteed to lower on all Mosaic
    # versions, so it is omitted; the HBM writeback is already one contiguous
    # block per grid step.
    c_out_ref[...] = c_next.astype(c_out_ref.dtype)
    h_out_ref[...] = h_next.astype(h_out_ref.dtype)


def _choose_row_block(height, width, cin, hid, kh, kw, budget_bytes=4 << 20):
    """Largest divisor TH of `height` whose double-buffered per-step VMEM
    footprint fits `budget_bytes` (keeps tiles safe on v5e/v6e/v7x scoped
    VMEM and leaves >1 grid step per core for DMA/compute overlap)."""
    def step_bytes(th):
        act = (th + kh - 1) * (width + kw - 1) * cin * 2        # bf16 inputs
        state = 3 * th * width * hid * 4                        # c, h_out, c_out
        acc = th * width * 4 * hid * 4                          # f32 accumulator
        return 2 * (act + state) + acc
    for th in range(height, 0, -1):
        if height % th == 0 and step_bytes(th) <= budget_bytes:
            return th
    return 1


def convlstm_cell_forward(x_nhwc, h_nhwc, c_nhwc, w_hwio, bias):
    """One ConvLSTMCell step. Activations NHWC, weights HWIO, float32.

    x_nhwc: (B, H, W, input_dim)
    h_nhwc, c_nhwc: (B, H, W, hidden_dim)
    w_hwio: (KH, KW, input_dim + hidden_dim, 4 * hidden_dim)
    bias:   (4 * hidden_dim,)
    Returns (h_next, c_next), each (B, H, W, hidden_dim) float32.
    """
    B, H, W, in_dim = x_nhwc.shape
    hid = h_nhwc.shape[-1]
    KH, KW, C_in, out_c = w_hwio.shape
    assert C_in == in_dim + hid and out_c == 4 * hid
    ph, pw = KH // 2, KW // 2
    assert KH == 2 * ph + 1 and KW == 2 * pw + 1   # odd kernel, SAME padding

    # Wrapper glue: channel concat + SAME zero pad.  This is the only big
    # activation stream into the kernel (~1x of `combined`).
    combined = jnp.concatenate([x_nhwc, h_nhwc], axis=-1).astype(jnp.bfloat16)
    padded = jnp.pad(combined, ((0, 0), (ph, ph), (pw, pw), (0, 0)))

    TH = _choose_row_block(H, W, C_in, hid, KH, KW)
    nrb = H // TH
    TM = TH * W
    M = B * H * W
    assert TM % 8 == 0 or TM == M, "row block must keep sublane tiling aligned"

    if nrb == 1:
        padded_blocked = padded[:, None]          # (B, 1, H+KH-1, W+KW-1, Cin)
    else:
        # Duplicate the (KH-1)-row halo per row block so grid blocks never
        # overlap (~(TH+KH-1)/TH extra HBM vs 9x for materialized im2col).
        padded_blocked = jnp.stack(
            [padded[:, rb * TH: rb * TH + TH + KH - 1] for rb in range(nrb)],
            axis=1)                               # (B, nrb, TH+KH-1, W+KW-1, Cin)

    # Per-tap weight blocks; leading-dim indexing in the kernel avoids
    # misaligned K-row slices of a flattened (KH*KW*Cin, 4*hid) matrix.
    w_taps = w_hwio.astype(jnp.bfloat16).reshape(KH * KW, C_in, 4 * hid)
    bias2d = bias.reshape(1, 4 * hid).astype(jnp.float32)
    c2d = c_nhwc.astype(jnp.float32).reshape(M, hid)

    kernel = functools.partial(_convlstm_cell_kernel, hid=hid, th=TH,
                               out_w=W, kh=KH, kw=KW)

    def state_map(b, rb):
        return (b * nrb + rb, 0)

    h2d, c2d_next = pl.pallas_call(
        kernel,
        out_shape=(
            jax.ShapeDtypeStruct((M, hid), jnp.float32),
            jax.ShapeDtypeStruct((M, hid), jnp.float32),
        ),
        grid_spec=pltpu.PrefetchScalarGridSpec(
            num_scalar_prefetch=0,
            grid=(B, nrb),
            in_specs=[
                pl.BlockSpec((None, None, TH + KH - 1, W + KW - 1, C_in),
                             lambda b, rb: (b, rb, 0, 0, 0)),      # activations
                pl.BlockSpec((KH * KW, C_in, 4 * hid),
                             lambda b, rb: (0, 0, 0)),             # weights
                pl.BlockSpec((1, 4 * hid), lambda b, rb: (0, 0)),  # bias
                pl.BlockSpec((TM, hid), state_map),                # c_cur
            ],
            out_specs=[
                pl.BlockSpec((TM, hid), state_map),                # h_next
                pl.BlockSpec((TM, hid), state_map),                # c_next
            ],
        ),
        input_output_aliases={3: 1},   # c_next written back into c_cur buffer
        compiler_params=pltpu.CompilerParams(
            dimension_semantics=("parallel", "parallel"),
            vmem_limit_bytes=32 * 1024 * 1024),
    )(padded_blocked, w_taps, bias2d, c2d)

    # TODO(synk): when this cell runs over a time sequence, fuse the T loop
    # into one pallas_call (weights/h/c resident in VMEM, stream x_t only);
    # the module API here is a single step.
    return h2d.reshape(B, H, W, hid), c2d_next.reshape(B, H, W, hid)


def _reference(x_nhwc, h_nhwc, c_nhwc, w_hwio, bias,
               compute_dtype=jnp.float32):
    """Pure-JAX reference mirroring the PyTorch forward (for validation).

    With compute_dtype=bfloat16 it matches the kernel's MXU quantization
    (bf16 operands, f32 accumulation)."""
    combined = jnp.concatenate([x_nhwc, h_nhwc], axis=-1).astype(compute_dtype)
    cc = jax.lax.conv_general_dilated(
        combined, w_hwio.astype(compute_dtype), window_strides=(1, 1),
        padding="SAME", dimension_numbers=("NHWC", "HWIO", "NHWC"),
        preferred_element_type=jnp.float32)
    cc = cc + bias.reshape(1, 1, 1, -1)
    hid = h_nhwc.shape[-1]
    cc_i, cc_f, cc_o, cc_g = jnp.split(cc, 4, axis=-1)
    i = jax.nn.sigmoid(cc_i)
    f = jax.nn.sigmoid(cc_f)
    o = jax.nn.sigmoid(cc_o)
    g = jnp.tanh(cc_g)
    c_next = f * c_nhwc + i * g
    h_next = o * jnp.tanh(c_next)
    return h_next, c_next


if __name__ == "__main__":
    # Module config (matches ConvLSTMCell(input_dim=4, hidden_dim=32,
    # kernel_size=(3, 3), bias=True)).
    B, input_dim, hidden_dim = 2, 4, 32
    H, W = 16, 16
    KH, KW = 3, 3

    key = jax.random.PRNGKey(0)
    kx, kh, kc, kw_, kb = jax.random.split(key, 5)

    # PyTorch forward takes NCHW; build NCHW then transpose to our NHWC layout.
    x_nchw = jax.random.normal(kx, (B, input_dim, H, W), jnp.float32)
    h_nchw = jax.random.normal(kh, (B, hidden_dim, H, W), jnp.float32)
    c_nchw = jax.random.normal(kc, (B, hidden_dim, H, W), jnp.float32)

    x = jnp.transpose(x_nchw, (0, 2, 3, 1))
    h = jnp.transpose(h_nchw, (0, 2, 3, 1))
    c = jnp.transpose(c_nchw, (0, 2, 3, 1))

    # Deterministic synthetic conv parameters (HWIO) and bias.
    C_in = input_dim + hidden_dim
    w_hwio = 0.1 * jax.random.normal(kw_, (KH, KW, C_in, 4 * hidden_dim),
                                     jnp.float32)
    bias = 0.1 * jax.random.normal(kb, (4 * hidden_dim,), jnp.float32)

    fwd = jax.jit(convlstm_cell_forward)
    h_next, c_next = fwd(x, h, c, w_hwio, bias)
    jax.block_until_ready((h_next, c_next))

    # 1) Tight check against a reference that uses the same bf16 operand
    #    quantization with f32 accumulation (matches the kernel's MXU path).
    h_bf, c_bf = _reference(x, h, c, w_hwio, bias, compute_dtype=jnp.bfloat16)
    assert jnp.allclose(h_next, h_bf, atol=5e-3, rtol=5e-3)
    assert jnp.allclose(c_next, c_bf, atol=5e-3, rtol=5e-3)

    # 2) Loose check against the full-f32 PyTorch-semantics reference
    #    (tolerance reflects the intentional bf16 MXU cast).
    h_ref, c_ref = _reference(x, h, c, w_hwio, bias)
    assert jnp.allclose(h_next, h_ref, atol=5e-2, rtol=5e-2)
    assert jnp.allclose(c_next, c_ref, atol=5e-2, rtol=5e-2)

    print("KERNEL_OK")
</pallas_src>

<mosaic_0001>
module attributes {stable_mosaic.version = 11 : i64} {
  func.func @_convlstm_cell_kernel(%arg0: i32, %arg1: i32, %arg2: memref<1x1x18x18x36xbf16, #tpu.memory_space<vmem>>, %arg3: memref<9x36x128xbf16, #tpu.memory_space<vmem>>, %arg4: memref<1x128xf32, #tpu.memory_space<vmem>>, %arg5: memref<256x32xf32, #tpu.memory_space<vmem>>, %arg6: memref<256x32xf32, #tpu.memory_space<vmem>>, %arg7: memref<256x32xf32, #tpu.memory_space<vmem>>) attributes {dimension_semantics = [#tpu.dimension_semantics<parallel>, #tpu.dimension_semantics<parallel>], iteration_bounds = array<i64: 2, 1>, scalar_prefetch = 0 : i64, scratch_operands = 0 : i64, tpu.core_type = #tpu.core_type<tc>, window_params = [{transform_indices = @transform_0, window_bounds = array<i64: 1, 1, 18, 18, 36>}, {pipeline_mode = #tpu.pipeline_mode<synchronous>, transform_indices = @transform_1, window_bounds = array<i64: 9, 36, 128>}, {pipeline_mode = #tpu.pipeline_mode<synchronous>, transform_indices = @transform_2, window_bounds = array<i64: 1, 128>}, {transform_indices = @transform_3, window_bounds = array<i64: 256, 32>}, {transform_indices = @transform_4, window_bounds = array<i64: 256, 32>}, {transform_indices = @transform_5, window_bounds = array<i64: 256, 32>}]} {
    %c0 = arith.constant 0 : index
    %c0_0 = arith.constant 0 : index
    %0 = vector.load %arg4[%c0, %c0_0] : memref<1x128xf32, #tpu.memory_space<vmem>>, vector<1x128xf32>
    %1 = vector.shape_cast %0 : vector<1x128xf32> to vector<1x128xf32>
    %2 = vector.broadcast %1 : vector<1x128xf32> to vector<256x128xf32>
    %c0_1 = arith.constant 0 : index
    %c0_2 = arith.constant 0 : index
    %c0_3 = arith.constant 0 : index
    %c0_4 = arith.constant 0 : index
    %c0_5 = arith.constant 0 : index
    %3 = vector.load %arg2[%c0_1, %c0_2, %c0_3, %c0_4, %c0_5] : memref<1x1x18x18x36xbf16, #tpu.memory_space<vmem>>, vector<1x1x18x16x36xbf16>
    %4 = vector.shape_cast %3 : vector<1x1x18x16x36xbf16> to vector<18x16x36xbf16>
    %5 = vector.extract_strided_slice %4 {offsets = [0, 0, 0], sizes = [16, 16, 36], strides = [1, 1, 1]} : vector<18x16x36xbf16> to vector<16x16x36xbf16>
    %6 = vector.shape_cast %5 : vector<16x16x36xbf16> to vector<256x36xbf16>
    %c0_6 = arith.constant 0 : index
    %c0_7 = arith.constant 0 : index
    %c0_8 = arith.constant 0 : index
    %7 = vector.load %arg3[%c0_6, %c0_7, %c0_8] : memref<9x36x128xbf16, #tpu.memory_space<vmem>>, vector<1x36x128xbf16>
    %8 = vector.shape_cast %7 : vector<1x36x128xbf16> to vector<36x128xbf16>
    %cst = arith.constant dense<0.000000e+00> : vector<256x128xf32>
    %9 = tpu.matmul %6, %8, %cst {dimension_numbers = #tpu.dot_dimension_numbers<[1], [0], [0], [1], [0, 0, 1, 1], [], []>} : vector<256x36xbf16>, vector<36x128xbf16>, vector<256x128xf32> -> vector<256x128xf32>
    %10 = arith.addf %2, %9 : vector<256x128xf32>
    %11 = vector.extract_strided_slice %4 {offsets = [1, 0, 0], sizes = [16, 16, 36], strides = [1, 1, 1]} : vector<18x16x36xbf16> to vector<16x16x36xbf16>
    %12 = vector.shape_cast %11 : vector<16x16x36xbf16> to vector<256x36xbf16>
    %c3 = arith.constant 3 : index
    %c0_9 = arith.constant 0 : index
    %c0_10 = arith.constant 0 : index
    %13 = vector.load %arg3[%c3, %c0_9, %c0_10] : memref<9x36x128xbf16, #tpu.memory_space<vmem>>, vector<1x36x128xbf16>
    %14 = vector.shape_cast %13 : vector<1x36x128xbf16> to vector<36x128xbf16>
    %cst_11 = arith.constant dense<0.000000e+00> : vector<256x128xf32>
    %15 = tpu.matmul %12, %14, %cst_11 {dimension_numbers = #tpu.dot_dimension_numbers<[1], [0], [0], [1], [0, 0, 1, 1], [], []>} : vector<256x36xbf16>, vector<36x128xbf16>, vector<256x128xf32> -> vector<256x128xf32>
    %16 = arith.addf %10, %15 : vector<256x128xf32>
    %17 = vector.extract_strided_slice %4 {offsets = [2, 0, 0], sizes = [16, 16, 36], strides = [1, 1, 1]} : vector<18x16x36xbf16> to vector<16x16x36xbf16>
    %18 = vector.shape_cast %17 : vector<16x16x36xbf16> to vector<256x36xbf16>
    %c6 = arith.constant 6 : index
    %c0_12 = arith.constant 0 : index
    %c0_13 = arith.constant 0 : index
    %19 = vector.load %arg3[%c6, %c0_12, %c0_13] : memref<9x36x128xbf16, #tpu.memory_space<vmem>>, vector<1x36x128xbf16>
    %20 = vector.shape_cast %19 : vector<1x36x128xbf16> to vector<36x128xbf16>
    %cst_14 = arith.constant dense<0.000000e+00> : vector<256x128xf32>
    %21 = tpu.matmul %18, %20, %cst_14 {dimension_numbers = #tpu.dot_dimension_numbers<[1], [0], [0], [1], [0, 0, 1, 1], [], []>} : vector<256x36xbf16>, vector<36x128xbf16>, vector<256x128xf32> -> vector<256x128xf32>
    %22 = arith.addf %16, %21 : vector<256x128xf32>
    %c0_15 = arith.constant 0 : index
    %c0_16 = arith.constant 0 : index
    %c0_17 = arith.constant 0 : index
    %c1 = arith.constant 1 : index
    %c0_18 = arith.constant 0 : index
    %23 = vector.load %arg2[%c0_15, %c0_16, %c0_17, %c1, %c0_18] : memref<1x1x18x18x36xbf16, #tpu.memory_space<vmem>>, vector<1x1x18x16x36xbf16>
    %24 = vector.shape_cast %23 : vector<1x1x18x16x36xbf16> to vector<18x16x36xbf16>
    %25 = vector.extract_strided_slice %24 {offsets = [0, 0, 0], sizes = [16, 16, 36], strides = [1, 1, 1]} : vector<18x16x36xbf16> to vector<16x16x36xbf16>
    %26 = vector.shape_cast %25 : vector<16x16x36xbf16> to vector<256x36xbf16>
    %c1_19 = arith.constant 1 : index
    %c0_20 = arith.constant 0 : index
    %c0_21 = arith.constant 0 : index
    %27 = vector.load %arg3[%c1_19, %c0_20, %c0_21] : memref<9x36x128xbf16, #tpu.memory_space<vmem>>, vector<1x36x128xbf16>
    %28 = vector.shape_cast %27 : vector<1x36x128xbf16> to vector<36x128xbf16>
    %cst_22 = arith.constant dense<0.000000e+00> : vector<256x128xf32>
    %29 = tpu.matmul %26, %28, %cst_22 {dimension_numbers = #tpu.dot_dimension_numbers<[1], [0], [0], [1], [0, 0, 1, 1], [], []>} : vector<256x36xbf16>, vector<36x128xbf16>, vector<256x128xf32> -> vector<256x128xf32>
    %30 = arith.addf %22, %29 : vector<256x128xf32>
    %31 = vector.extract_strided_slice %24 {offsets = [1, 0, 0], sizes = [16, 16, 36], strides = [1, 1, 1]} : vector<18x16x36xbf16> to vector<16x16x36xbf16>
    %32 = vector.shape_cast %31 : vector<16x16x36xbf16> to vector<256x36xbf16>
    %c4 = arith.constant 4 : index
    %c0_23 = arith.constant 0 : index
    %c0_24 = arith.constant 0 : index
    %33 = vector.load %arg3[%c4, %c0_23, %c0_24] : memref<9x36x128xbf16, #tpu.memory_space<vmem>>, vector<1x36x128xbf16>
    %34 = vector.shape_cast %33 : vector<1x36x128xbf16> to vector<36x128xbf16>
    %cst_25 = arith.constant dense<0.000000e+00> : vector<256x128xf32>
    %35 = tpu.matmul %32, %34, %cst_25 {dimension_numbers = #tpu.dot_dimension_numbers<[1], [0], [0], [1], [0, 0, 1, 1], [], []>} : vector<256x36xbf16>, vector<36x128xbf16>, vector<256x128xf32> -> vector<256x128xf32>
    %36 = arith.addf %30, %35 : vector<256x128xf32>
    %37 = vector.extract_strided_slice %24 {offsets = [2, 0, 0], sizes = [16, 16, 36], strides = [1, 1, 1]} : vector<18x16x36xbf16> to vector<16x16x36xbf16>
    %38 = vector.shape_cast %37 : vector<16x16x36xbf16> to vector<256x36xbf16>
    %c7 = arith.constant 7 : index
    %c0_26 = arith.constant 0 : index
    %c0_27 = arith.constant 0 : index
    %39 = vector.load %arg3[%c7, %c0_26, %c0_27] : memref<9x36x128xbf16, #tpu.memory_space<vmem>>, vector<1x36x128xbf16>
    %40 = vector.shape_cast %39 : vector<1x36x128xbf16> to vector<36x128xbf16>
    %cst_28 = arith.constant dense<0.000000e+00> : vector<256x128xf32>
    %41 = tpu.matmul %38, %40, %cst_28 {dimension_numbers = #tpu.dot_dimension_numbers<[1], [0], [0], [1], [0, 0, 1, 1], [], []>} : vector<256x36xbf16>, vector<36x128xbf16>, vector<256x128xf32> -> vector<256x128xf32>
    %42 = arith.addf %36, %41 : vector<256x128xf32>
    %c0_29 = arith.constant 0 : index
    %c0_30 = arith.constant 0 : index
    %c0_31 = arith.constant 0 : index
    %c2 = arith.constant 2 : index
    %c0_32 = arith.constant 0 : index
    %43 = vector.load %arg2[%c0_29, %c0_30, %c0_31, %c2, %c0_32] : memref<1x1x18x18x36xbf16, #tpu.memory_space<vmem>>, vector<1x1x18x16x36xbf16>
    %44 = vector.shape_cast %43 : vector<1x1x18x16x36xbf16> to vector<18x16x36xbf16>
    %45 = vector.extract_strided_slice %44 {offsets = [0, 0, 0], sizes = [16, 16, 36], strides = [1, 1, 1]} : vector<18x16x36xbf16> to vector<16x16x36xbf16>
    %46 = vector.shape_cast %45 : vector<16x16x36xbf16> to vector<256x36xbf16>
    %c2_33 = arith.constant 2 : index
    %c0_34 = arith.constant 0 : index
    %c0_35 = arith.constant 0 : index
    %47 = vector.load %arg3[%c2_33, %c0_34, %c0_35] : memref<9x36x128xbf16, #tpu.memory_space<vmem>>, vector<1x36x128xbf16>
    %48 = vector.shape_cast %47 : vector<1x36x128xbf16> to vector<36x128xbf16>
    %cst_36 = arith.constant dense<0.000000e+00> : vector<256x128xf32>
    %49 = tpu.matmul %46, %48, %cst_36 {dimension_numbers = #tpu.dot_dimension_numbers<[1], [0], [0], [1], [0, 0, 1, 1], [], []>} : vector<256x36xbf16>, vector<36x128xbf16>, vector<256x128xf32> -> vector<256x128xf32>
    %50 = arith.addf %42, %49 : vector<256x128xf32>
    %51 = vector.extract_strided_slice %44 {offsets = [1, 0, 0], sizes = [16, 16, 36], strides = [1, 1, 1]} : vector<18x16x36xbf16> to vector<16x16x36xbf16>
    %52 = vector.shape_cast %51 : vector<16x16x36xbf16> to vector<256x36xbf16>
    %c5 = arith.constant 5 : index
    %c0_37 = arith.constant 0 : index
    %c0_38 = arith.constant 0 : index
    %53 = vector.load %arg3[%c5, %c0_37, %c0_38] : memref<9x36x128xbf16, #tpu.memory_space<vmem>>, vector<1x36x128xbf16>
    %54 = vector.shape_cast %53 : vector<1x36x128xbf16> to vector<36x128xbf16>
    %cst_39 = arith.constant dense<0.000000e+00> : vector<256x128xf32>
    %55 = tpu.matmul %52, %54, %cst_39 {dimension_numbers = #tpu.dot_dimension_numbers<[1], [0], [0], [1], [0, 0, 1, 1], [], []>} : vector<256x36xbf16>, vector<36x128xbf16>, vector<256x128xf32> -> vector<256x128xf32>
    %56 = arith.addf %50, %55 : vector<256x128xf32>
    %57 = vector.extract_strided_slice %44 {offsets = [2, 0, 0], sizes = [16, 16, 36], strides = [1, 1, 1]} : vector<18x16x36xbf16> to vector<16x16x36xbf16>
    %58 = vector.shape_cast %57 : vector<16x16x36xbf16> to vector<256x36xbf16>
    %c8 = arith.constant 8 : index
    %c0_40 = arith.constant 0 : index
    %c0_41 = arith.constant 0 : index
    %59 = vector.load %arg3[%c8, %c0_40, %c0_41] : memref<9x36x128xbf16, #tpu.memory_space<vmem>>, vector<1x36x128xbf16>
    %60 = vector.shape_cast %59 : vector<1x36x128xbf16> to vector<36x128xbf16>
    %cst_42 = arith.constant dense<0.000000e+00> : vector<256x128xf32>
    %61 = tpu.matmul %58, %60, %cst_42 {dimension_numbers = #tpu.dot_dimension_numbers<[1], [0], [0], [1], [0, 0, 1, 1], [], []>} : vector<256x36xbf16>, vector<36x128xbf16>, vector<256x128xf32> -> vector<256x128xf32>
    %62 = arith.addf %56, %61 : vector<256x128xf32>
    %63 = vector.extract_strided_slice %62 {offsets = [0, 0], sizes = [256, 96], strides = [1, 1]} : vector<256x128xf32> to vector<256x96xf32>
    %64 = arith.negf %63 : vector<256x96xf32>
    %65 = math.exp %64 : vector<256x96xf32>
    %cst_43 = arith.constant 1.000000e+00 : f32
    %66 = vector.broadcast %cst_43 : f32 to vector<256x96xf32>
    %67 = arith.addf %66, %65 : vector<256x96xf32>
    %68 = arith.divf %66, %67 : vector<256x96xf32>
    %69 = vector.extract_strided_slice %62 {offsets = [0, 96], sizes = [256, 32], strides = [1, 1]} : vector<256x128xf32> to vector<256x32xf32>
    %70 = math.tanh %69 : vector<256x32xf32>
    %71 = vector.extract_strided_slice %68 {offsets = [0, 0], sizes = [256, 32], strides = [1, 1]} : vector<256x96xf32> to vector<256x32xf32>
    %72 = vector.extract_strided_slice %68 {offsets = [0, 32], sizes = [256, 32], strides = [1, 1]} : vector<256x96xf32> to vector<256x32xf32>
    %73 = vector.extract_strided_slice %68 {offsets = [0, 64], sizes = [256, 32], strides = [1, 1]} : vector<256x96xf32> to vector<256x32xf32>
    %c0_44 = arith.constant 0 : index
    %c0_45 = arith.constant 0 : index
    %74 = vector.load %arg5[%c0_44, %c0_45] : memref<256x32xf32, #tpu.memory_space<vmem>>, vector<256x32xf32>
    %75 = arith.mulf %72, %74 : vector<256x32xf32>
    %76 = arith.mulf %71, %70 : vector<256x32xf32>
    %77 = arith.addf %75, %76 : vector<256x32xf32>
    %78 = math.tanh %77 : vector<256x32xf32>
    %79 = arith.mulf %73, %78 : vector<256x32xf32>
    %c0_46 = arith.constant 0 : index
    %c0_47 = arith.constant 0 : index
    %80 = vector.load %arg7[%c0_46, %c0_47] : memref<256x32xf32, #tpu.memory_space<vmem>>, vector<256x32xf32>
    tpu.vector_store %arg7[%c0_46, %c0_47], %77 {strides = array<i32>} : memref<256x32xf32, #tpu.memory_space<vmem>>, vector<256x32xf32>,
    %c0_48 = arith.constant 0 : index
    %c0_49 = arith.constant 0 : index
    %81 = vector.load %arg6[%c0_48, %c0_49] : memref<256x32xf32, #tpu.memory_space<vmem>>, vector<256x32xf32>
    tpu.vector_store %arg6[%c0_48, %c0_49], %79 {strides = array<i32>} : memref<256x32xf32, #tpu.memory_space<vmem>>, vector<256x32xf32>,
    return
  }
  func.func @transform_0(%arg0: i32, %arg1: i32) -> (i32, i32, i32, i32, i32) {
    %c0_i32 = arith.constant 0 : i32
    %c0_i32_0 = arith.constant 0 : i32
    %c0_i32_1 = arith.constant 0 : i32
    %c0_i32_2 = arith.constant 0 : i32
    return %arg0, %arg1, %c0_i32, %c0_i32_0, %c0_i32_1 : i32, i32, i32, i32, i32
  }
  func.func @transform_1(%arg0: i32, %arg1: i32) -> (i32, i32, i32) {
    %c0_i32 = arith.constant 0 : i32
    %c0_i32_0 = arith.constant 0 : i32
    %c0_i32_1 = arith.constant 0 : i32
    %c0_i32_2 = arith.constant 0 : i32
    return %c0_i32, %c0_i32_0, %c0_i32_1 : i32, i32, i32
  }
  func.func @transform_2(%arg0: i32, %arg1: i32) -> (i32, i32) {
    %c0_i32 = arith.constant 0 : i32
    %c0_i32_0 = arith.constant 0 : i32
    %c0_i32_1 = arith.constant 0 : i32
    return %c0_i32, %c0_i32_0 : i32, i32
  }
  func.func @transform_3(%arg0: i32, %arg1: i32) -> (i32, i32) {
    %c1_i32 = arith.constant 1 : i32
    %0 = arith.muli %arg0, %c1_i32 : i32
    %1 = arith.addi %0, %arg1 : i32
    %c0_i32 = arith.constant 0 : i32
    %c0_i32_0 = arith.constant 0 : i32
    return %1, %c0_i32 : i32, i32
  }
  func.func @transform_4(%arg0: i32, %arg1: i32) -> (i32, i32) {
    %c1_i32 = arith.constant 1 : i32
    %0 = arith.muli %arg0, %c1_i32 : i32
    %1 = arith.addi %0, %arg1 : i32
    %c0_i32 = arith.constant 0 : i32
    %c0_i32_0 = arith.constant 0 : i32
    return %1, %c0_i32 : i32, i32
  }
  func.func @transform_5(%arg0: i32, %arg1: i32) -> (i32, i32) {
    %c1_i32 = arith.constant 1 : i32
    %0 = arith.muli %arg0, %c1_i32 : i32
    %1 = arith.addi %0, %arg1 : i32
    %c0_i32 = arith.constant 0 : i32
    %c0_i32_0 = arith.constant 0 : i32
    return %1, %c0_i32 : i32, i32
  }
}

</mosaic_0001>

<bundles_post_ra>
// kernel: convlstm_cell_forward.1
= control target key start
LH: loop header
LB: loop body
LE: loop exit
PB: predicated region body
PF: predicated region fallthrough
CT: control target
= control target key end

     0   :  { %11 = vsyncpa [#allocation3], 0  ;;  %s8265_s0 = inlined_call_operand.vmem [shape: bf16[2,1,18,18,36], index: 0, kind: input, shape index: {}]   ;;  %s8266_s1 = inlined_call_operand.vmem [shape: bf16[9,36,128], index: 1, kind: input, shape index: {}]   ;;  %s8267_s2 = inlined_call_operand.vmem [shape: f32[1,128], index: 2, kind: input, shape index: {}]   ;;  %s8268_s3 = inlined_call_operand.vmem [shape: f32[512,32], index: 3, kind: input, shape index: {}, may-alias: {3,5}]   ;;  %s8269_s4 = inlined_call_operand.hbm [shape: f32[512,32], index: 4, kind: output, shape index: {0}]   ;;  %s8270_s5 = inlined_call_operand.vmem [shape: f32[512,32], index: 5, kind: output, shape index: {1}, may-alias: {3,5}]  }
   0x1   :  { %13 = vsyncpa [#allocation3 + $0x1], 0  ;;  %s6390_s18 = smov 0   ;;  %s6392_s19 = smov 0  }
   0x2   :  { %s6394_s20 = smov 0   ;;  %s6396_s21 = smov 0  }
   0x3   :  { %s6398_s22 = smov 0   ;;  %s6400_s23 = smov 0  }
   0x4 LB: > { %s4742_s24 = sadd.s32 4294967295, %s6352_s23   ;;  %s4743_s25 = sadd.s32 4294967294, %s6352_s23   ;;  %s6352_s23 = sphi %s6400_s23, %s19_s23   ;;  %s6348_s22 = sphi %s6398_s22, %s8367_s22   ;;  %s6344_s21 = sphi %s6396_s21, %s8366_s21   ;;  %s6340_s20 = sphi %s6394_s20, %s8365_s20   ;;  %s6336_s19 = sphi %s6392_s19, %s8364_s19   ;;  %s6332_s18 = sphi %s6390_s18, %s8363_s18  }
   0x5   : > { %s31_s26 = sadd.s32 1, %s6348_s22  ;;  %s138_s27 = sadd.s32 1, %s6340_s20 }
   0x6   : > { %p33_p0 = scmp.ge.s32.totalorder %s31_s26, 2  ;;  %p148_p1 = scmp.ne.s32.totalorder %s6340_s20, %s6336_s19 }
   0x7   : > { %p149_p2 = scmp.eq.s32.totalorder %s4742_s24, 1  ;;  %p154_p3 = scmp.ne.s32.totalorder %s6336_s19, %s6332_s18 }
   0x8   : > { %s8369_s26 = smov (%p33_p0, %s31_s26), 0  ;;  %p155_p5 = scmp.eq.s32.totalorder %s4743_s25, 1 }
   0x9   : > { %p6430_p4 = por %p149_p2, %p148_p1  ;;  %s135_s29 = ssub.s32 %s6348_s22, %s8369_s26 }
   0xa   : > { %p4746_p6 = scmp.ge.s32.totalorder %s6352_s23, 1  ;;  %p136_p7 = scmp.eq.s32.totalorder %s135_s29, 0 }
   0xb   : > { %p6437_p8 = por %p155_p5, %p154_p3  ;;  %p230_p9 = scmp.lt.s32.totalorder %s6352_s23, 3 }
   0xc   : > { %s6443_s6 = scalar_select %p136_p7, %s6340_s20, %s138_s27  }
   0xd   : > { %p231_p10 = pnand %p4746_p6, %p230_p9 }
   0xf   : > { %234 = sbr.rel (%p231_p10) target bundleno = 1112 (0x458), region = 36 }
  0x16   : > { %v5953_v0 = vld [vmem:[%s8266_s1] sm:$0xff]   ;;  %v5954_v1 = vld [vmem:[%s8266_s1 + $0x8] sm:$0xff]   ;;  %p274_p11 = scmp.lt.s32.totalorder %s6344_s21, 1  ;;  %v5955_v2 = vld [vmem:[%s8266_s1 + $0x50] sm:$0xff]   ;;  %vm494_vm0 = vcmask 1041408   ;;  %vm445_vm1 = vcmask 293888  }
  0x17   : > { %5246 = vmatprep.subr.bf16.mxu1 %v5953_v0  ;;  %v5956_v3 = vld [vmem:[%s8266_s1 + $0x10] ss:$0 sps:$4 sm:$0x33]   ;;  %v5957_v4 = vld [vmem:[%s8266_s1 + $0x58] sm:$0xff]   ;;  %5398 = vmatprep.subr.bf16.mxu0 %v5955_v2  ;;  %vm2455_vm2 = vcmask 1042432   ;;  %vm2456_vm5 = vcmask 1046532  }
  0x18   : > { %5247 = vmatpush3.bf16.msra.mxu1 %v5953_v0  ;;  %s275_s17 = scalar_select %p274_p11, %s6344_s21, 1  ;;  %5399 = vmatpush3.bf16.msra.mxu0 %v5955_v2  ;;  %v5960_v5 = vld [vmem:[%s8266_s1 + $0x60] ss:$0 sps:$4 sm:$0x33]   ;;  %vm1195_vm3 = vsmask.f32 3328  ;;  %vm6491_vm6 = vmor %vm2455_vm2, %vm2456_vm5 }
  0x19   : > { %5248 = vmatprep.subr.bf16.mxu1 %v5954_v1  ;;  %5400 = vmatprep.subr.bf16.mxu0 %v5957_v4  ;;  %v496_v6 = vsel %vm494_vm0, %v5956_v3, 0  ;;  %vm1196_vm4 = vsmask.f32 7440  ;;  %v6475_v7 = vld [vmem:[%s8266_s1 + $0x8c] sm:$0xff]   ;;  %v6483_v10 = vsel %vm494_vm0, %v5960_v5, 0  ;;  %s4749_s29 = sshll.u32 %s6344_s21, 5 }
  0x1a   : > { %s5892_s24 = smul.u32 216, %s275_s17  ;;  %8301 = vst [vmem:[#allocation5_spill] sm:$0xff] %v6483_v10  ;;  %vm6514_vm7 = vmor %vm1195_vm3, %vm1196_vm4  ;;  %p285_p12 = scmp.lt.s32.totalorder %s4749_s29, 63  ;;  %vm4405_vm8 = vcmask 261120  }
  0x1b   : > { %s6354_s16 = smov 32   ;;  %s6355_s10 = smov 96  }
  0x1c   : > { %5249 = vmatpush3.bf16.msra.mxu1 %v5954_v1  ;;  %s6470_s8 = scalar_lea.vmem %s8265_s0, %s5892_s24  ;;  %5401 = vmatpush3.bf16.msra.mxu0 %v5957_v4  ;;  %s8371_s29 = smov (!%p285_p12, %s4749_s29), 63 }
  0x1d   : > { %5882 = vmatprep.subr.msk.bf16.mxu1 %vm494_vm0, %v5956_v3  ;;  %v5958_v8 = vld [vmem:[%s6470_s8] sm:$0xff]   ;;  %v6479_v9 = vld [vmem:[%s6470_s8 + $0xc] sm:$0xff]   ;;  %5886 = vmatprep.subr.msk.bf16.mxu0 %vm494_vm0, %v5960_v5  ;;  %v1146_v13 = vld [vmem:[%s6470_s8 + $0x14] sm:$0x1]  ;;  %s4750_s7 = sshll.u32 %s8371_s29, 3  ;;  %s6356_s29 = smov 64  }
  0x1e   : > { %5252 = vmatprep.mubr.msk.bf16.mxu1 %vm445_vm1, %v5958_v8  ;;  %v1144_v11 = vld [vmem:[%s6470_s8 + $0xc] sm:$0xf]  ;;  %v1145_v12 = vld [vmem:[%s6470_s8 + $0x10] sm:$0xf]  ;;  %v1242_v20 = vshll.u32 %v1146_v13, 16  ;;  %v2470_v23 = vrot.slane %v1146_v13, 5  ;;  %s7275_s13 = scalar_lea.vmem %s8268_s3, %s4750_s7 }
  0x1f   : > { %v1223_v14 = vshrl.u32 %v1144_v11, 16  ;;  %v1226_v15 = vshll.u32 %v1144_v11, 16  ;;  %v1232_v16 = vshll.u32 %v1145_v12, 16  ;;  %v1236_v17 = vshrl.u32 %v1145_v12, 16  ;;  %v2390_v18 = vld [vmem:[%s6470_s8 + $0xc] sm:$0xe] }
  0x20   : > { %5251 = vmatpush3.bf16.msra.mxu1 %v496_v6  ;;  %5403 = vmatpush3.bf16.msra.mxu0 %v6483_v10  ;;  %v4930_v21 = vrot.slane %v2390_v18, 9  ;;  %v2467_v22 = vrot.slane %v1145_v12, 5  ;;  %v1147_v24 = vld [vmem:[%s6470_s8 + $0x18] sm:$0xf]  ;;  %v6501_v29 = vld [vmem:[%s6470_s8 + $0x1c] sm:$0xf] }
  0x21   : > { %v1225_v25 = vrot.slane %v1223_v14, 4  ;;  %v1228_v26 = vrot.slane %v1226_v15, 5  ;;  %v1234_v27 = vrot.slane %v1232_v16, 5  ;;  %v1238_v28 = vrot.slane %v1236_v17, 4  ;;  %5436 = vmatprep.subr.bf16.mxu0 %v6475_v7  ;;  %v6506_v33 = vld [vmem:[%s6470_s8 + $0x20] sm:$0x1] }
  0x22   : > { %v1244_v30 = vrot.slane %v1242_v20, 5  ;;  %v2468_v31 = vsel %vm6491_vm6, %v4930_v21, %v2467_v22  ;;  %v2469_v32 = vrot.slane %v2467_v22, 4  ;;  %v1247_v34 = vshrl.u32 %v1147_v24, 16  ;;  %v6509_v35 = vld [vmem:[%s6470_s8 + $0x18] sm:$0xff]   ;;  %v6527_v49 = vld [vmem:[%s6470_s8 + $0x24] sm:$0xff]   ;;  %v6531_v54 = vld [vmem:[%s6470_s8 + $0x30] sm:$0xff]  }
  0x23   : > { %5253 = vmatmul.mubr.msk.bf16.vlgmr.msra.gmra.mrb[0].mxu1 %vm445_vm1, %v6479_v9  ;;  %v1229_v36 = vor.u32 %v1228_v26, %v1225_v25  ;;  %v1239_v37 = vor.u32 %v1238_v28, %v1234_v27  ;;  %v1250_v38 = vshll.u32 %v1147_v24, 16  ;;  %v1256_v39 = vshll.u32 %v6501_v29, 16  ;;  %v1150_v53 = vld [vmem:[%s6470_s8 + $0x24] sm:$0xf]  ;;  %v6538_v58 = vld [vmem:[%s6470_s8 + $0x28] sm:$0xf] }
  0x24   : > { %v2471_v41 = vsel %vm6491_vm6, %v2469_v32, %v2470_v23  ;;  %v1249_v42 = vrot.slane %v1247_v34, 4  ;;  %v1260_v43 = vshrl.u32 %v6501_v29, 16  ;;  %v1266_v44 = vshll.u32 %v6506_v33, 16  ;;  %5256 = vmatprep.mubr.msk.bf16.mxu1 %vm445_vm1, %v6509_v35  ;;  %v6541_v59 = vld [vmem:[%s6470_s8 + $0x2c] sm:$0x1]  ;;  %v5965_v20 = vld [vmem:[%s8266_s1 + $0x94] sm:$0xff]  }
  0x25   : > { %v1230_v45 = vrot.slane %v1229_v36, 4  ;;  %v1240_v46 = vrot.slane %v1239_v37, 4  ;;  %v6524_v47 = vcombine.low %v2468_v31, %v2471_v41  ;;  %v1252_v48 = vrot.slane %v1250_v38, 5  ;;  %v1153_v1 = vld [vmem:[%s6470_s8 + $0x30] sm:$0xf]  ;;  %v6563_v21 = vld [vmem:[%s6470_s8 + $0x3c] sm:$0xff]  }
  0x26   : > { %v1258_v50 = vrot.slane %v1256_v39, 5  ;;  %v1262_v51 = vrot.slane %v1260_v43, 4  ;;  %v1268_v52 = vrot.slane %v1266_v44, 5  ;;  %v1271_v60 = vshrl.u32 %v1150_v53, 16  ;;  %v1154_v2 = vld [vmem:[%s6470_s8 + $0x34] sm:$0xf] }
  0x27   : > { %8306 = vst [vmem:[#allocation6_spill] sm:$0xff] %v6524_v47  ;;  %v1235_v55 = vsel %vm6514_vm7, %v1230_v45, %v1234_v27  ;;  %v1245_v56 = vsel %vm6514_vm7, %v1240_v46, %v1244_v30  ;;  %v1253_v57 = vor.u32 %v1252_v48, %v1249_v42  ;;  %v1274_v63 = vshll.u32 %v1150_v53, 16  ;;  %v1155_v8 = vld [vmem:[%s6470_s8 + $0x38] sm:$0x1]  ;;  %v6568_v26 = vld [vmem:[%s6470_s8 + $0x48] sm:$0xff]   ;;  %v5969_v53 = vld [vmem:[%s8266_s1 + $0x3c] sm:$0xff]  }
  0x28   : > { %v6543_v61 = vcombine.low %v1235_v55, %v1245_v56  ;;  %v1263_v62 = vor.u32 %v1262_v51, %v1258_v50  ;;  %v1280_v0 = vshll.u32 %v6538_v58, 16  ;;  %v1273_v4 = vrot.slane %v1271_v60, 4  ;;  %v1156_v32 = vld [vmem:[%s6470_s8 + $0x3c] sm:$0xf]  ;;  %v1157_v38 = vld [vmem:[%s6470_s8 + $0x40] sm:$0xf]  ;;  %5284 = vmatprep.subr.bf16.mxu1 %v5969_v53 }
  0x29   : > { %v1254_v3 = vrot.slane %v1253_v57, 4  ;;  %v1284_v5 = vshrl.u32 %v6538_v58, 16  ;;  %v1290_v6 = vshll.u32 %v6541_v59, 16  ;;  %v1276_v12 = vrot.slane %v1274_v63, 5  ;;  %v1158_v44 = vld [vmem:[%s6470_s8 + $0x44] sm:$0x1]  ;;  %5285 = vmatpush3.bf16.msra.mxu1 %v5969_v53 }
  0x2a   : > { %8307 = vst [vmem:[#allocation7_spill] sm:$0xff] %v6543_v61  ;;  %5404 = vmatprep.mubr.msk.bf16.mxu0 %vm445_vm1, %v6543_v61  ;;  %v1264_v11 = vrot.slane %v1263_v62, 4  ;;  %v1282_v13 = vrot.slane %v1280_v0, 5  ;;  %v1295_v14 = vshrl.u32 %v1153_v1, 16  ;;  %v1298_v18 = vshll.u32 %v1153_v1, 16  ;;  %s6357_s9 = smov [#allocation2]  }
  0x2b   : > { %5257 = vmatmul.mubr.msk.bf16.gmra.mrb[4].mxu1 %vm445_vm1, %v6527_v49  ;;  %v1259_v15 = vsel %vm6514_vm7, %v1254_v3, %v1258_v50  ;;  %v1286_v16 = vrot.slane %v1284_v5, 4  ;;  %v1292_v17 = vrot.slane %v1290_v6, 5  ;;  %v1277_v23 = vor.u32 %v1276_v12, %v1273_v4  ;;  %v1160_v60 = vld [vmem:[%s6470_s8 + $0x4c] sm:$0xf]  ;;  %v6834_v61 = vld [vmem:[%s6470_s8 + $0xb8] sm:$0xf] }
  0x2c   : > { %5260 = vmatprep.mubr.msk.bf16.mxu1 %vm445_vm1, %v6531_v54  ;;  %v1269_v22 = vsel %vm6514_vm7, %v1264_v11, %v1268_v52  ;;  %v1297_v24 = vrot.slane %v1295_v14, 4  ;;  %v1304_v25 = vshll.u32 %v1154_v2, 16  ;;  %v1300_v30 = vrot.slane %v1298_v18, 5  ;;  %v1159_v52 = vld [vmem:[%s6470_s8 + $0x48] sm:$0xf]  ;;  %8321 = vst [vmem:[#allocation21_spill] sm:$0xff] %v6834_v61 }
  0x2d   : > { %v6570_v27 = vcombine.low %v1259_v15, %v1269_v22  ;;  %v1287_v28 = vor.u32 %v1286_v16, %v1282_v13  ;;  %v1308_v31 = vshrl.u32 %v1154_v2, 16  ;;  %v1278_v34 = vrot.slane %v1277_v23, 4  ;;  %v1161_v2 = vld [vmem:[%s6470_s8 + $0x50] sm:$0x1]  ;;  %v6604_v22 = vld [vmem:[%s6470_s8 + $0x60] sm:$0xff]  }
  0x2e   : > { %v1306_v36 = vrot.slane %v1304_v25, 5  ;;  %v1314_v37 = vshll.u32 %v1155_v8, 16  ;;  %v1319_v39 = vshrl.u32 %v1156_v32, 16  ;;  %v1301_v42 = vor.u32 %v1300_v30, %v1297_v24  ;;  %v6597_v8 = vld [vmem:[%s6470_s8 + $0x54] sm:$0xff]   ;;  %v6851_v47 = vld [vmem:[%s6470_s8 + $0xb0] sm:$0x1] }
  0x2f   : > { %8308 = vst [vmem:[#allocation8_spill] sm:$0xff] %v6570_v27  ;;  %5405 = vmatmul.mubr.msk.bf16.vlgmr.msra.gmra.mrb[0].mxu0 %vm445_vm1, %v6570_v27  ;;  %v1288_v41 = vrot.slane %v1287_v28, 4  ;;  %v1310_v43 = vrot.slane %v1308_v31, 4  ;;  %v1322_v45 = vshll.u32 %v1156_v32, 16  ;;  %v1283_v46 = vsel %vm6514_vm7, %v1278_v34, %v1282_v13  ;;  %v6614_v32 = vld [vmem:[%s8266_s1 + $0x28] sm:$0xff]  }
  0x30   : > { %5437 = vmatpush3.bf16.msra.mxu0 %v6475_v7  ;;  %v1316_v48 = vrot.slane %v1314_v37, 5  ;;  %v1321_v50 = vrot.slane %v1319_v39, 4  ;;  %v1328_v51 = vshll.u32 %v1157_v38, 16  ;;  %v1302_v56 = vrot.slane %v1301_v42, 4  ;;  %v1163_v39 = vld [vmem:[%s6470_s8 + $0x58] sm:$0xf] }
  0x31   : > { %v1293_v55 = vsel %vm6514_vm7, %v1288_v41, %v1292_v17  ;;  %v1311_v57 = vor.u32 %v1310_v43, %v1306_v36  ;;  %5438 = vmatprep.subr.bf16.mxu0 %v5965_v20  ;;  %v1324_v7 = vrot.slane %v1322_v45, 5  ;;  %v1332_v0 = vshrl.u32 %v1157_v38, 16  ;;  %v5970_v31 = vld [vmem:[%s8266_s1 + $0x9c] ss:$0 sps:$4 sm:$0x33]  }
  0x32   : > { %v6589_v62 = vcombine.low %v1283_v46, %v1293_v55  ;;  %v1330_v63 = vrot.slane %v1328_v51, 5  ;;  %v1338_v1 = vshll.u32 %v1158_v44, 16  ;;  %v1307_v3 = vsel %vm6514_vm7, %v1302_v56, %v1306_v36  ;;  %v1162_v38 = vld [vmem:[%s6470_s8 + $0x54] sm:$0xf]  ;;  %v1164_v44 = vld [vmem:[%s6470_s8 + $0x5c] sm:$0x1] }
  0x33   : > { %5261 = vmatmul.mubr.msk.bf16.gmra.mrb[8].mxu1 %vm445_vm1, %v6563_v21  ;;  %v1312_v4 = vrot.slane %v1311_v57, 4  ;;  %v1325_v5 = vor.u32 %v1324_v7, %v1321_v50  ;;  %v1343_v6 = vshrl.u32 %v1159_v52, 16  ;;  %v1334_v11 = vrot.slane %v1332_v0, 4  ;;  %v6635_v7 = vld [vmem:[%s6470_s8 + $0x64] sm:$0xf] }
  0x34   : > { %8309 = vst [vmem:[#allocation9_spill] sm:$0xff] %v6589_v62  ;;  %5264 = vmatprep.mubr.msk.bf16.mxu1 %vm445_vm1, %v6568_v26  ;;  %5408 = vmatprep.mubr.msk.bf16.mxu0 %vm445_vm1, %v6589_v62  ;;  %v1340_v12 = vrot.slane %v1338_v1, 5  ;;  %v1346_v13 = vshll.u32 %v1159_v52, 16  ;;  %v1352_v14 = vshll.u32 %v1160_v60, 16  ;;  %v1356_v18 = vshrl.u32 %v1160_v60, 16  ;;  %v6638_v60 = vld [vmem:[%s6470_s8 + $0x6c] sm:$0xff]  }
  0x35   : > { %5439 = vmatpush3.bf16.msra.mxu0 %v5965_v20  ;;  %v1317_v15 = vsel %vm6514_vm7, %v1312_v4, %v1316_v48  ;;  %v1326_v16 = vrot.slane %v1325_v5, 4  ;;  %v1345_v17 = vrot.slane %v1343_v6, 4  ;;  %v1335_v24 = vor.u32 %v1334_v11, %v1330_v63  ;;  %v1165_v52 = vld [vmem:[%s6470_s8 + $0x60] sm:$0xf]  ;;  %v5978_v4 = vld [vmem:[%s8266_s1 + $0x44] sm:$0xff]  }
  0x36   : > { %v6606_v23 = vcombine.low %v1307_v3, %v1317_v15  ;;  %v1348_v25 = vrot.slane %v1346_v13, 5  ;;  %v1354_v28 = vrot.slane %v1352_v14, 5  ;;  %v1358_v20 = vrot.slane %v1356_v18, 4  ;;  %5888 = vmatprep.subr.msk.bf16.mxu0 %vm494_vm0, %v5970_v31  ;;  %v6644_v3 = vld [vmem:[%s6470_s8 + $0x68] sm:$0x1]  ;;  %v6654_v13 = vld [vmem:[%s6470_s8 + $0x78] sm:$0xff]   ;;  %5286 = vmatprep.subr.bf16.mxu1 %v5978_v4 }
  0x37   : > { %v1362_v30 = vshll.u32 %v1161_v2, 16  ;;  %v1331_v34 = vsel %vm6514_vm7, %v1326_v16, %v1330_v63  ;;  %v1336_v36 = vrot.slane %v1335_v24, 4  ;;  %v2194_v43 = vsel %vm494_vm0, %v5970_v31, 0  ;;  %5287 = vmatpush3.bf16.msra.mxu1 %v5978_v4 }
  0x38   : > { %8310 = vst [vmem:[#allocation10_spill] sm:$0xff] %v6606_v23  ;;  %5409 = vmatmul.mubr.msk.bf16.gmra.mrb[4].mxu0 %vm445_vm1, %v6606_v23  ;;  %v1349_v37 = vor.u32 %v1348_v25, %v1345_v17  ;;  %v1359_v41 = vor.u32 %v1358_v20, %v1354_v28  ;;  %v1367_v45 = vshrl.u32 %v1162_v38, 16  ;;  %v1370_v50 = vshll.u32 %v1162_v38, 16 }
  0x39   : > { %v1364_v42 = vrot.slane %v1362_v30, 5  ;;  %v1341_v46 = vsel %vm6514_vm7, %v1336_v36, %v1340_v12  ;;  %5441 = vmatpush3.bf16.msra.mxu0 %v2194_v43  ;;  %v1376_v51 = vshll.u32 %v1163_v39, 16  ;;  %v1380_v57 = vshrl.u32 %v1163_v39, 16 }
  0x3a   : > { %v1350_v48 = vrot.slane %v1349_v37, 4  ;;  %v6632_v53 = vcombine.low %v1331_v34, %v1341_v46  ;;  %v1360_v55 = vrot.slane %v1359_v41, 4  ;;  %v1369_v56 = vrot.slane %v1367_v45, 4  ;;  %5474 = vmatprep.subr.bf16.mxu0 %v6614_v32 }
  0x3b   : > { %5265 = vmatmul.mubr.msk.bf16.gmra.mrb[12].mxu1 %vm445_vm1, %v6597_v8  ;;  %v1372_v0 = vrot.slane %v1370_v50, 5  ;;  %v1378_v1 = vrot.slane %v1376_v51, 5  ;;  %v1386_v2 = vshll.u32 %v1164_v44, 16  ;;  %v1382_v6 = vrot.slane %v1380_v57, 4  ;;  %v6672_v44 = vld [vmem:[%s6470_s8 + $0x84] sm:$0xff]   ;;  %v6679_v50 = vld [vmem:[%s6470_s8 + $0x90] sm:$0xff]  }
  0x3c   : > { %5268 = vmatprep.mubr.msk.bf16.mxu1 %vm445_vm1, %v6604_v22  ;;  %8311 = vst [vmem:[#allocation11_spill] sm:$0xff] %v6632_v53  ;;  %v1355_v63 = vsel %vm6514_vm7, %v1350_v48, %v1354_v28  ;;  %5412 = vmatprep.mubr.msk.bf16.mxu0 %vm445_vm1, %v6632_v53  ;;  %v1365_v5 = vsel %vm6514_vm7, %v1360_v55, %v1364_v42  ;;  %v1391_v11 = vshrl.u32 %v1165_v52, 16  ;;  %v1394_v12 = vshll.u32 %v1165_v52, 16  ;;  %v5982_v55 = vld [vmem:[%s8266_s1 + $0x4c] ss:$0 sps:$4 sm:$0x33]  }
  0x3d   : > { %v6656_v14 = vcombine.low %v1355_v63, %v1365_v5  ;;  %v1373_v15 = vor.u32 %v1372_v0, %v1369_v56  ;;  %v1388_v16 = vrot.slane %v1386_v2, 5  ;;  %v1400_v17 = vshll.u32 %v6635_v7, 16  ;;  %8314 = vst [vmem:[#allocation14_spill] sm:$0xff] %v6679_v50  ;;  %v1168_v56 = vld [vmem:[%s6470_s8 + $0x6c] sm:$0xf]  ;;  %v6699_v63 = vld [vmem:[%s8266_s1 + $0x78] sm:$0xff]   ;;  %5883 = vmatprep.subr.msk.bf16.mxu1 %vm494_vm0, %v5982_v55 }
  0x3e   : > { %v1383_v18 = vor.u32 %v1382_v6, %v1378_v1  ;;  %v1393_v24 = vrot.slane %v1391_v11, 4  ;;  %v1396_v25 = vrot.slane %v1394_v12, 5  ;;  %v1404_v28 = vshrl.u32 %v6635_v7, 16  ;;  %v6694_v57 = vld [vmem:[%s6470_s8 + $0x70] sm:$0xf] }
  0x3f   : > { %8312 = vst [vmem:[#allocation12_spill] sm:$0xff] %v6656_v14  ;;  %v1374_v20 = vrot.slane %v1373_v15, 4  ;;  %v1402_v30 = vrot.slane %v1400_v17, 5  ;;  %v1410_v31 = vshll.u32 %v6644_v3, 16  ;;  %v721_v0 = vsel %vm494_vm0, %v5982_v55, 0  ;;  %v6716_v15 = vld [vmem:[%s6470_s8 + $0x9c] sm:$0xff]  }
  0x40   : > { %5413 = vmatmul.mubr.msk.bf16.gmra.mrb[8].mxu0 %vm445_vm1, %v6656_v14  ;;  %v1384_v34 = vrot.slane %v1383_v18, 4  ;;  %v1397_v36 = vor.u32 %v1396_v25, %v1393_v24  ;;  %v1406_v37 = vrot.slane %v1404_v28, 4  ;;  %v1415_v2 = vshrl.u32 %v1168_v56, 16  ;;  %v6711_v5 = vld [vmem:[%s6470_s8 + $0x7c] sm:$0xf]  ;;  %5289 = vmatpush3.bf16.msra.mxu1 %v721_v0  ;;  %8316 = vst [vmem:[#allocation16_spill] sm:$0xff] %v6716_v15 }
  0x41   : > { %v1379_v38 = vsel %vm6514_vm7, %v1374_v20, %v1378_v1  ;;  %v1412_v43 = vrot.slane %v1410_v31, 5  ;;  %v1171_v1 = vld [vmem:[%s6470_s8 + $0x78] sm:$0xf]  ;;  %v1418_v4 = vshll.u32 %v1168_v56, 16  ;;  %v1424_v6 = vshll.u32 %v6694_v57, 16  ;;  %5322 = vmatprep.subr.bf16.mxu1 %v6699_v63  ;;  %v6721_v18 = vld [vmem:[%s6470_s8 + $0xa8] sm:$0xff]  }
  0x42   : > { %v1389_v39 = vsel %vm6514_vm7, %v1384_v34, %v1388_v16  ;;  %v1398_v41 = vrot.slane %v1397_v36, 4  ;;  %v1407_v42 = vor.u32 %v1406_v37, %v1402_v30  ;;  %v1428_v11 = vshrl.u32 %v6694_v57, 16  ;;  %8317 = vst [vmem:[#allocation17_spill] sm:$0xff] %v6721_v18  ;;  %v1174_v25 = vld [vmem:[%s6470_s8 + $0x84] sm:$0xf]  ;;  %v5981_v31 = vld [vmem:[%s8266_s1 + $0x30] sm:$0xff]  }
  0x43   : > { %5269 = vmatmul.mubr.msk.bf16.gmra.mrb[16].mxu1 %vm445_vm1, %v6638_v60  ;;  %v6674_v45 = vcombine.low %v1379_v38, %v1389_v39  ;;  %v1439_v12 = vshrl.u32 %v1171_v1, 16  ;;  %v1442_v16 = vshll.u32 %v1171_v1, 16  ;;  %v1448_v17 = vshll.u32 %v6711_v5, 16  ;;  %v6736_v39 = vld [vmem:[%s6470_s8 + $0x74] sm:$0x1] }
  0x44   : > { %5272 = vmatprep.mubr.msk.bf16.mxu1 %vm445_vm1, %v6654_v13  ;;  %v1403_v46 = vsel %vm6514_vm7, %v1398_v41, %v1402_v30  ;;  %v1408_v48 = vrot.slane %v1407_v42, 4  ;;  %v1452_v24 = vshrl.u32 %v6711_v5, 16  ;;  %v1417_v28 = vrot.slane %v1415_v2, 4  ;;  %v6726_v30 = vld [vmem:[%s6470_s8 + $0x88] sm:$0xf]  ;;  %v6754_v0 = vld [vmem:[%s6470_s8 + $0xb4] sm:$0xff]  }
  0x45   : > { %8313 = vst [vmem:[#allocation13_spill] sm:$0xff] %v6674_v45  ;;  %5416 = vmatprep.mubr.msk.bf16.mxu0 %vm445_vm1, %v6674_v45  ;;  %v1420_v20 = vrot.slane %v1418_v4, 5  ;;  %v6731_v34 = vrot.slane %v1424_v6, 5  ;;  %v1430_v36 = vrot.slane %v1428_v11, 4  ;;  %v1441_v37 = vrot.slane %v1439_v12, 4  ;;  %8318 = vst [vmem:[#allocation18_spill] sm:$0xff] %v6754_v0 }
  0x46   : > { %v1413_v51 = vsel %vm6514_vm7, %v1408_v48, %v1412_v43  ;;  %v1444_v38 = vrot.slane %v1442_v16, 5  ;;  %v6738_v41 = vrot.slane %v1448_v17, 5  ;;  %v1454_v42 = vrot.slane %v1452_v24, 4  ;;  %v6745_v48 = vld [vmem:[%s6470_s8 + $0x80] sm:$0x1] }
  0x47   : > { %v6685_v52 = vcombine.low %v1403_v46, %v1413_v51  ;;  %v1463_v43 = vshrl.u32 %v1174_v25, 16  ;;  %v1466_v46 = vshll.u32 %v1174_v25, 16  ;;  %v1472_v51 = vshll.u32 %v6726_v30, 16  ;;  %v1177_v56 = vld [vmem:[%s6470_s8 + $0x90] sm:$0xf] }
  0x48   : > { %v1476_v55 = vshrl.u32 %v6726_v30, 16  ;;  %v1421_v1 = vor.u32 %v1420_v20, %v1417_v28  ;;  %v1431_v2 = vor.u32 %v1430_v36, %v6731_v34  ;;  %v1434_v4 = vshll.u32 %v6736_v39, 16  ;;  %v6759_v11 = vld [vmem:[%s6470_s8 + $0x94] sm:$0xf]  ;;  %v6767_v25 = vld [vmem:[%s6470_s8 + $0x8c] sm:$0x1] }
  0x49   : > { %8315 = vst [vmem:[#allocation15_spill] sm:$0xff] %v6685_v52  ;;  %5417 = vmatmul.mubr.msk.bf16.gmra.mrb[12].mxu0 %vm445_vm1, %v6685_v52  ;;  %v1445_v6 = vor.u32 %v1444_v38, %v1441_v37  ;;  %v1455_v12 = vor.u32 %v1454_v42, %v6738_v41  ;;  %v1458_v16 = vshll.u32 %v6745_v48, 16  ;;  %v1468_v17 = vrot.slane %v1466_v46, 5  ;;  %v5983_v24 = vld [vmem:[%s8266_s1 + $0x38] ss:$0 sps:$4 sm:$0x33]  }
  0x4a   : > { %5442 = vmatprep.mubr.msk.bf16.mxu0 %vm445_vm1, %v6570_v27  ;;  %v6769_v28 = vrot.slane %v1472_v51, 5  ;;  %v1478_v20 = vrot.slane %v1476_v55, 4  ;;  %v1487_v36 = vshrl.u32 %v1177_v56, 16  ;;  %v1490_v10 = vshll.u32 %v1177_v56, 16  ;;  %v1180_v27 = vld [vmem:[%s6470_s8 + $0x9c] sm:$0xf] }
  0x4b   : > { %5273 = vmatmul.mubr.msk.bf16.gmra.mrb[20].mxu1 %vm445_vm1, %v6672_v44  ;;  %v1496_v37 = vshll.u32 %v6759_v11, 16  ;;  %v1500_v38 = vshrl.u32 %v6759_v11, 16  ;;  %v1422_v42 = vrot.slane %v1421_v1, 4  ;;  %v1436_v46 = vrot.slane %v1434_v4, 5  ;;  %v6788_v4 = vld [vmem:[%s6470_s8 + $0x98] sm:$0x1] }
  0x4c   : > { %5276 = vmatprep.mubr.msk.bf16.mxu1 %vm445_vm1, %v6679_v50  ;;  %v1456_v51 = vrot.slane %v1455_v12, 4  ;;  %v1460_v55 = vrot.slane %v1458_v16, 5  ;;  %v1482_v56 = vshll.u32 %v6767_v25, 16  ;;  %v1492_v12 = vrot.slane %v1490_v10, 5  ;;  %v1183_v10 = vld [vmem:[%s6470_s8 + $0xa8] sm:$0xf] }
  0x4d   : > { %v6792_v16 = vrot.slane %v1496_v37, 5  ;;  %v1506_v37 = vshll.u32 %v6788_v4, 16 }
  0x51   : > { %5443 = vmatmul.mubr.msk.bf16.vlgmr.msra.gmra.mrb[0].mxu0 %vm445_vm1, %v6589_v62  ;;  %v1502_v62 = vrot.slane %v1500_v38, 4  ;;  %v2688_v38 = vsel %vm494_vm0, %v5983_v24, 0 }
  0x52   : > { %5475 = vmatpush3.bf16.msra.mxu0 %v6614_v32  ;;  %5446 = vmatprep.mubr.msk.bf16.mxu0 %vm445_vm1, %v6606_v23  ;;  %v1465_v32 = vrot.slane %v1463_v43, 4  ;;  %v1432_v43 = vrot.slane %v1431_v2, 4  ;;  %v1446_v23 = vrot.slane %v1445_v6, 4  ;;  %v1479_v2 = vor.u32 %v1478_v20, %v6769_v28 }
  0x53   : > { %5277 = vmatmul.mubr.msk.bf16.gmra.mrb[24].mxu1 %vm445_vm1, %v6716_v15  ;;  %5476 = vmatprep.subr.bf16.mxu0 %v5981_v31  ;;  %v1489_v6 = vrot.slane %v1487_v36, 4  ;;  %v1461_v20 = vsel %vm6514_vm7, %v1456_v51, %v1460_v55  ;;  %v1484_v36 = vrot.slane %v1482_v56, 5  ;;  %v1538_v56 = vshll.u32 %v1183_v10, 16 }
  0x54   : > { %5280 = vmatprep.mubr.msk.bf16.mxu1 %vm445_vm1, %v6721_v18  ;;  %v1469_v1 = vor.u32 %v1468_v17, %v1465_v32  ;;  %v1451_v32 = vsel %vm6514_vm7, %v1446_v23, %v6738_v41  ;;  %v6804_v17 = vld [vmem:[%s6470_s8 + $0xa0] sm:$0xf]  ;;  %v1503_v23 = vor.u32 %v1502_v62, %v6792_v16  ;;  %v1514_v41 = vshll.u32 %v1180_v27, 16 }
  0x55   : > { %v1520_v51 = vshll.u32 %v6804_v17, 16  ;;  %v1524_v55 = vshrl.u32 %v6804_v17, 16  ;;  %v1554_v18 = vshll.u32 %v6851_v47, 16 }
  0x56   : > { %5477 = vmatpush3.bf16.msra.mxu0 %v5981_v31  ;;  %v6780_v31 = vld [vmem:[%s8266_s1 + $0x64] sm:$0xff]  }
  0x57   : > { %5889 = vmatprep.subr.msk.bf16.mxu0 %vm494_vm0, %v5983_v24  ;;  %8319 = vst [vmem:[#allocation19_spill] sm:$0xff] %v6780_v31  ;;  %v1535_v24 = vshrl.u32 %v1183_v10, 16  ;;  %v1186_v10 = vld [vmem:[%s6470_s8 + $0xb4] sm:$0xf] }
  0x59   : > { %5447 = vmatmul.mubr.msk.bf16.gmra.mrb[4].mxu0 %vm445_vm1, %v6632_v53  ;;  %v1427_v53 = vsel %vm6514_vm7, %v1422_v42, %v6731_v34  ;;  %v1470_v34 = vrot.slane %v1469_v1, 4  ;;  %v1480_v42 = vrot.slane %v1479_v2, 4 }
  0x5a   : > { %5450 = vmatprep.mubr.msk.bf16.mxu0 %vm445_vm1, %v6656_v14  ;;  %v6812_v14 = vld [vmem:[%s6470_s8 + $0xac] sm:$0xf]  ;;  %5479 = vmatpush3.bf16.msra.mxu0 %v2688_v38  ;;  %v6830_v38 = vld [vmem:[%s6470_s8 + $0xa4] sm:$0x1] }
  0x5b   : > { %5281 = vmatmul.mubr.msk.bf16.gmra.mrb[28].mxu1 %vm445_vm1, %v6754_v0  ;;  %5512 = vmatprep.subr.bf16.mxu0 %v6780_v31  ;;  %v1544_v1 = vshll.u32 %v6812_v14, 16  ;;  %v1548_v2 = vshrl.u32 %v6812_v14, 16  ;;  %v1516_v31 = vrot.slane %v1514_v41, 5  ;;  %v1526_v0 = vrot.slane %v1524_v55, 4 }
  0x5c   : > { %5290 = vmatprep.mubr.msk.bf16.mxu1 %vm445_vm1, %v6479_v9  ;;  %v1437_v9 = vsel %vm6514_vm7, %v1432_v43, %v1436_v46  ;;  %v1493_v43 = vor.u32 %v1492_v12, %v1489_v6  ;;  %v1511_v46 = vshrl.u32 %v1180_v27, 16  ;;  %v5986_v6 = vld [vmem:[%s8266_s1 + $0x80] sm:$0xff]   ;;  %v6827_v27 = vcombine.low %v1451_v32, %v1461_v20 }
  0x5d   : > { %v6823_v62 = vcombine.low %v1427_v53, %v1437_v9  ;;  %v1508_v12 = vrot.slane %v1506_v37, 5  ;;  %v1475_v53 = vsel %vm6514_vm7, %v1470_v34, %v6769_v28  ;;  %v1485_v9 = vsel %vm6514_vm7, %v1480_v42, %v1484_v36  ;;  %v1189_v20 = vld [vmem:[%s6470_s8 + $0xc0] sm:$0xf]  ;;  %v6857_v42 = vld [vmem:[%s6470_s8 + $0xc4] sm:$0xf] }
  0x5e   : > { %v1513_v32 = vrot.slane %v1511_v46, 4  ;;  %v1504_v37 = vrot.slane %v1503_v23, 4  ;;  %v1537_v28 = vrot.slane %v1535_v24, 4  ;;  %v1540_v36 = vrot.slane %v1538_v56, 5  ;;  %8322 = vst [vmem:[#allocation22_spill] sm:$0xff] %v6857_v42 }
  0x5f   : > { %8320 = vst [vmem:[#allocation20_spill] sm:$0xff] %v6823_v62  ;;  %v6854_v34 = vrot.slane %v1544_v1, 5  ;;  %v1559_v46 = vshrl.u32 %v1186_v10, 16  ;;  %v1562_v23 = vshll.u32 %v1186_v10, 16  ;;  %v1568_v41 = vshll.u32 %v6834_v61, 16 }
  0x60   : > { %v1896_v55 = vshrl.u32 %v1189_v20, 16  ;;  %v1899_v24 = vshll.u32 %v1189_v20, 16  ;;  %v1509_v1 = vsel %vm6514_vm7, %v1504_v37, %v1508_v12  ;;  %v1192_v10 = vld [vmem:[%s6470_s8 + $0xcc] sm:$0xf]  ;;  %v6874_v20 = vld [vmem:[%s6470_s8 + $0xbc] sm:$0x1] }
  0x61   : > { %5451 = vmatmul.mubr.msk.bf16.gmra.mrb[8].mxu0 %vm445_vm1, %v6674_v45  ;;  %v6848_v45 = vrot.slane %v1520_v51, 5  ;;  %v1530_v51 = vshll.u32 %v6830_v38, 16  ;;  %v1905_v15 = vshll.u32 %v6857_v42, 16  ;;  %v1564_v12 = vrot.slane %v1562_v23, 5 }
  0x62   : > { %5454 = vmatprep.mubr.msk.bf16.mxu0 %vm445_vm1, %v6685_v52  ;;  %v1901_v37 = vrot.slane %v1899_v24, 5  ;;  %v2146_v23 = vshll.u32 %v1192_v10, 16  ;;  %v1578_v50 = vshll.u32 %v6874_v20, 16 }
  0x63   : > { %5291 = vmatmul.mubr.msk.bf16.vlgmr.msra.gmra.mrb[0].mxu1 %vm445_vm1, %v6509_v35  ;;  %v1494_v35 = vrot.slane %v1493_v43, 4  ;;  %v6859_v43 = vcombine.low %v1475_v53, %v1485_v9  ;;  %v1527_v53 = vor.u32 %v1526_v0, %v6848_v45  ;;  %v1541_v9 = vor.u32 %v1540_v36, %v1537_v28  ;;  %v6882_v0 = vld [vmem:[%s6470_s8 + $0xc8] sm:$0x1]  ;;  %v6890_v28 = vld [vmem:[%s6470_s8 + $0xd0] sm:$0xf] }
  0x64   : > { %5294 = vmatprep.mubr.msk.bf16.mxu1 %vm445_vm1, %v6527_v49  ;;  %5323 = vmatpush3.bf16.msra.mxu1 %v6699_v63  ;;  %v1550_v49 = vrot.slane %v1548_v2, 4  ;;  %v1572_v63 = vshrl.u32 %v6834_v61, 16  ;;  %v1517_v2 = vor.u32 %v1516_v31, %v1513_v32  ;;  %v6879_v31 = vrot.slane %v1568_v41, 5 }
  0x65   : > { %5324 = vmatprep.subr.bf16.mxu1 %v5986_v6  ;;  %v1499_v56 = vsel %vm6514_vm7, %v1494_v35, %v6792_v16  ;;  %v1561_v16 = vrot.slane %v1559_v46, 4  ;;  %v1898_v32 = vrot.slane %v1896_v55, 4  ;;  %v1532_v36 = vrot.slane %v1530_v51, 5 }
  0x66   : > { %v1551_v52 = vor.u32 %v1550_v49, %v6854_v34  ;;  %v1574_v35 = vrot.slane %v1572_v63, 4  ;;  %v6894_v49 = vrot.slane %v1905_v15, 5  ;;  %v6896_v41 = vcombine.low %v1499_v56, %v1509_v1 }
  0x67   : > { %v1556_v61 = vrot.slane %v1554_v18, 5  ;;  %v1542_v63 = vrot.slane %v1541_v9, 4  ;;  %v1565_v24 = vor.u32 %v1564_v12, %v1561_v16  ;;  %v1902_v15 = vor.u32 %v1901_v37, %v1898_v32  ;;  %v6922_v32 = vld [vmem:[%s6470_s8 + $0xd4] sm:$0x1] }
  0x68   : > { %5325 = vmatpush3.bf16.msra.mxu1 %v5986_v6  ;;  %v1909_v6 = vshrl.u32 %v6857_v42, 16  ;;  %v1528_v42 = vrot.slane %v1527_v53, 4  ;;  %v1552_v55 = vrot.slane %v1551_v52, 4  ;;  %v1575_v51 = vor.u32 %v1574_v35, %v6879_v31 }
  0x69   : > { %5455 = vmatmul.mubr.msk.bf16.gmra.mrb[12].mxu0 %vm445_vm1, %v6823_v62  ;;  %v1518_v62 = vrot.slane %v1517_v2, 4  ;;  %v1915_v56 = vshll.u32 %v6882_v0, 16  ;;  %v2148_v2 = vrot.slane %v2146_v23, 5  ;;  %v2152_v53 = vshll.u32 %v6890_v28, 16 }
  0x6a   : > { %5458 = vmatprep.mubr.msk.bf16.mxu0 %vm445_vm1, %v6827_v27  ;;  %v1911_v46 = vrot.slane %v1909_v6, 4  ;;  %v2156_v52 = vshrl.u32 %v6890_v28, 16  ;;  %v2474_v9 = vrot.slane %v6501_v29, 5  ;;  %v1533_v16 = vsel %vm6514_vm7, %v1528_v42, %v1532_v36  ;;  %v2389_v42 = vld [vmem:[%s6470_s8] sm:$0xe] }
  0x6b   : > { %5295 = vmatmul.mubr.msk.bf16.gmra.mrb[4].mxu1 %vm445_vm1, %v6531_v54  ;;  %v2143_v54 = vshrl.u32 %v1192_v10, 16  ;;  %v1523_v10 = vsel %vm6514_vm7, %v1518_v62, %v6848_v45  ;;  %v1547_v12 = vsel %vm6514_vm7, %v1542_v63, %v6854_v34  ;;  %v1557_v6 = vsel %vm6514_vm7, %v1552_v55, %v1556_v61  ;;  %v6925_v45 = vld [vmem:[%s6470_s8 + $0x4] sm:$0xf] }
  0x6c   : > { %5298 = vmatprep.mubr.msk.bf16.mxu1 %vm445_vm1, %v6563_v21  ;;  %v5989_v21 = vld [vmem:[%s8266_s1 + $0x88] ss:$0 sps:$4 sm:$0x33]   ;;  %v1912_v18 = vor.u32 %v1911_v46, %v6894_v49  ;;  %v1566_v35 = vrot.slane %v1565_v24, 4  ;;  %v1576_v29 = vrot.slane %v1575_v51, 4  ;;  %v1580_v62 = vrot.slane %v1578_v50, 5 }
  0x6d   : > { %v2145_v1 = vrot.slane %v2143_v54, 4  ;;  %5884 = vmatprep.subr.msk.bf16.mxu1 %vm494_vm0, %v5989_v21  ;;  %v1917_v34 = vrot.slane %v1915_v56, 5  ;;  %v6934_v54 = vrot.slane %v2152_v53, 5  ;;  %v2158_v36 = vrot.slane %v2156_v52, 4  ;;  %v2391_v50 = vld [vmem:[%s6470_s8 + $0x18] sm:$0xe] }
  0x6e   : > { %v1913_v61 = vrot.slane %v1912_v18, 4  ;;  %v2460_v46 = vrot.slane %v6925_v45, 5  ;;  %v2476_v23 = vrot.slane %v2474_v9, 4  ;;  %v6938_v63 = vcombine.low %v1523_v10, %v1533_v16  ;;  %v6946_v24 = vld [vmem:[%s6470_s8 + $0x8] sm:$0x1] }
  0x6f   : > { %v2149_v37 = vor.u32 %v2148_v2, %v2145_v1  ;;  %v1571_v55 = vsel %vm6514_vm7, %v1566_v35, %v6879_v31  ;;  %v6949_v51 = vld [vmem:[%s6470_s8 + $0x24] sm:$0xe]  ;;  %v2162_v1 = vshll.u32 %v6922_v32, 16  ;;  %v4929_v18 = vrot.slane %v2389_v42, 9  ;;  %v2397_v2 = vld [vmem:[%s6470_s8 + $0x60] sm:$0xe] }
  0x70   : > { %v6961_v31 = vld [vmem:[%s8266_s1 + $0x14] sm:$0xff]   ;;  %v1918_v53 = vsel %vm6514_vm7, %v1913_v61, %v1917_v34  ;;  %v2159_v10 = vor.u32 %v2158_v36, %v6934_v54  ;;  %v4931_v16 = vrot.slane %v2391_v50, 9  ;;  %v2477_v35 = vrot.slane %v6506_v33, 5 }
  0x71   : > { %5459 = vmatmul.mubr.msk.bf16.gmra.mrb[16].mxu0 %vm445_vm1, %v6859_v43  ;;  %v2150_v52 = vrot.slane %v2149_v37, 4  ;;  %v2164_v34 = vrot.slane %v2162_v1, 5  ;;  %v6982_v42 = vsel %vm6491_vm6, %v4929_v18, %v2460_v46  ;;  %v2399_v37 = vld [vmem:[%s6470_s8 + $0x78] sm:$0xe]  ;;  %v2519_v50 = vrot.slane %v6644_v3, 5 }
  0x72   : > { %5462 = vmatprep.mubr.msk.bf16.mxu0 %vm445_vm1, %v6896_v41  ;;  %v6992_v61 = vsel %vm6491_vm6, %v4931_v16, %v2474_v9  ;;  %v2481_v9 = vrot.slane %v6538_v58, 5  ;;  %v2523_v1 = vrot.slane %v6694_v57, 5  ;;  %v2526_v3 = vrot.slane %v6736_v39, 5 }
  0x73   : > { %5299 = vmatmul.mubr.msk.bf16.gmra.mrb[8].mxu1 %vm445_vm1, %v6568_v26  ;;  %v1903_v26 = vrot.slane %v1902_v15, 4  ;;  %v1581_v15 = vsel %vm6514_vm7, %v1576_v29, %v1580_v62  ;;  %v946_v29 = vsel %vm494_vm0, %v5989_v21, 0  ;;  %v2398_v62 = vld [vmem:[%s6470_s8 + $0x6c] sm:$0xe]  ;;  %v2155_v33 = vsel %vm6514_vm7, %v2150_v52, %v6934_v54 }
  0x74   : > { %5302 = vmatprep.mubr.msk.bf16.mxu1 %vm445_vm1, %v6597_v8  ;;  %v6940_v8 = vcombine.low %v1547_v12, %v1557_v6  ;;  %v2462_v12 = vrot.slane %v2460_v46, 4  ;;  %v2463_v6 = vrot.slane %v6946_v24, 5  ;;  %v2160_v21 = vrot.slane %v2159_v10, 4  ;;  %5327 = vmatpush3.bf16.msra.mxu1 %v946_v29 }
  0x75   : > { %v1908_v56 = vsel %vm6514_vm7, %v1903_v26, %v6894_v49  ;;  %v6967_v49 = vcombine.low %v1571_v55, %v1581_v15  ;;  %v2516_v46 = vrot.slane %v6635_v7, 5  ;;  %v4938_v55 = vrot.slane %v2398_v62, 9  ;;  %v2400_v15 = vld [vmem:[%s6470_s8 + $0x84] sm:$0xe]  ;;  %5360 = vmatprep.subr.bf16.mxu1 %v6961_v31 }
  0x76   : > { %v6976_v26 = vcombine.low %v1908_v56, %v1918_v53  ;;  %v6997_v36 = vsel %vm6491_vm6, %v2462_v12, %v2463_v6  ;;  %v7005_v54 = vsel %vm6491_vm6, %v2476_v23, %v2477_v35  ;;  %v2484_v56 = vrot.slane %v6541_v59, 5  ;;  %v2401_v6 = vld [vmem:[%s6470_s8 + $0x90] sm:$0xe]  ;;  %v5990_v59 = vld [vmem:[%s8266_s1 + $0x74] ss:$0 sps:$4 sm:$0x33]  }
  0x77   : > { %v2518_v18 = vrot.slane %v2516_v46, 4  ;;  %v2165_v53 = vsel %vm6514_vm7, %v2160_v21, %v2164_v34  ;;  %v2524_v23 = vsel %vm6491_vm6, %v4938_v55, %v2523_v1  ;;  %v2525_v52 = vrot.slane %v2523_v1, 4  ;;  %v2402_v34 = vld [vmem:[%s6470_s8 + $0x9c] sm:$0xe] }
  0x78   : > { %v2530_v10 = vrot.slane %v6711_v5, 5  ;;  %v4950_v57 = vcombine.low %v6982_v42, %v6997_v36  ;;  %v2533_v12 = vrot.slane %v6745_v48, 5  ;;  %v4940_v39 = vrot.slane %v2400_v15, 9 }
  0x79   : > { %5463 = vmatmul.mubr.msk.bf16.gmra.mrb[20].mxu0 %vm445_vm1, %v6938_v63  ;;  %v2520_v16 = vsel %vm6491_vm6, %v2518_v18, %v2519_v50  ;;  %v2527_v29 = vsel %vm6491_vm6, %v2525_v52, %v2526_v3  ;;  %v4909_v48 = vcombine.low %v2155_v33, %v2165_v53  ;;  %v2540_v21 = vrot.slane %v6767_v25, 5 }
  0x7a   : > { %5466 = vmatprep.mubr.msk.bf16.mxu0 %vm445_vm1, %v6940_v8  ;;  %v2532_v62 = vrot.slane %v2530_v10, 4  ;;  %v7037_v42 = vcombine.low %v2524_v23, %v2527_v29  ;;  %v2544_v36 = vrot.slane %v6759_v11, 5  ;;  %v2547_v33 = vrot.slane %v6788_v4, 5  ;;  %v2404_v11 = vld [vmem:[%s6470_s8 + $0xb4] sm:$0xe] }
  0x7b   : > { %5303 = vmatmul.mubr.msk.bf16.gmra.mrb[12].mxu1 %vm445_vm1, %v6604_v22  ;;  %v4932_v22 = vrot.slane %v6949_v51, 9  ;;  %v4942_v25 = vrot.slane %v2402_v34, 9  ;;  %v2554_v18 = vrot.slane %v6830_v38, 5  ;;  %v2561_v53 = vrot.slane %v6851_v47, 5  ;;  %v1141_v38 = vld [vmem:[%s6470_s8] sm:$0xf] }
  0x7c   : > { %5306 = vmatprep.mubr.msk.bf16.mxu1 %vm445_vm1, %v6638_v60  ;;  %v4937_v60 = vrot.slane %v2397_v2, 9  ;;  %v4939_v2 = vrot.slane %v2399_v37, 9  ;;  %v4941_v37 = vrot.slane %v2401_v6, 9  ;;  %v2546_v1 = vrot.slane %v2544_v36, 4  ;;  %v8323_v47 = vld [vmem:[#allocation14_spill] sm:$0xff] }
  0x7d   : > { %v6254_v6 = vld [vmem:[%s6470_s8 + $0x34] sm:$0xf] }
  0x7e   : > { %v2517_v7 = vsel %vm6491_vm6, %v4937_v60, %v2516_v46  ;;  %v2531_v5 = vsel %vm6491_vm6, %v4939_v2, %v2530_v10  ;;  %v2534_v60 = vsel %vm6491_vm6, %v2532_v62, %v2533_v12  ;;  %v2403_v46 = vld [vmem:[%s6470_s8 + $0xa8] sm:$0xe]  ;;  %v2545_v15 = vsel %vm6491_vm6, %v4941_v37, %v2544_v36  ;;  %v8324_v62 = vld [vmem:[#allocation21_spill] sm:$0xff] }
  0x7f   : > { %v7026_v35 = vcombine.low %v2517_v7, %v2520_v16  ;;  %v7048_v50 = vcombine.low %v2531_v5, %v2534_v60  ;;  %v2551_v7 = vrot.slane %v6804_v17, 5  ;;  %v4943_v3 = vrot.slane %v2403_v46, 9  ;;  %v2405_v46 = vld [vmem:[%s6470_s8 + $0xc0] sm:$0xe] }
  0x80   : > { %v2558_v2 = vrot.slane %v6812_v14, 5  ;;  %v2548_v52 = vsel %vm6491_vm6, %v2546_v1, %v2547_v33  ;;  %v4944_v14 = vrot.slane %v2404_v11, 9  ;;  %v2488_v29 = vrot.slane %v6254_v6, 5 }
  0x81   : > { %5467 = vmatmul.mubr.msk.bf16.gmra.mrb[24].mxu0 %vm445_vm1, %v6967_v49  ;;  %v2552_v17 = vsel %vm6491_vm6, %v4942_v25, %v2551_v7  ;;  %v2553_v10 = vrot.slane %v2551_v7, 4  ;;  %v7068_v16 = vcombine.low %v2545_v15, %v2548_v52  ;;  %v2565_v34 = vrot.slane %v8324_v62, 5  ;;  %v8327_v62 = vld [vmem:[#allocation17_spill] sm:$0xff] }
  0x82   : > { %5470 = vmatprep.mubr.msk.bf16.mxu0 %vm445_vm1, %v6976_v26  ;;  %v2559_v12 = vsel %vm6491_vm6, %v4943_v3, %v2558_v2  ;;  %v1199_v36 = vshrl.u32 %v1141_v38, 16  ;;  %v1202_v33 = vshll.u32 %v1141_v38, 16  ;;  %v1208_v25 = vshll.u32 %v6925_v45, 16 }
  0x83   : > { %5307 = vmatmul.mubr.msk.bf16.gmra.mrb[16].mxu1 %vm445_vm1, %v6654_v13  ;;  %v2537_v13 = vrot.slane %v6726_v30, 5  ;;  %v2555_v5 = vsel %vm6491_vm6, %v2553_v10, %v2554_v18  ;;  %v1212_v7 = vshrl.u32 %v6925_v45, 16  ;;  %v1218_v18 = vshll.u32 %v6946_v24, 16  ;;  %v6255_v45 = vld [vmem:[%s6470_s8 + $0x38] sm:$0x1]  ;;  %v8326_v24 = vld [vmem:[#allocation22_spill] sm:$0xff] }
  0x84   : > { %5310 = vmatprep.mubr.msk.bf16.mxu1 %vm445_vm1, %v6672_v44  ;;  %v7082_v60 = vcombine.low %v2552_v17, %v2555_v5  ;;  %v1201_v15 = vrot.slane %v1199_v36, 4  ;;  %v1204_v1 = vrot.slane %v1202_v33, 5  ;;  %v7098_v11 = vcombine.low %v6992_v61, %v7005_v54  ;;  %v8329_v36 = vld [vmem:[#allocation18_spill] sm:$0xff] }
  0x85   : > { %v2538_v30 = vsel %vm6491_vm6, %v4940_v39, %v2537_v13  ;;  %v2539_v55 = vrot.slane %v2537_v13, 4  ;;  %v2560_v39 = vrot.slane %v2558_v2, 4  ;;  %v2568_v13 = vrot.slane %v6874_v20, 5 }
  0x86   : > { %v2566_v20 = vsel %vm6491_vm6, %v4944_v14, %v2565_v34  ;;  %v4985_v3 = vrot.slane %v2405_v46, 9  ;;  %v1205_v52 = vor.u32 %v1204_v1, %v1201_v15  ;;  %v1214_v17 = vrot.slane %v1212_v7, 4  ;;  %v6257_v15 = vld [vmem:[%s6470_s8 + $0x4c] sm:$0xf]  ;;  %v7152_v7 = vld [vmem:[%s6470_s8 + $0xc0] sm:$0xff]  }
  0x87   : > { %v2541_v4 = vsel %vm6491_vm6, %v2539_v55, %v2540_v21  ;;  %v8325_v21 = vld [vmem:[#allocation16_spill] sm:$0xff]  ;;  %v2562_v37 = vsel %vm6491_vm6, %v2560_v39, %v2561_v53  ;;  %v2483_v10 = vrot.slane %v2481_v9, 4  ;;  %v2491_v38 = vrot.slane %v6255_v45, 5  ;;  %v5988_v39 = vld [vmem:[%s8266_s1 + $0x6c] sm:$0xff]  }
  0x88   : > { %v7061_v23 = vcombine.low %v2538_v30, %v2541_v4  ;;  %v2393_v30 = vld [vmem:[%s6470_s8 + $0x30] sm:$0xe]  ;;  %v7089_v55 = vcombine.low %v2559_v12, %v2562_v37  ;;  %v1210_v4 = vrot.slane %v1208_v25, 5  ;;  %v2888_v12 = vrot.slane %v8326_v24, 5  ;;  %v8328_v37 = vld [vmem:[#allocation6_spill] sm:$0xff] }
  0x89   : > { %5471 = vmatmul.mubr.msk.bf16.gmra.mrb[28].mxu0 %vm445_vm1, %v4909_v48  ;;  %v2567_v48 = vrot.slane %v2565_v34, 4  ;;  %v4933_v2 = vrot.slane %v2393_v30, 9  ;;  %v2891_v61 = vrot.slane %v6882_v0, 5  ;;  %v2490_v54 = vrot.slane %v2488_v29, 4  ;;  %v8330_v30 = vld [vmem:[#allocation19_spill] sm:$0xff] }
  0x8a   : > { %5480 = vmatprep.mubr.msk.bf16.mxu0 %vm445_vm1, %v4950_v57  ;;  %v1206_v14 = vrot.slane %v1205_v52, 4  ;;  %v1215_v6 = vor.u32 %v1214_v17, %v1210_v4  ;;  %v1220_v5 = vrot.slane %v1218_v18, 5  ;;  %v2889_v34 = vsel %vm6491_vm6, %v4985_v3, %v2888_v12  ;;  %v2394_v25 = vld [vmem:[%s6470_s8 + $0x3c] sm:$0xe]  ;;  %v2395_v18 = vld [vmem:[%s6470_s8 + $0x48] sm:$0xe] }
  0x8b   : > { %5311 = vmatmul.mubr.msk.bf16.gmra.mrb[20].mxu1 %vm445_vm1, %v8323_v47  ;;  %v2569_v57 = vsel %vm6491_vm6, %v2567_v48, %v2568_v13  ;;  %v2890_v13 = vrot.slane %v2888_v12, 4  ;;  %v2482_v0 = vsel %vm6491_vm6, %v4932_v22, %v2481_v9  ;;  %v2485_v58 = vsel %vm6491_vm6, %v2483_v10, %v2484_v56  ;;  %v6256_v22 = vld [vmem:[%s6470_s8 + $0x40] sm:$0xf]  ;;  %v6258_v17 = vld [vmem:[%s6470_s8 + $0x44] sm:$0x1] }
  0x8c   : > { %5314 = vmatprep.mubr.msk.bf16.mxu1 %vm445_vm1, %v8325_v21  ;;  %v7102_v53 = vcombine.low %v2566_v20, %v2569_v57  ;;  %v1211_v33 = vsel %vm6514_vm7, %v1206_v14, %v1210_v4  ;;  %v1216_v46 = vrot.slane %v1215_v6, 4  ;;  %v2489_v51 = vsel %vm6491_vm6, %v4933_v2, %v2488_v29  ;;  %v6261_v6 = vld [vmem:[%s6470_s8 + $0x58] sm:$0xf] }
  0x8d   : > { %v2495_v9 = vrot.slane %v6256_v22, 5  ;;  %v2892_v20 = vsel %vm6491_vm6, %v2890_v13, %v2891_v61  ;;  %v2492_v48 = vsel %vm6491_vm6, %v2490_v54, %v2491_v38  ;;  %v2502_v1 = vrot.slane %v6257_v15, 5  ;;  %v6259_v38 = vld [vmem:[%s6470_s8 + $0x50] sm:$0x1]  ;;  %v7168_v61 = vld [vmem:[%s8266_s1 + $0xa0] sm:$0xff]   ;;  %v6260_v54 = vld [vmem:[%s6470_s8 + $0x18] sm:$0xff]  }
  0x8e   : > { %v1221_v56 = vsel %vm6514_vm7, %v1216_v46, %v1220_v5  ;;  %v7149_v29 = vcombine.low %v2889_v34, %v2892_v20  ;;  %v7157_v4 = vcombine.low %v2482_v0, %v2485_v58  ;;  %v7159_v3 = vcombine.low %v2489_v51, %v2492_v48  ;;  %v2396_v0 = vld [vmem:[%s6470_s8 + $0x54] sm:$0xe]  ;;  %v6262_v51 = vld [vmem:[%s6470_s8 + $0x5c] sm:$0x1]  ;;  %v6263_v20 = vld [vmem:[%s6470_s8 + $0x24] sm:$0xff]  }
  0x8f   : > { %v7155_v57 = vcombine.low %v1211_v33, %v1221_v56  ;;  %v4934_v2 = vrot.slane %v2394_v25, 9  ;;  %v2497_v52 = vrot.slane %v2495_v9, 4  ;;  %v2498_v10 = vrot.slane %v6258_v17, 5  ;;  %v6264_v48 = vld [vmem:[%s6470_s8 + $0x30] sm:$0xff]   ;;  %v6269_v17 = vld [vmem:[%s6470_s8 + $0x60] sm:$0xff]  }
  0x90   : > { %v4935_v40 = vrot.slane %v2395_v18, 9  ;;  %v2504_v45 = vrot.slane %v2502_v1, 4  ;;  %v2505_v24 = vrot.slane %v6259_v38, 5  ;;  %v2921_v12 = vsel %vm494_vm0, %v5990_v59, 0  ;;  %v6265_v18 = vld [vmem:[%s6470_s8 + $0x3c] sm:$0xff]  }
  0x91   : > { %5481 = vmatmul.mubr.msk.bf16.vlgmr.msra.gmra.mrb[0].mxu0 %vm445_vm1, %v8328_v37  ;;  %v2499_v14 = vsel %vm6491_vm6, %v2497_v52, %v2498_v10  ;;  %v2509_v5 = vrot.slane %v6261_v6, 5  ;;  %v2512_v22 = vrot.slane %v6262_v51, 5  ;;  %v6268_v52 = vld [vmem:[%s6470_s8 + $0x54] sm:$0xff]   ;;  %v6270_v10 = vld [vmem:[%s6470_s8 + $0x6c] sm:$0xff]   ;;  %v3577_v38 = vld [vmem:[%s7275_s13 + $0x20] sm:$0xff] }
  0x92   : > { %5513 = vmatpush3.bf16.msra.mxu0 %v8330_v30  ;;  %5484 = vmatprep.mubr.msk.bf16.mxu0 %vm445_vm1, %v7098_v11  ;;  %v2503_v34 = vsel %vm6491_vm6, %v4935_v40, %v2502_v1  ;;  %v2506_v13 = vsel %vm6491_vm6, %v2504_v45, %v2505_v24  ;;  %v4936_v30 = vrot.slane %v2396_v0, 9  ;;  %v5996_v1 = vld [vmem:[%s8266_s1 + $0x24] ss:$0 sps:$4 sm:$0x33]   ;;  %v6271_v40 = vld [vmem:[%s6470_s8 + $0x78] sm:$0xff]   ;;  %v3578_v24 = vld [vmem:[%s7275_s13 + $0x28] sm:$0xff] }
  0x93   : > { %5315 = vmatmul.mubr.msk.bf16.gmra.mrb[24].mxu1 %vm445_vm1, %v8327_v62  ;;  %5514 = vmatprep.subr.bf16.mxu0 %v5988_v39  ;;  %v7191_v46 = vcombine.low %v2503_v34, %v2506_v13  ;;  %v2511_v58 = vrot.slane %v2509_v5, 4  ;;  %v1700_v56 = vsel %vm494_vm0, %v5996_v1, 0  ;;  %v6272_v6 = vld [vmem:[%s8266_s1 + $0x58] sm:$0xff]   ;;  %v6273_v13 = vld [vmem:[%s8266_s1 + $0x60] ss:$0 sps:$4 sm:$0x33]  }
  0x94   : > { %5318 = vmatprep.mubr.msk.bf16.mxu1 %vm445_vm1, %v8329_v36  ;;  %v2510_v25 = vsel %vm6491_vm6, %v4936_v30, %v2509_v5  ;;  %v3583_v5 = vld [vmem:[%s7275_s13 + $0x50] sm:$0xff]  ;;  %v3584_v34 = vld [vmem:[%s7275_s13 + $0x58] sm:$0xff]  ;;  %v8333_v0 = vld [vmem:[#allocation9_spill] sm:$0xff] }
  0x95   : > { %v2513_v15 = vsel %vm6491_vm6, %v2511_v58, %v2512_v22  ;;  %v3585_v30 = vld [vmem:[%s7275_s13 + $0x60] sm:$0xff]  ;;  %v8334_v58 = vld [vmem:[#allocation10_spill] sm:$0xff] }
  0x96   : > { %5515 = vmatpush3.bf16.msra.mxu0 %v5988_v39  ;;  %v2496_v39 = vsel %vm6491_vm6, %v4934_v2, %v2495_v9  ;;  %v5993_v9 = vld [vmem:[%s8266_s1 + $0x1c] sm:$0xff]   ;;  %v7228_v2 = vld [vmem:[%s8266_s1 + $0x50] sm:$0xff]   ;;  %v3586_v51 = vld [vmem:[%s7275_s13 + $0x68] sm:$0xff] }
  0x97   : > { %5890 = vmatprep.subr.msk.bf16.mxu0 %vm494_vm0, %v5990_v59  ;;  %v7189_v33 = vcombine.low %v2496_v39, %v2499_v14  ;;  %v7213_v59 = vcombine.low %v2510_v25, %v2513_v15  ;;  %v8332_v39 = vld [vmem:[#allocation8_spill] sm:$0xff]  ;;  %v3582_v14 = vld [vmem:[%s7275_s13 + $0x48] sm:$0xff]  ;;  %v8335_v22 = vld [vmem:[#allocation5_spill] sm:$0xff] }
  0x98   : > { %v3589_v25 = vld [vmem:[%s7275_s13 + $0x80] sm:$0xff]  ;;  %v8337_v15 = vld [vmem:[#allocation12_spill] sm:$0xff] }
  0x99   : > { %5485 = vmatmul.mubr.msk.bf16.gmra.mrb[4].mxu0 %vm445_vm1, %v7157_v4 }
  0x9a   : > { %5488 = vmatprep.mubr.msk.bf16.mxu0 %vm445_vm1, %v7159_v3  ;;  %5517 = vmatpush3.bf16.msra.mxu0 %v2921_v12  ;;  %v3579_v12 = vld [vmem:[%s7275_s13 + $0x30] sm:$0xff] }
  0x9b   : > { %5319 = vmatmul.mubr.msk.bf16.gmra.mrb[28].mxu1 %vm445_vm1, %v7152_v7  ;;  %5550 = vmatprep.subr.bf16.mxu0 %v7168_v61 }
  0x9c   : > { %5328 = vmatprep.mubr.msk.bf16.mxu1 %vm445_vm1, %v6260_v54  ;;  %v8331_v54 = vld [vmem:[#allocation7_spill] sm:$0xff] }
  0xa1   : > { %5489 = vmatmul.mubr.msk.bf16.gmra.mrb[8].mxu0 %vm445_vm1, %v7189_v33 }
  0xa2   : > { %5492 = vmatprep.mubr.msk.bf16.mxu0 %vm445_vm1, %v7191_v46 }
  0xa3   : > { %5329 = vmatmul.mubr.msk.bf16.vlgmr.msra.gmra.mrb[0].mxu1 %vm445_vm1, %v6263_v20  ;;  %v3588_v20 = vld [vmem:[%s7275_s13 + $0x78] sm:$0xff] }
  0xa4   : > { %5332 = vmatprep.mubr.msk.bf16.mxu1 %vm445_vm1, %v6264_v48  ;;  %5361 = vmatpush3.bf16.msra.mxu1 %v6961_v31  ;;  %v6266_v31 = vld [vmem:[%s6470_s8 + $0x48] sm:$0xff]   ;;  %v8336_v48 = vld [vmem:[#allocation11_spill] sm:$0xff] }
  0xa5   : > { %5362 = vmatprep.subr.bf16.mxu1 %v5993_v9 }
  0xa8   : > { %5363 = vmatpush3.bf16.msra.mxu1 %v5993_v9  ;;  %v3587_v9 = vld [vmem:[%s7275_s13 + $0x70] sm:$0xff] }
  0xa9   : > { %5885 = vmatprep.subr.msk.bf16.mxu1 %vm494_vm0, %v5996_v1  ;;  %5493 = vmatmul.mubr.msk.bf16.gmra.mrb[12].mxu0 %vm445_vm1, %v7213_v59  ;;  %v3590_v1 = vld [vmem:[%s7275_s13 + $0x88] sm:$0xff] }
  0xaa   : > { %5496 = vmatprep.mubr.msk.bf16.mxu0 %vm445_vm1, %v7026_v35 }
  0xab   : > { %5333 = vmatmul.mubr.msk.bf16.gmra.mrb[4].mxu1 %vm445_vm1, %v6265_v18  ;;  %v3592_v18 = vld [vmem:[%s7275_s13 + $0x98] sm:$0xff] }
  0xac   : > { %5336 = vmatprep.mubr.msk.bf16.mxu1 %vm445_vm1, %v6266_v31  ;;  %5365 = vmatpush3.bf16.msra.mxu1 %v1700_v56  ;;  %v3591_v56 = vld [vmem:[%s7275_s13 + $0x90] sm:$0xff]  ;;  %v8338_v31 = vld [vmem:[#allocation13_spill] sm:$0xff] }
  0xad   : > { %5588 = vmatprep.subr.bf16.mxu1 %v7228_v2 }
  0xb1   : > { %5497 = vmatmul.mubr.msk.bf16.gmra.mrb[16].mxu0 %vm445_vm1, %v7037_v42 }
  0xb2   : > { %5500 = vmatprep.mubr.msk.bf16.mxu0 %vm445_vm1, %v7048_v50 }
  0xb3   : > { %5337 = vmatmul.mubr.msk.bf16.gmra.mrb[8].mxu1 %vm445_vm1, %v6268_v52  ;;  %v8339_v52 = vld [vmem:[#allocation15_spill] sm:$0xff] }
  0xb4   : > { %5340 = vmatprep.mubr.msk.bf16.mxu1 %vm445_vm1, %v6269_v17  ;;  %v3594_v17 = vld [vmem:[%s7275_s13 + $0xa8] sm:$0xff] }
  0xb9   : > { %5501 = vmatmul.mubr.msk.bf16.gmra.mrb[20].mxu0 %vm445_vm1, %v7061_v23 }
  0xba   : > { %5504 = vmatprep.mubr.msk.bf16.mxu0 %vm445_vm1, %v7068_v16 }
  0xbb   : > { %5341 = vmatmul.mubr.msk.bf16.gmra.mrb[12].mxu1 %vm445_vm1, %v6270_v10  ;;  %v3595_v10 = vld [vmem:[%s7275_s13 + $0xb0] sm:$0xff] }
  0xbc   : > { %5344 = vmatprep.mubr.msk.bf16.mxu1 %vm445_vm1, %v6271_v40  ;;  %v3596_v40 = vld [vmem:[%s7275_s13 + $0xb8] sm:$0xff] }
  0xc1   : > { %5505 = vmatmul.mubr.msk.bf16.gmra.mrb[24].mxu0 %vm445_vm1, %v7082_v60 }
  0xc2   : > { %5508 = vmatprep.mubr.msk.bf16.mxu0 %vm445_vm1, %v7089_v55 }
  0xc3   : > { %5345 = vmatmul.mubr.msk.bf16.gmra.mrb[16].mxu1 %vm445_vm1, %v6672_v44  ;;  %v5995_v44 = vld [vmem:[%s8266_s1 + $0xa8] sm:$0xff]  }
  0xc4   : > { %5348 = vmatprep.mubr.msk.bf16.mxu1 %vm445_vm1, %v8323_v47  ;;  %v3573_v47 = vld [vmem:[%s7275_s13] sm:$0xff] }
  0xc5   : > { %3637 = vrot.lane.b32.xlu0 %v3573_v47, %s6354_s16  ;;  %v3597_v47 = vld [vmem:[%s7275_s13 + $0xc0] sm:$0xff] }
  0xc9   : > { %5509 = vmatmul.mubr.msk.bf16.gmra.mrb[28].mxu0 %vm445_vm1, %v7102_v53 }
  0xca   : > { %5518 = vmatprep.mubr.msk.bf16.mxu0 %vm445_vm1, %v8328_v37  ;;  %v5994_v37 = vld [vmem:[%s6470_s8 + $0xcc] sm:$0xff]  }
  0xcb   : > { %5349 = vmatmul.mubr.msk.bf16.gmra.mrb[20].mxu1 %vm445_vm1, %v8325_v21  ;;  %v3575_v21 = vld [vmem:[%s7275_s13 + $0x10] sm:$0xff] }
  0xcc   : > { %5352 = vmatprep.mubr.msk.bf16.mxu1 %vm445_vm1, %v8327_v62  ;;  %v5997_v62 = vld [vmem:[%s8266_s1 + $0xb0] ss:$0 sps:$4 sm:$0x33]   ;;  %3641 = vrot.lane.b32.xlu1 %v3575_v21, %s6354_s16  ;;  %v3598_v21 = vld [vmem:[%s7275_s13 + $0xc8] sm:$0xff] }
  0xcd   : > { %v3154_v45 = vsel %vm494_vm0, %v5997_v62, 0 }
  0xd1   : > { %5519 = vmatmul.mubr.msk.bf16.vlgmr.msra.gmra.mrb[0].mxu0 %vm445_vm1, %v7098_v11 }
  0xd2   : > { %5551 = vmatpush3.bf16.msra.mxu0 %v7168_v61  ;;  %5522 = vmatprep.mubr.msk.bf16.mxu0 %vm445_vm1, %v7157_v4  ;;  %v3580_v61 = vld [vmem:[%s7275_s13 + $0x38] sm:$0xff] }
  0xd3   : > { %5353 = vmatmul.mubr.msk.bf16.gmra.mrb[24].mxu1 %vm445_vm1, %v8329_v36  ;;  %5552 = vmatprep.subr.bf16.mxu0 %v5995_v44  ;;  %v3574_v36 = vld [vmem:[%s7275_s13 + $0x8] sm:$0xff] }
  0xd4   : > { %5356 = vmatprep.mubr.msk.bf16.mxu1 %vm445_vm1, %v7152_v7  ;;  %v3576_v7 = vld [vmem:[%s7275_s13 + $0x18] sm:$0xff]  ;;  %3639 = vrot.lane.b32.xlu0 %v3574_v36, %s6354_s16 }
  0xd5   : > { %3643 = vrot.lane.b32.xlu1 %v3576_v7, %s6354_s16 }
  0xd6   : > { %5553 = vmatpush3.bf16.msra.mxu0 %v5995_v44  ;;  %v8340_v44 = vld [vmem:[#allocation20_spill] sm:$0xff] }
  0xd7   : > { %5891 = vmatprep.subr.msk.bf16.mxu0 %vm494_vm0, %v5997_v62  ;;  %v3599_v62 = vld [vmem:[%s7275_s13 + $0xd0] sm:$0xff] }
  0xd8   : > { %3645 = vrot.lane.b32.xlu0 %v3577_v38, %s6354_s16  ;;  %v7487_v38 = vld [vmem:[%s8267_s2] ss:$0 sm:$0xff] }
  0xd9   : > { %5523 = vmatmul.mubr.msk.bf16.gmra.mrb[4].mxu0 %vm445_vm1, %v7159_v3  ;;  %3647 = vrot.lane.b32.xlu1 %v3578_v24, %s6354_s16 }
  0xda   : > { %5526 = vmatprep.mubr.msk.bf16.mxu0 %vm445_vm1, %v7189_v33  ;;  %5555 = vmatpush3.bf16.msra.mxu0 %v3154_v45 }
  0xdb   : > { %5357 = vmatmul.mubr.msk.bf16.gmra.mrb[28].mxu1 %vm445_vm1, %v5994_v37 }
  0xdc   : > { %5366 = vmatprep.mubr.msk.bf16.mxu1 %vm445_vm1, %v7155_v57  ;;  %3649 = vrot.lane.b32.xlu0 %v3579_v12, %s6354_s16  ;;  %v3581_v57 = vld [vmem:[%s7275_s13 + $0x40] sm:$0xff] }
  0xdd   : > { %3651 = vrot.lane.b32.xlu1 %v3580_v61, %s6354_s16 }
  0xe0   : > { %3653 = vrot.lane.b32.xlu0 %v3581_v57, %s6354_s16 }
  0xe1   : > { %5527 = vmatmul.mubr.msk.bf16.gmra.mrb[8].mxu0 %vm445_vm1, %v7191_v46  ;;  %3655 = vrot.lane.b32.xlu1 %v3582_v14, %s6354_s16 }
  0xe2   : > { %5530 = vmatprep.mubr.msk.bf16.mxu0 %vm445_vm1, %v7213_v59 }
  0xe3   : > { %5367 = vmatmul.mubr.msk.bf16.vlgmr.msra.gmra.mrb[0].mxu1 %vm445_vm1, %v8331_v54 }
  0xe4   : > { %5370 = vmatprep.mubr.msk.bf16.mxu1 %vm445_vm1, %v8332_v39  ;;  %5591 = vmatpush3.bf16.msra.mxu1 %v7228_v2  ;;  %v3593_v2 = vld [vmem:[%s7275_s13 + $0xa0] sm:$0xff] }
  0xe5   : > { %5589 = vmatprep.subr.bf16.mxu1 %v6272_v6  ;;  %3657 = vrot.lane.b32.xlu0 %v3583_v5, %s6354_s16 }
  0xe6   : > { %3659 = vrot.lane.b32.xlu1 %v3584_v34, %s6354_s16 }
  0xe8   : > { %5592 = vmatpush3.bf16.msra.mxu1 %v6272_v6 }
  0xe9   : > { %5887 = vmatprep.subr.msk.bf16.mxu1 %vm494_vm0, %v6273_v13  ;;  %5531 = vmatmul.mubr.msk.bf16.gmra.mrb[12].mxu0 %vm445_vm1, %v7026_v35 }
  0xea   : > { %5534 = vmatprep.mubr.msk.bf16.mxu0 %vm445_vm1, %v7037_v42  ;;  %3661 = vrot.lane.b32.xlu0 %v3585_v30, %s6354_s16 }
  0xeb   : > { %5371 = vmatmul.mubr.msk.bf16.gmra.mrb[4].mxu1 %vm445_vm1, %v8333_v0  ;;  %3663 = vrot.lane.b32.xlu1 %v3586_v51, %s6354_s16 }
  0xec   : > { %5374 = vmatprep.mubr.msk.bf16.mxu1 %vm445_vm1, %v8334_v58  ;;  %5593 = vmatpush3.bf16.msra.mxu1 %v8335_v22 }
  0xee   : > { %3665 = vrot.lane.b32.xlu0 %v3587_v9, %s6354_s16 }
  0xef   : > { %3667 = vrot.lane.b32.xlu1 %v3588_v20, %s6354_s16 }
  0xf1   : > { %5535 = vmatmul.mubr.msk.bf16.gmra.mrb[16].mxu0 %vm445_vm1, %v7048_v50 }
  0xf2   : > { %5538 = vmatprep.mubr.msk.bf16.mxu0 %vm445_vm1, %v7061_v23  ;;  %3669 = vrot.lane.b32.xlu0 %v3589_v25, %s6354_s16 }
  0xf3   : > { %5375 = vmatmul.mubr.msk.bf16.gmra.mrb[8].mxu1 %vm445_vm1, %v8336_v48  ;;  %3671 = vrot.lane.b32.xlu1 %v3590_v1, %s6354_s16 }
  0xf4   : > { %5378 = vmatprep.mubr.msk.bf16.mxu1 %vm445_vm1, %v8337_v15 }
  0xf6   : > { %3673 = vrot.lane.b32.xlu0 %v3591_v56, %s6354_s16 }
  0xf7   : > { %3675 = vrot.lane.b32.xlu1 %v3592_v18, %s6354_s16 }
  0xf9   : > { %5539 = vmatmul.mubr.msk.bf16.gmra.mrb[20].mxu0 %vm445_vm1, %v7068_v16 }
  0xfa   : > { %5542 = vmatprep.mubr.msk.bf16.mxu0 %vm445_vm1, %v7082_v60  ;;  %3677 = vrot.lane.b32.xlu0 %v3593_v2, %s6354_s16 }
  0xfb   : > { %5379 = vmatmul.mubr.msk.bf16.gmra.mrb[12].mxu1 %vm445_vm1, %v8338_v31  ;;  %3679 = vrot.lane.b32.xlu1 %v3594_v17, %s6354_s16 }
  0xfc   : > { %5382 = vmatprep.mubr.msk.bf16.mxu1 %vm445_vm1, %v8339_v52 }
  0xfe   : > { %3681 = vrot.lane.b32.xlu0 %v3595_v10, %s6354_s16 }
  0xff   : > { %3683 = vrot.lane.b32.xlu1 %v3596_v40, %s6354_s16 }
 0x101   : > { %5543 = vmatmul.mubr.msk.bf16.gmra.mrb[24].mxu0 %vm445_vm1, %v7089_v55 }
 0x102   : > { %5546 = vmatprep.mubr.msk.bf16.mxu0 %vm445_vm1, %v7102_v53  ;;  %3685 = vrot.lane.b32.xlu0 %v3597_v47, %s6354_s16 }
 0x103   : > { %5383 = vmatmul.mubr.msk.bf16.gmra.mrb[16].mxu1 %vm445_vm1, %v8340_v44  ;;  %3687 = vrot.lane.b32.xlu1 %v3598_v21, %s6354_s16 }
 0x104   : > { %5386 = vmatprep.mubr.msk.bf16.mxu1 %vm445_vm1, %v6827_v27 }
 0x106   : > { %3689 = vrot.lane.b32.xlu0 %v3599_v62, %s6354_s16 }
 0x109   : > { %5547 = vmatmul.mubr.msk.bf16.gmra.mrb[28].mxu0 %vm445_vm1, %v7149_v29 }
 0x10a   : > { %5556 = vmatprep.mubr.msk.bf16.mxu0 %vm445_vm1, %v7098_v11 }
 0x10b   : > { %5387 = vmatmul.mubr.msk.bf16.gmra.mrb[20].mxu1 %vm445_vm1, %v6859_v43 }
 0x10c   : > { %5390 = vmatprep.mubr.msk.bf16.mxu1 %vm445_vm1, %v6896_v41 }
 0x111   : > { %5557 = vmatmul.mubr.msk.bf16.vlgmr.msra.gmra.mrb[0].mxu0 %vm445_vm1, %v7157_v4 }
 0x112   : > { %5560 = vmatprep.mubr.msk.bf16.mxu0 %vm445_vm1, %v7159_v3 }
 0x113   : > { %5391 = vmatmul.mubr.msk.bf16.gmra.mrb[24].mxu1 %vm445_vm1, %v6938_v63 }
 0x114   : > { %5394 = vmatprep.mubr.msk.bf16.mxu1 %vm445_vm1, %v6940_v8 }
 0x119   : > { %5561 = vmatmul.mubr.msk.bf16.gmra.mrb[4].mxu0 %vm445_vm1, %v7189_v33 }
 0x11a   : > { %5564 = vmatprep.mubr.msk.bf16.mxu0 %vm445_vm1, %v7191_v46 }
 0x11b   : > { %5395 = vmatmul.mubr.msk.bf16.gmra.mrb[28].mxu1 %vm445_vm1, %v6967_v49 }
 0x11c   : > { %5420 = vmatprep.mubr.msk.bf16.mxu1 %vm445_vm1, %v8340_v44 }
 0x121   : > { %5565 = vmatmul.mubr.msk.bf16.gmra.mrb[8].mxu0 %vm445_vm1, %v7213_v59 }
 0x122   : > { %5568 = vmatprep.mubr.msk.bf16.mxu0 %vm445_vm1, %v7026_v35  ;;  %v3604_v35 = vld [vmem:[%s7275_s13 + $0xf8] sm:$0xff] }
 0x123   : > { %5421 = vmatmul.mubr.msk.bf16.vlgmr.msra.gmra.mrb[16].mxu1 %vm445_vm1, %v6827_v27  ;;  %v3600_v27 = vld [vmem:[%s7275_s13 + $0xd8] sm:$0xff] }
 0x124   : > { %5424 = vmatprep.mubr.msk.bf16.mxu1 %vm445_vm1, %v6859_v43  ;;  %3691 = vrot.lane.b32.xlu1 %v3600_v27, %s6354_s16  ;;  %v3601_v43 = vld [vmem:[%s7275_s13 + $0xe0] sm:$0xff] }
 0x125   : > { %3693 = vrot.lane.b32.xlu0 %v3601_v43, %s6354_s16 }
 0x129   : > { %5569 = vmatmul.mubr.msk.bf16.gmra.mrb[12].mxu0 %vm445_vm1, %v7037_v42 }
 0x12a   : > { %5572 = vmatprep.mubr.msk.bf16.mxu0 %vm445_vm1, %v7048_v50 }
 0x12b   : > { %5425 = vmatmul.mubr.msk.bf16.gmra.mrb[20].mxu1 %vm445_vm1, %v6896_v41  ;;  %v3602_v41 = vld [vmem:[%s7275_s13 + $0xe8] sm:$0xff] }
 0x12c   : > { %5428 = vmatprep.mubr.msk.bf16.mxu1 %vm445_vm1, %v6938_v63  ;;  %v3603_v63 = vld [vmem:[%s7275_s13 + $0xf0] sm:$0xff]  ;;  %3695 = vrot.lane.b32.xlu1 %v3602_v41, %s6354_s16  ;;  %s8000_s13 = scalar_lea.vmem %s8270_s5, %s4750_s7  ;;  %s263_s7 = sand.u32 1, %s6336_s19  }
 0x12d   : > { %3697 = vrot.lane.b32.xlu0 %v3603_v63, %s6354_s16  ;;  %s4747_s14 = sshll.u32 %s263_s7, 8 }
 0x12e   : > { %s8140_s15 = scalar_lea.vmem [#allocation2], %s4747_s14 }
 0x12f   : > { %s4619_s17 = sshll.u32 %s8140_s15, 4  ;;  %s8213_s17 = int_to_ptr.vmem [resolvable:$true] %s4619_s17 }
 0x130   : > { %3699 = vrot.lane.b32.xlu1 %v3604_v35, %s6354_s16 }
 0x131   : > { %5573 = vmatmul.mubr.msk.bf16.gmra.mrb[16].mxu0 %vm445_vm1, %v7061_v23 }
 0x132   : > { %5576 = vmatprep.mubr.msk.bf16.mxu0 %vm445_vm1, %v7068_v16 }
 0x133   : > { %5429 = vmatmul.mubr.msk.bf16.gmra.mrb[24].mxu1 %vm445_vm1, %v6940_v8  ;;  %v3121_v8 = vrot.slane %v6890_v28, 5 }
 0x134   : > { %5432 = vmatprep.mubr.msk.bf16.mxu1 %vm445_vm1, %v6967_v49  ;;  %v2406_v49 = vld [vmem:[%s6470_s8 + $0xcc] sm:$0xe]  ;;  %s8219_s8 = scalar_lea.sflag [#allocation3], %s263_s7 }
 0x135   : > { %v5011_v42 = vrot.slane %v2406_v49, 9  ;;  %v3123_v50 = vrot.slane %v3121_v8, 4 }
 0x137   : > { %v3122_v23 = vsel %vm6491_vm6, %v5011_v42, %v3121_v8 }
 0x139   : > { %5577 = vmatmul.mubr.msk.bf16.gmra.mrb[20].mxu0 %vm445_vm1, %v7082_v60 }
 0x13a   : > { %5580 = vmatprep.mubr.msk.bf16.mxu0 %vm445_vm1, %v7089_v55 }
 0x13b   : > { %5433 = vmatmul.mubr.msk.bf16.gmra.mrb[28].mxu1 %vm445_vm1, %v6976_v26  ;;  %v3124_v26 = vrot.slane %v6922_v32, 5 }
 0x13d   : > { %v3125_v28 = vsel %vm6491_vm6, %v3123_v50, %v3124_v26 }
 0x13e   : > { %v5017_v16 = vcombine.low %v3122_v23, %v3125_v28 }
 0x141   : > { %5581 = vmatmul.mubr.msk.bf16.gmra.mrb[24].mxu0 %vm445_vm1, %v7102_v53 }
 0x142   : > { %5584 = vmatprep.mubr.msk.bf16.mxu0 %vm445_vm1, %v7149_v29 }
 0x149   : > { %5585 = vmatmul.mubr.msk.bf16.gmra.mrb[28].mxu0 %vm445_vm1, %v5017_v16 }
 0x1b6   : > { %v5368_v60 = vpop.f32.mrb[0].mxu1 }
 0x1b7   : > { %v1736_v55 = vpop.f32.mrb[1].mxu1  ;;  %v5594_v24 = vadd.f32 %v5368_v60, %v7487_v38 }
 0x1b8   : > { %v5369_v11 = vpop.f32.mrb[2].mxu1  ;;  %v5596_v12 = vadd.f32 %v7487_v38, %v1736_v55 }
 0x1b9   : > { %v1739_v4 = vpop.f32.mrb[3].mxu1  ;;  %v5598_v54 = vadd.f32 %v5369_v11, %v7487_v38 }
 0x1ba   : > { %v5600_v14 = vadd.f32 %v7487_v38, %v1739_v4 }
 0x1be   : > { %v5372_v32 = vpop.f32.mrb[4].mxu1 }
 0x1bf   : > { %v1752_v3 = vpop.f32.mrb[5].mxu1  ;;  %v5602_v30 = vadd.f32 %v5372_v32, %v7487_v38 }
 0x1c0   : > { %v5373_v33 = vpop.f32.mrb[6].mxu1  ;;  %v5604_v58 = vadd.f32 %v7487_v38, %v1752_v3 }
 0x1c1   : > { %v1755_v53 = vpop.f32.mrb[7].mxu1  ;;  %v5606_v22 = vadd.f32 %v5373_v33, %v7487_v38 }
 0x1c2   : > { %v5608_v48 = vadd.f32 %v7487_v38, %v1755_v53 }
 0x1c6   : > { %v5376_v46 = vpop.f32.mrb[8].mxu1 }
 0x1c7   : > { %v1768_v59 = vpop.f32.mrb[9].mxu1  ;;  %v5610_v2 = vadd.f32 %v5376_v46, %v7487_v38 }
 0x1c8   : > { %v5377_v29 = vpop.f32.mrb[10].mxu1  ;;  %v5612_v17 = vadd.f32 %v7487_v38, %v1768_v59 }
 0x1c9   : > { %v1771_v37 = vpop.f32.mrb[11].mxu1  ;;  %v5614_v47 = vadd.f32 %v5377_v29, %v7487_v38 }
 0x1ca   : > { %v5616_v41 = vadd.f32 %v7487_v38, %v1771_v37 }
 0x1ce   : > { %v5380_v36 = vpop.f32.mrb[12].mxu1 }
 0x1cf   : > { %v7478_v7 = vpop.f32.mrb[13].mxu1  ;;  %v5618_v28 = vadd.f32 %v5380_v36, %v7487_v38 }
 0x1d0   : > { %v7480_v19 = vpop.f32.mrb[14].mxu1  ;;  %v5620_v60 = vadd.f32 %v7487_v38, %v7478_v7 }
 0x1d1   : > { %v7482_v45 = vpop.f32.mrb[15].mxu1  ;;  %v5622_v32 = vadd.f32 %v7480_v19, %v7487_v38 }
 0x1d2   : > { %v5624_v59 = vadd.f32 %v7487_v38, %v7482_v45 }
 0x1e4   : > { %v5558_v61 = vpop.f32.mrb[0].mxu0 }
 0x1e5   : > { %v7492_v57 = vadd.f32 %v5594_v24, %v5558_v61  ;;  %v3190_v39 = vpop.f32.mrb[1].mxu0  ;;  %v7557_v61 = vpop.permute.xlu0 %3637 }
 0x1e6   : > { %v7495_v6 = vadd.f32 %v5596_v12, %v3190_v39  ;;  %v5559_v5 = vpop.f32.mrb[2].mxu0 }
 0x1e7   : > { %5998 = vtanh.f32 %v7492_v57  ;;  %v7498_v34 = vadd.f32 %v5598_v54, %v5559_v5  ;;  %v3193_v13 = vpop.f32.mrb[3].mxu0 }
 0x1e8   : > { %v7500_v0 = vadd.f32 %v5600_v14, %v3193_v13  ;;  %6000 = vtanh.f32 %v7495_v6 }
 0x1e9   : > { %6002 = vtanh.f32 %v7498_v34 }
 0x1ec   : > { %v5562_v51 = vpop.f32.mrb[4].mxu0 }
 0x1ed   : > { %v7507_v9 = vadd.f32 %v5602_v30, %v5562_v51  ;;  %v3206_v20 = vpop.f32.mrb[5].mxu0 }
 0x1ee   : > { %v7510_v25 = vadd.f32 %v5604_v58, %v3206_v20  ;;  %v5563_v15 = vpop.f32.mrb[6].mxu0 }
 0x1ef   : > { %6004 = vtanh.f32 %v7507_v9  ;;  %v7513_v1 = vadd.f32 %v5606_v22, %v5563_v15  ;;  %v3209_v56 = vpop.f32.mrb[7].mxu0 }
 0x1f0   : > { %6006 = vtanh.f32 %v7500_v0  ;;  %v7516_v18 = vadd.f32 %v5608_v48, %v3209_v56 }
 0x1f1   : > { %v5999_v31 = vpop.eup %5998  ;;  %6008 = vtanh.f32 %v7510_v25 }
 0x1f2   : > { %3801 = vrot.lane.b32.xlu0 %v5999_v31, %s6354_s16  ;;  %6010 = vtanh.f32 %v7513_v1  ;;  %v6001_v44 = vpop.eup %6000 }
 0x1f3   : > { %v6003_v43 = vpop.eup %6002  ;;  %6012 = vtanh.f32 %v7516_v18 }
 0x1f4   : > { %v5566_v10 = vpop.f32.mrb[8].mxu0  ;;  %3803 = vrot.lane.b32.xlu1 %v6003_v43, %s6354_s16 }
 0x1f5   : > { %v7524_v21 = vadd.f32 %v5610_v2, %v5566_v10  ;;  %v3222_v62 = vpop.f32.mrb[9].mxu0 }
 0x1f6   : > { %v5422_v52 = vpop.f32.mrb[16].mxu1  ;;  %v7527_v63 = vadd.f32 %v5612_v17, %v3222_v62  ;;  %v5567_v8 = vpop.f32.mrb[10].mxu0  ;;  %3797 = vrot.lane.b32.xlu0 %v6001_v44, %s6354_s16 }
 0x1f7   : > { %v2047_v40 = vpop.f32.mrb[17].mxu1  ;;  %v7531_v35 = vadd.f32 %v5614_v47, %v5567_v8  ;;  %v3225_v42 = vpop.f32.mrb[11].mxu0  ;;  %6014 = vtanh.f32 %v7524_v21  ;;  %v5626_v45 = vadd.f32 %v5422_v52, %v7487_v38 }
 0x1f8   : > { %v5423_v27 = vpop.f32.mrb[18].mxu1  ;;  %v7533_v50 = vadd.f32 %v5616_v41, %v3225_v42  ;;  %6016 = vtanh.f32 %v7527_v63  ;;  %v5628_v39 = vadd.f32 %v7487_v38, %v2047_v40  ;;  %v7576_v17 = vpop.permute.xlu1 %3641 }
 0x1f9   : > { %v2050_v49 = vpop.f32.mrb[19].mxu1  ;;  %v6005_v26 = vpop.eup %6004  ;;  %6018 = vtanh.f32 %v7531_v35  ;;  %v5630_v13 = vadd.f32 %v5423_v27, %v7487_v38 }
 0x1fa   : > { %v6007_v23 = vpop.eup %6006  ;;  %3809 = vrot.lane.b32.xlu0 %v6005_v26, %s6354_s16  ;;  %v5632_v20 = vadd.f32 %v7487_v38, %v2050_v49  ;;  %6020 = vtanh.f32 %v7533_v50  ;;  %v7578_v40 = vpop.permute.xlu0 %3639 }
 0x1fb   : > { %3799 = vrot.lane.b32.xlu1 %v6007_v23, %s6354_s16  ;;  %v6009_v4 = vpop.eup %6008 }
 0x1fc   : > { %v5570_v55 = vpop.f32.mrb[12].mxu0  ;;  %v6011_v46 = vpop.eup %6010 }
 0x1fd   : > { %v7544_v3 = vadd.f32 %v5618_v28, %v5570_v55  ;;  %v3238_v33 = vpop.f32.mrb[13].mxu0  ;;  %v6013_v12 = vpop.eup %6012 }
 0x1fe   : > { %v5426_v16 = vpop.f32.mrb[20].mxu1  ;;  %v7548_v29 = vadd.f32 %v5620_v60, %v3238_v33  ;;  %v5571_v37 = vpop.f32.mrb[14].mxu0  ;;  %3805 = vrot.lane.b32.xlu0 %v6009_v4, %s6354_s16 }
 0x1ff   : > { %v2063_v11 = vpop.f32.mrb[21].mxu1  ;;  %3811 = vrot.lane.b32.xlu1 %v6011_v46, %s6354_s16  ;;  %v7552_v7 = vadd.f32 %v5622_v32, %v5571_v37  ;;  %v3241_v24 = vpop.f32.mrb[15].mxu0  ;;  %6022 = vtanh.f32 %v7544_v3  ;;  %v5634_v44 = vadd.f32 %v5426_v16, %v7487_v38 }
 0x200   : > { %v5427_v53 = vpop.f32.mrb[22].mxu1  ;;  %v7554_v19 = vadd.f32 %v5624_v59, %v3241_v24  ;;  %v5636_v62 = vadd.f32 %v7487_v38, %v2063_v11  ;;  %6024 = vtanh.f32 %v7548_v29  ;;  %v7596_v32 = vpop.permute.xlu1 %3643 }
 0x201   : > { %v2066_v36 = vpop.f32.mrb[23].mxu1  ;;  %v6015_v22 = vpop.eup %6014  ;;  %v5638_v41 = vadd.f32 %v5427_v53, %v7487_v38  ;;  %6026 = vtanh.f32 %v7552_v7 }
 0x202   : > { %3817 = vrot.lane.b32.xlu0 %v6015_v22, %s6354_s16  ;;  %v6017_v10 = vpop.eup %6016  ;;  %v5640_v23 = vadd.f32 %v7487_v38, %v2066_v36  ;;  %6028 = vtanh.f32 %v7554_v19  ;;  %v7599_v53 = vpop.permute.xlu0 %3645 }
 0x203   : > { %3807 = vrot.lane.b32.xlu1 %v6013_v12, %s6354_s16  ;;  %v6019_v26 = vpop.eup %6018 }
 0x204   : > { %v5574_v14 = vpop.f32.mrb[16].mxu0  ;;  %v6021_v33 = vpop.eup %6020 }
 0x205   : > { %v7564_v30 = vadd.f32 %v5626_v45, %v5574_v14  ;;  %v3254_v58 = vpop.f32.mrb[17].mxu0  ;;  %v7612_v22 = vpop.permute.xlu1 %3647 }
 0x206   : > { %v5430_v54 = vpop.f32.mrb[24].mxu1  ;;  %v7567_v48 = vadd.f32 %v5628_v39, %v3254_v58  ;;  %v5575_v15 = vpop.f32.mrb[18].mxu0  ;;  %3813 = vrot.lane.b32.xlu0 %v6017_v10, %s6354_s16 }
 0x207   : > { %v2079_v5 = vpop.f32.mrb[25].mxu1  ;;  %v7570_v31 = vadd.f32 %v5630_v13, %v5575_v15  ;;  %v3257_v2 = vpop.f32.mrb[19].mxu0  ;;  %3819 = vrot.lane.b32.xlu1 %v6019_v26, %s6354_s16  ;;  %v5642_v59 = vadd.f32 %v5430_v54, %v7487_v38  ;;  %6030 = vtanh.f32 %v7564_v30 }
 0x208   : > { %v5431_v51 = vpop.f32.mrb[26].mxu1  ;;  %v7573_v52 = vadd.f32 %v5632_v20, %v3257_v2  ;;  %v5644_v37 = vadd.f32 %v7487_v38, %v2079_v5  ;;  %v7616_v15 = vpop.permute.xlu0 %3649  ;;  %6032 = vtanh.f32 %v7567_v48 }
 0x209   : > { %v2082_v56 = vpop.f32.mrb[27].mxu1  ;;  %v6023_v46 = vpop.eup %6022  ;;  %v5646_v24 = vadd.f32 %v5431_v51, %v7487_v38  ;;  %6034 = vtanh.f32 %v7570_v31 }
 0x20a   : > { %3825 = vrot.lane.b32.xlu0 %v6023_v46, %s6354_s16  ;;  %v5648_v39 = vadd.f32 %v7487_v38, %v2082_v56  ;;  %v6025_v58 = vpop.eup %6024  ;;  %6036 = vtanh.f32 %v7573_v52 }
 0x20b   : > { %3815 = vrot.lane.b32.xlu1 %v6021_v33, %s6354_s16  ;;  %v6027_v5 = vpop.eup %6026 }
 0x20c   : > { %v5578_v27 = vpop.f32.mrb[20].mxu0  ;;  %v6029_v2 = vpop.eup %6028 }
 0x20d   : > { %v7585_v8 = vadd.f32 %v5634_v44, %v5578_v27  ;;  %v3270_v49 = vpop.f32.mrb[21].mxu0  ;;  %v7632_v26 = vpop.permute.xlu0 %3653 }
 0x20e   : > { %v5434_v47 = vpop.f32.mrb[28].mxu1  ;;  %v7589_v28 = vadd.f32 %v5636_v62, %v3270_v49  ;;  %v5579_v16 = vpop.f32.mrb[22].mxu0  ;;  %3821 = vrot.lane.b32.xlu0 %v6025_v58, %s6354_s16 }
 0x20f   : > { %v2095_v43 = vpop.f32.mrb[29].mxu1  ;;  %v7592_v55 = vadd.f32 %v5638_v41, %v5579_v16  ;;  %v3273_v11 = vpop.f32.mrb[23].mxu0  ;;  %3827 = vrot.lane.b32.xlu1 %v6027_v5, %s6354_s16  ;;  %v5650_v56 = vadd.f32 %v5434_v47, %v7487_v38  ;;  %6038 = vtanh.f32 %v7585_v8 }
 0x210   : > { %v5435_v42 = vpop.f32.mrb[30].mxu1  ;;  %v7594_v4 = vadd.f32 %v5640_v23, %v3273_v11  ;;  %v5652_v10 = vadd.f32 %v7487_v38, %v2095_v43  ;;  %v7626_v62 = vpop.permute.xlu1 %3651  ;;  %6040 = vtanh.f32 %v7589_v28 }
 0x211   : > { %v2098_v60 = vpop.f32.mrb[31].mxu1  ;;  %v5654_v27 = vadd.f32 %v5435_v42, %v7487_v38  ;;  %v6031_v11 = vpop.eup %6030  ;;  %6042 = vtanh.f32 %v7592_v55 }
 0x212   : > { %v5656_v23 = vadd.f32 %v7487_v38, %v2098_v60  ;;  %3833 = vrot.lane.b32.xlu0 %v6031_v11, %s6354_s16  ;;  %v6033_v42 = vpop.eup %6032  ;;  %6044 = vtanh.f32 %v7594_v4 }
 0x213   : > { %3823 = vrot.lane.b32.xlu1 %v6029_v2, %s6354_s16  ;;  %v6035_v38 = vpop.eup %6034 }
 0x214   : > { %v5582_v36 = vpop.f32.mrb[24].mxu0  ;;  %v6037_v60 = vpop.eup %6036 }
 0x215   : > { %v7607_v12 = vadd.f32 %v5642_v59, %v5582_v36  ;;  %v3286_v45 = vpop.f32.mrb[25].mxu0  ;;  %v7644_v59 = vpop.permute.xlu1 %3655 }
 0x216   : > { %v7610_v14 = vadd.f32 %v5644_v37, %v3286_v45  ;;  %v5583_v13 = vpop.f32.mrb[26].mxu0  ;;  %v7646_v37 = vpop.permute.xlu0 %3657  ;;  %3829 = vrot.lane.b32.xlu0 %v6033_v42, %s6354_s16 }
 0x217   : > { %v7614_v54 = vadd.f32 %v5646_v24, %v5583_v13  ;;  %v3289_v20 = vpop.f32.mrb[27].mxu0  ;;  %3835 = vrot.lane.b32.xlu1 %v6035_v38, %s6354_s16  ;;  %6046 = vtanh.f32 %v7607_v12  ;;  %v5039_v38 = vmul.f32 -1.442695, %v7492_v57 }
 0x218   : > { %v7619_v51 = vadd.f32 %v5648_v39, %v3289_v20  ;;  %6048 = vtanh.f32 %v7610_v14 }
 0x219   : > { %v7652_v36 = vpop.permute.xlu1 %3659  ;;  %v6039_v45 = vpop.eup %6038  ;;  %6050 = vtanh.f32 %v7614_v54 }
 0x21a   : > { %v7654_v24 = vpop.permute.xlu0 %3661  ;;  %3841 = vrot.lane.b32.xlu0 %v6039_v45, %s6354_s16  ;;  %v6041_v39 = vpop.eup %6040  ;;  %6052 = vtanh.f32 %v7619_v51 }
 0x21b   : > { %3831 = vrot.lane.b32.xlu1 %v6037_v60, %s6354_s16  ;;  %v6043_v20 = vpop.eup %6042 }
 0x21c   : > { %v5586_v44 = vpop.f32.mrb[28].mxu0  ;;  %v6045_v5 = vpop.eup %6044 }
 0x21d   : > { %v7630_v41 = vadd.f32 %v5650_v56, %v5586_v44  ;;  %v3302_v49 = vpop.f32.mrb[29].mxu0  ;;  %v7660_v13 = vpop.permute.xlu1 %3663 }
 0x21e   : > { %v7635_v16 = vadd.f32 %v5652_v10, %v3302_v49  ;;  %v5587_v47 = vpop.f32.mrb[30].mxu0  ;;  %v7662_v58 = vpop.permute.xlu0 %3665  ;;  %3837 = vrot.lane.b32.xlu0 %v6041_v39, %s6354_s16 }
 0x21f   : > { %v7638_v43 = vadd.f32 %v5654_v27, %v5587_v47  ;;  %v3305_v33 = vpop.f32.mrb[31].mxu0  ;;  %3843 = vrot.lane.b32.xlu1 %v6043_v20, %s6354_s16  ;;  %6054 = vtanh.f32 %v7630_v41 }
 0x220   : > { %v7641_v46 = vadd.f32 %v5656_v23, %v3305_v33  ;;  %6056 = vtanh.f32 %v7635_v16 }
 0x221   : > { %v7668_v56 = vpop.permute.xlu1 %3667  ;;  %v6047_v10 = vpop.eup %6046  ;;  %6058 = vtanh.f32 %v7638_v43 }
 0x222   : > { %v7670_v2 = vpop.permute.xlu0 %3669  ;;  %3849 = vrot.lane.b32.xlu0 %v6047_v10, %s6354_s16  ;;  %v6049_v44 = vpop.eup %6048  ;;  %6060 = vtanh.f32 %v7641_v46  ;;  %v5040_v10 = vmul.f32 -1.442695, %v7498_v34  ;;  %v5044_v34 = vmul.f32 -1.442695, %v7513_v1 }
 0x223   : > { %3839 = vrot.lane.b32.xlu1 %v6045_v5, %s6354_s16  ;;  %v6051_v23 = vpop.eup %6050  ;;  %6062 = vpow2.f32 %v5039_v38  ;;  %v5037_v5 = vmul.f32 -1.442695, %v7495_v6  ;;  %v5041_v6 = vmul.f32 -1.442695, %v7510_v25 }
 0x224   : > { %v6053_v47 = vpop.eup %6052 }
 0x225   : > { %v7676_v27 = vpop.permute.xlu1 %3671  ;;  %6064 = vpow2.f32 %v5037_v5 }
 0x226   : > { %v7678_v49 = vpop.permute.xlu0 %3673  ;;  %3845 = vrot.lane.b32.xlu0 %v6049_v44, %s6354_s16  ;;  %6066 = vpow2.f32 %v5040_v10 }
 0x227   : > { %3851 = vrot.lane.b32.xlu1 %v6051_v23, %s6354_s16  ;;  %v5043_v23 = vmul.f32 -1.442695, %v7507_v9 }
 0x229   : > { %v7684_v11 = vpop.permute.xlu1 %3675  ;;  %v6055_v42 = vpop.eup %6054  ;;  %6068 = vpow2.f32 %v5043_v23 }
 0x22a   : > { %v7686_v33 = vpop.permute.xlu0 %3677  ;;  %3857 = vrot.lane.b32.xlu0 %v6055_v42, %s6354_s16  ;;  %v6057_v60 = vpop.eup %6056 }
 0x22b   : > { %3847 = vrot.lane.b32.xlu1 %v6053_v47, %s6354_s16  ;;  %v6059_v20 = vpop.eup %6058  ;;  %v5038_v47 = vmul.f32 -1.442695, %v7500_v0  ;;  %v5042_v0 = vmul.f32 -1.442695, %v7516_v18 }
 0x22c   : > { %v6061_v44 = vpop.eup %6060 }
 0x22d   : > { %v7692_v45 = vpop.permute.xlu1 %3679  ;;  %6070 = vpow2.f32 %v5038_v47  ;;  %v6063_v38 = vpop.eup %6062 }
 0x22e   : > { %v7694_v39 = vpop.permute.xlu0 %3681  ;;  %3853 = vrot.lane.b32.xlu0 %v6057_v60, %s6354_s16  ;;  %6072 = vpow2.f32 %v5041_v6  ;;  %v3447_v9 = vadd.f32 1.0, %v6063_v38  ;;  %v5045_v6 = vmul.f32 -1.442695, %v7527_v63 }
 0x22f   : > { %3859 = vrot.lane.b32.xlu1 %v6059_v20, %s6354_s16  ;;  %6074 = vpow2.f32 %v5044_v34  ;;  %v6065_v5 = vpop.eup %6064 }
 0x230   : > { %v6067_v10 = vpop.eup %6066  ;;  %6076 = vrcp.f32 %v3447_v9  ;;  %v3445_v25 = vadd.f32 1.0, %v6065_v5  ;;  %v5048_v9 = vmul.f32 -1.442695, %v7531_v35  ;;  %v5051_v35 = vmul.f32 -1.442695, %v7544_v3 }
 0x231   : > { %v7701_v57 = vpop.permute.xlu1 %3683  ;;  %6078 = vpow2.f32 %v5042_v0  ;;  %v5052_v3 = vmul.f32 -1.442695, %v7552_v7 }
 0x232   : > { %v7704_v42 = vpop.permute.xlu0 %3685 }
 0x233   : > { %8341 = vst [vmem:[#allocation14_spill] sm:$0xff] %v7704_v42  ;;  %3855 = vrot.lane.b32.xlu1 %v6061_v44, %s6354_s16  ;;  %v5047_v44 = vmul.f32 -1.442695, %v7524_v21  ;;  %v6069_v1 = vpop.eup %6068  ;;  %v3448_v42 = vadd.f32 1.0, %v6067_v10 }
 0x234   : > { %v3451_v34 = vadd.f32 1.0, %v6069_v1 }
 0x235   : > { %v7709_v60 = vpop.permute.xlu1 %3687  ;;  %6080 = vpow2.f32 %v5047_v44 }
 0x236   : > { %8342 = vst [vmem:[#allocation21_spill] sm:$0xff] %v7709_v60  ;;  %v7711_v20 = vpop.permute.xlu0 %3689  ;;  %6082 = vrcp.f32 %v3445_v25 }
 0x237   : > { %8343 = vst [vmem:[#allocation16_spill] sm:$0xff] %v7711_v20  ;;  %v6071_v60 = vpop.eup %6070  ;;  %6084 = vrcp.f32 %v3448_v42  ;;  %v5046_v42 = vmul.f32 -1.442695, %v7533_v50 }
 0x238   : > { %v6073_v38 = vpop.eup %6072  ;;  %v3446_v18 = vadd.f32 1.0, %v6071_v60  ;;  %6086 = vpow2.f32 %v5045_v6 }
 0x239   : > { %v7715_v23 = vpop.permute.xlu1 %3691  ;;  %v6075_v21 = vpop.eup %6074  ;;  %6088 = vrcp.f32 %v3451_v34  ;;  %v3449_v5 = vadd.f32 1.0, %v6073_v38 }
 0x23a   : > { %8344 = vst [vmem:[#allocation22_spill] sm:$0xff] %v7715_v23  ;;  %v7717_v47 = vpop.permute.xlu0 %3693  ;;  %6090 = vrcp.f32 %v3446_v18  ;;  %v3452_v0 = vadd.f32 1.0, %v6075_v21  ;;  %v7725_v10 = vpop.eup %6076 }
 0x23b   : > { %8345 = vst [vmem:[#allocation17_spill] sm:$0xff] %v7717_v47  ;;  %v6079_v44 = vpop.eup %6078  ;;  %6092 = vpow2.f32 %v5048_v9 }
 0x23c   : > { %6094 = vrcp.f32 %v3449_v5  ;;  %v3450_v34 = vadd.f32 1.0, %v6079_v44 }
 0x23d   : > { %v7720_v20 = vpop.permute.xlu1 %3695  ;;  %6096 = vrcp.f32 %v3452_v0 }
 0x23e   : > { %8346 = vst [vmem:[#allocation6_spill] sm:$0xff] %v7720_v20  ;;  %v7722_v23 = vpop.permute.xlu0 %3697  ;;  %6098 = vpow2.f32 %v5046_v42 }
 0x23f   : > { %8347 = vst [vmem:[#allocation18_spill] sm:$0xff] %v7722_v23  ;;  %v6081_v1 = vpop.eup %6080  ;;  %6100 = vpow2.f32 %v5051_v35 }
 0x240   : > { %v7733_v6 = vpop.eup %6082  ;;  %v3455_v21 = vadd.f32 1.0, %v6081_v1  ;;  %6102 = vrcp.f32 %v3450_v34  ;;  %v5050_v34 = vmul.f32 -1.442695, %v7554_v19 }
 0x241   : > { %v7728_v60 = vpop.permute.xlu1 %3699  ;;  %8349 = vst [vmem:[#allocation7_spill] sm:$0xff] %v7733_v6  ;;  %v7735_v18 = vpop.eup %6084 }
 0x242   : > { %8348 = vst [vmem:[#allocation19_spill] sm:$0xff] %v7728_v60  ;;  %v6087_v0 = vpop.eup %6086  ;;  %6104 = vrcp.f32 %v3455_v21 }
 0x264   : > { %v3802_v63 = vpop.permute.xlu0 %3801 }
 0x265   : > { %v3895_v25 = vmul.f32 %v7725_v10, %v3802_v63  ;;  %v5049_v63 = vmul.f32 -1.442695, %v7548_v29 }
 0x266   : > { %v3804_v50 = vpop.permute.xlu1 %3803 }
 0x267   : > { %3961 = vrot.lane.b32.xlu0 %v3895_v25, %s6354_s16  ;;  %v3896_v5 = vmul.f32 %v7735_v18, %v3804_v50  ;;  %v7742_v25 = vpop.eup %6088  ;;  %6106 = vpow2.f32 %v5049_v63  ;;  %v3453_v50 = vadd.f32 1.0, %v6087_v0  ;;  %v5055_v0 = vmul.f32 -1.442695, %v7564_v30 }
 0x268   : > { %v3798_v38 = vpop.permute.xlu0 %3797  ;;  %v7745_v42 = vpop.eup %6090  ;;  %6108 = vpow2.f32 %v5052_v3 }
 0x269   : > { %v3893_v9 = vmul.f32 %v7733_v6, %v3798_v38  ;;  %3963 = vrot.lane.b32.xlu1 %v3896_v5, %s6354_s16  ;;  %v6093_v35 = vpop.eup %6092  ;;  %6110 = vrcp.f32 %v3453_v50 }
 0x26a   : > { %v7750_v7 = vpop.eup %6094  ;;  %v3456_v63 = vadd.f32 1.0, %v6093_v35  ;;  %6112 = vpow2.f32 %v5050_v34  ;;  %v5053_v35 = vmul.f32 -1.442695, %v7567_v48  ;;  %v5056_v34 = vmul.f32 -1.442695, %v7570_v31 }
 0x26b   : > { %3957 = vrot.lane.b32.xlu0 %v3893_v9, %s6354_s16  ;;  %v7754_v5 = vpop.eup %6096  ;;  %v5059_v31 = vmul.f32 -1.442695, %v7585_v8 }
 0x26c   : > { %v3810_v44 = vpop.permute.xlu0 %3809  ;;  %v6099_v20 = vpop.eup %6098  ;;  %6114 = vrcp.f32 %v3456_v63 }
 0x26d   : > { %v3800_v1 = vpop.permute.xlu1 %3799  ;;  %v3899_v29 = vmul.f32 %v7742_v25, %v3810_v44  ;;  %v6101_v19 = vpop.eup %6100  ;;  %6116 = vpow2.f32 %v5055_v0  ;;  %v5054_v0 = vmul.f32 -1.442695, %v7573_v52  ;;  %v5057_v52 = vmul.f32 -1.442695, %v7589_v28 }
 0x26e   : > { %v3894_v38 = vmul.f32 %v7745_v42, %v3800_v1  ;;  %v7761_v3 = vpop.eup %6102  ;;  %v3459_v30 = vadd.f32 1.0, %v6101_v19 }
 0x26f   : > { %3969 = vrot.lane.b32.xlu0 %v3899_v29, %s6354_s16  ;;  %v3454_v29 = vadd.f32 1.0, %v6099_v20  ;;  %v7763_v60 = vpop.eup %6104 }
 0x270   : > { %3959 = vrot.lane.b32.xlu1 %v3894_v38, %s6354_s16  ;;  %v3806_v9 = vpop.permute.xlu0 %3805 }
 0x271   : > { %v3812_v21 = vpop.permute.xlu1 %3811  ;;  %v3897_v44 = vmul.f32 %v7750_v7, %v3806_v9  ;;  %v6107_v9 = vpop.eup %6106  ;;  %6118 = vrcp.f32 %v3454_v29 }
 0x272   : > { %v3900_v1 = vmul.f32 %v7754_v5, %v3812_v21  ;;  %v6109_v21 = vpop.eup %6108  ;;  %v3457_v20 = vadd.f32 1.0, %v6107_v9  ;;  %6120 = vpow2.f32 %v5053_v35 }
 0x273   : > { %3965 = vrot.lane.b32.xlu0 %v3897_v44, %s6354_s16  ;;  %6122 = vrcp.f32 %v3459_v30  ;;  %v7771_v48 = vpop.eup %6110 }
 0x274   : > { %3971 = vrot.lane.b32.xlu1 %v3900_v1, %s6354_s16  ;;  %v3818_v44 = vpop.permute.xlu0 %3817  ;;  %v3460_v1 = vadd.f32 1.0, %v6109_v21  ;;  %6124 = vpow2.f32 %v5056_v34  ;;  %v6113_v19 = vpop.eup %6112 }
 0x275   : > { %v3808_v38 = vpop.permute.xlu1 %3807  ;;  %v3903_v63 = vmul.f32 %v7763_v60, %v3818_v44  ;;  %6126 = vrcp.f32 %v3457_v20  ;;  %v3458_v9 = vadd.f32 1.0, %v6113_v19 }
 0x276   : > { %v3898_v50 = vmul.f32 %v7761_v3, %v3808_v38  ;;  %6128 = vrcp.f32 %v3460_v1 }
 0x277   : > { %3977 = vrot.lane.b32.xlu0 %v3903_v63, %s6354_s16  ;;  %6130 = vpow2.f32 %v5054_v0  ;;  %v5060_v63 = vmul.f32 -1.442695, %v7592_v55 }
 0x278   : > { %3967 = vrot.lane.b32.xlu1 %v3898_v50, %s6354_s16  ;;  %v3814_v38 = vpop.permute.xlu0 %3813  ;;  %v7776_v50 = vpop.eup %6114  ;;  %6132 = vpow2.f32 %v5059_v31 }
 0x279   : > { %v3901_v29 = vmul.f32 %v7771_v48, %v3814_v38  ;;  %v6117_v35 = vpop.eup %6116  ;;  %v3820_v30 = vpop.permute.xlu1 %3819  ;;  %6134 = vrcp.f32 %v3458_v9 }
 0x27a   : > { %v3904_v21 = vmul.f32 %v7776_v50, %v3820_v30  ;;  %v3463_v44 = vadd.f32 1.0, %v6117_v35  ;;  %6136 = vpow2.f32 %v5057_v52  ;;  %v5058_v35 = vmul.f32 -1.442695, %v7594_v4 }
 0x27b   : > { %3973 = vrot.lane.b32.xlu0 %v3901_v29, %s6354_s16  ;;  %v7781_v34 = vpop.eup %6118  ;;  %v5063_v52 = vmul.f32 -1.442695, %v7607_v12 }
 0x27c   : > { %3979 = vrot.lane.b32.xlu1 %v3904_v21, %s6354_s16  ;;  %v6121_v8 = vpop.eup %6120  ;;  %v3826_v19 = vpop.permute.xlu0 %3825  ;;  %6138 = vrcp.f32 %v3463_v44 }
 0x27d   : > { %v3816_v20 = vpop.permute.xlu1 %3815  ;;  %v7785_v1 = vpop.eup %6122  ;;  %v3461_v28 = vadd.f32 1.0, %v6121_v8  ;;  %6140 = vpow2.f32 %v5060_v63 }
 0x27e   : > { %v3902_v0 = vmul.f32 %v7781_v34, %v3816_v20  ;;  %v6125_v38 = vpop.eup %6124  ;;  %v3907_v31 = vmul.f32 %v7785_v1, %v3826_v19  ;;  %v5061_v19 = vmul.f32 -1.442695, %v7610_v14  ;;  %v5062_v14 = vmul.f32 -1.442695, %v7619_v51 }
 0x27f   : > { %v7790_v29 = vpop.eup %6126  ;;  %v3464_v9 = vadd.f32 1.0, %v6125_v38  ;;  %6142 = vrcp.f32 %v3461_v28 }
 0x280   : > { %3975 = vrot.lane.b32.xlu1 %v3902_v0, %s6354_s16  ;;  %3985 = vrot.lane.b32.xlu0 %v3907_v31, %s6354_s16  ;;  %v7794_v55 = vpop.eup %6128  ;;  %v3822_v30 = vpop.permute.xlu0 %3821  ;;  %6144 = vpow2.f32 %v5058_v35 }
 0x281   : > { %v6131_v21 = vpop.eup %6130  ;;  %v3828_v20 = vpop.permute.xlu1 %3827  ;;  %v3905_v44 = vmul.f32 %v7790_v29, %v3822_v30  ;;  %6146 = vrcp.f32 %v3464_v9  ;;  %v5064_v30 = vmul.f32 -1.442695, %v7614_v54 }
 0x282   : > { %v3908_v8 = vmul.f32 %v7794_v55, %v3828_v20  ;;  %v6133_v0 = vpop.eup %6132  ;;  %v3462_v4 = vadd.f32 1.0, %v6131_v21  ;;  %6148 = vpow2.f32 %v5063_v52 }
 0x283   : > { %v7801_v63 = vpop.eup %6134  ;;  %v3467_v38 = vadd.f32 1.0, %v6133_v0 }
 0x284   : > { %3981 = vrot.lane.b32.xlu0 %v3905_v44, %s6354_s16  ;;  %3987 = vrot.lane.b32.xlu1 %v3908_v8, %s6354_s16  ;;  %v6137_v28 = vpop.eup %6136  ;;  %6150 = vrcp.f32 %v3462_v4  ;;  %v3834_v35 = vpop.permute.xlu0 %3833  ;;  %v5067_v4 = vmul.f32 -1.442695, %v7630_v41 }
 0x285   : > { %v3824_v12 = vpop.permute.xlu1 %3823  ;;  %6152 = vpow2.f32 %v5061_v19  ;;  %v3465_v52 = vadd.f32 1.0, %v6137_v28 }
 0x286   : > { %v3906_v31 = vmul.f32 %v7801_v63, %v3824_v12  ;;  %v7806_v20 = vpop.eup %6138  ;;  %6154 = vrcp.f32 %v3467_v38 }
 0x287   : > { %v6141_v9 = vpop.eup %6140  ;;  %v3911_v21 = vmul.f32 %v7806_v20, %v3834_v35  ;;  %6156 = vpow2.f32 %v5064_v30  ;;  %v5065_v30 = vmul.f32 -1.442695, %v7635_v16 }
 0x288   : > { %3983 = vrot.lane.b32.xlu1 %v3906_v31, %s6354_s16  ;;  %v3468_v54 = vadd.f32 1.0, %v6141_v9  ;;  %v3830_v8 = vpop.permute.xlu0 %3829  ;;  %6158 = vrcp.f32 %v3465_v52  ;;  %v5068_v52 = vmul.f32 -1.442695, %v7638_v43 }
 0x289   : > { %3993 = vrot.lane.b32.xlu0 %v3911_v21, %s6354_s16  ;;  %v7812_v44 = vpop.eup %6142  ;;  %v3836_v19 = vpop.permute.xlu1 %3835  ;;  %6160 = vpow2.f32 %v5062_v14 }
 0x28a   : > { %v6145_v0 = vpop.eup %6144  ;;  %v3909_v12 = vmul.f32 %v7812_v44, %v3830_v8  ;;  %6162 = vrcp.f32 %v3468_v54 }
 0x28b   : > { %v7816_v31 = vpop.eup %6146  ;;  %v3466_v51 = vadd.f32 1.0, %v6145_v0  ;;  %6164 = vpow2.f32 %v5067_v4  ;;  %v5066_v4 = vmul.f32 -1.442695, %v7641_v46 }
 0x28c   : > { %v6149_v38 = vpop.eup %6148  ;;  %v3912_v28 = vmul.f32 %v7816_v31, %v3836_v19 }
 0x28d   : > { %3989 = vrot.lane.b32.xlu0 %v3909_v12, %s6354_s16  ;;  %v3471_v35 = vadd.f32 1.0, %v6149_v38  ;;  %v3832_v9 = vpop.permute.xlu1 %3831  ;;  %6166 = vrcp.f32 %v3466_v51  ;;  %v3842_v12 = vpop.permute.xlu0 %3841 }
 0x28e   : > { %3995 = vrot.lane.b32.xlu1 %v3912_v28, %s6354_s16  ;;  %v7822_v41 = vpop.eup %6150  ;;  %6168 = vpow2.f32 %v5065_v30 }
 0x28f   : > { %v6153_v21 = vpop.eup %6152  ;;  %v3910_v14 = vmul.f32 %v7822_v41, %v3832_v9  ;;  %6170 = vrcp.f32 %v3471_v35 }
 0x290   : > { %v7826_v8 = vpop.eup %6154  ;;  %v3469_v16 = vadd.f32 1.0, %v6153_v21  ;;  %6172 = vpow2.f32 %v5068_v52 }
 0x291   : > { %v6157_v54 = vpop.eup %6156  ;;  %v3915_v0 = vmul.f32 %v7826_v8, %v3842_v12  ;;  %v3838_v38 = vpop.permute.xlu0 %3837 }
 0x292   : > { %3991 = vrot.lane.b32.xlu1 %v3910_v14, %s6354_s16  ;;  %v7832_v43 = vpop.eup %6158  ;;  %v3472_v19 = vadd.f32 1.0, %v6157_v54  ;;  %6174 = vrcp.f32 %v3469_v16  ;;  %v3844_v30 = vpop.permute.xlu1 %3843 }
 0x293   : > { %4001 = vrot.lane.b32.xlu0 %v3915_v0, %s6354_s16  ;;  %v6161_v28 = vpop.eup %6160  ;;  %v3913_v51 = vmul.f32 %v7832_v43, %v3838_v38  ;;  %6176 = vpow2.f32 %v5066_v4 }
 0x294   : > { %v7835_v9 = vpop.eup %6162  ;;  %6178 = vrcp.f32 %v3472_v19  ;;  %v3470_v46 = vadd.f32 1.0, %v6161_v28 }
 0x295   : > { %v6165_v12 = vpop.eup %6164  ;;  %v3916_v35 = vmul.f32 %v7835_v9, %v3844_v30  ;;  %v3850_v16 = vpop.permute.xlu0 %3849 }
 0x296   : > { %v3475_v52 = vadd.f32 1.0, %v6165_v12  ;;  %v3840_v14 = vpop.permute.xlu1 %3839  ;;  %6180 = vrcp.f32 %v3470_v46 }
 0x297   : > { %3997 = vrot.lane.b32.xlu0 %v3913_v51, %s6354_s16  ;;  %4003 = vrot.lane.b32.xlu1 %v3916_v35, %s6354_s16  ;;  %v7840_v21 = vpop.eup %6166 }
 0x298   : > { %v6169_v54 = vpop.eup %6168  ;;  %v3914_v0 = vmul.f32 %v7840_v21, %v3840_v14  ;;  %6182 = vrcp.f32 %v3475_v52 }
 0x299   : > { %v7843_v38 = vpop.eup %6170  ;;  %v3473_v19 = vadd.f32 1.0, %v6169_v54  ;;  %v3846_v12 = vpop.permute.xlu0 %3845 }
 0x29a   : > { %v6173_v4 = vpop.eup %6172  ;;  %v3919_v30 = vmul.f32 %v7843_v38, %v3850_v16  ;;  %v3852_v46 = vpop.permute.xlu1 %3851 }
 0x29b   : > { %3999 = vrot.lane.b32.xlu1 %v3914_v0, %s6354_s16  ;;  %v3476_v51 = vadd.f32 1.0, %v6173_v4  ;;  %6184 = vrcp.f32 %v3473_v19 }
 0x29c   : > { %4009 = vrot.lane.b32.xlu0 %v3919_v30, %s6354_s16  ;;  %v7848_v28 = vpop.eup %6174 }
 0x29d   : > { %v6177_v35 = vpop.eup %6176  ;;  %v3917_v14 = vmul.f32 %v7848_v28, %v3846_v12  ;;  %6186 = vrcp.f32 %v3476_v51  ;;  %v3858_v30 = vpop.permute.xlu0 %3857 }
 0x29e   : > { %v7851_v47 = vpop.eup %6178  ;;  %v3474_v52 = vadd.f32 1.0, %v6177_v35  ;;  %v3848_v0 = vpop.permute.xlu1 %3847 }
 0x29f   : > { %v3920_v23 = vmul.f32 %v7851_v47, %v3852_v46 }
 0x2a0   : > { %4005 = vrot.lane.b32.xlu0 %v3917_v14, %s6354_s16  ;;  %v7856_v54 = vpop.eup %6180  ;;  %6188 = vrcp.f32 %v3474_v52 }
 0x2a1   : > { %4011 = vrot.lane.b32.xlu1 %v3920_v23, %s6354_s16  ;;  %v3918_v16 = vmul.f32 %v7856_v54, %v3848_v0  ;;  %v3854_v51 = vpop.permute.xlu0 %3853 }
 0x2a2   : > { %v7859_v4 = vpop.eup %6182  ;;  %v3860_v14 = vpop.permute.xlu1 %3859 }
 0x2a3   : > { %v3923_v19 = vmul.f32 %v7859_v4, %v3858_v30  ;;  %v3735_v30 = vmul.f32 %v7725_v10, %v7576_v17  ;;  %v3734_v17 = vmul.f32 %v7745_v42, %v7578_v40 }
 0x2a5   : > { %4007 = vrot.lane.b32.xlu1 %v3918_v16, %s6354_s16  ;;  %4017 = vrot.lane.b32.xlu0 %v3923_v19, %s6354_s16  ;;  %v7864_v12 = vpop.eup %6184 }
 0x2a6   : > { %8350 = vst [vmem:[#allocation8_spill] sm:$0xff] %v7864_v12  ;;  %v3921_v23 = vmul.f32 %v7864_v12, %v3854_v51  ;;  %v3856_v0 = vpop.permute.xlu1 %3855  ;;  %v3733_v12 = vmul.f32 %v7733_v6, %v7557_v61 }
 0x2a7   : > { %v7867_v35 = vpop.eup %6186 }
 0x2a8   : > { %8351 = vst [vmem:[#allocation9_spill] sm:$0xff] %v7867_v35  ;;  %v3924_v46 = vmul.f32 %v7867_v35, %v3860_v14 }
 0x2a9   : > { %4013 = vrot.lane.b32.xlu0 %v3921_v23, %s6354_s16  ;;  %v3736_v23 = vmul.f32 %v7735_v18, %v7596_v32  ;;  %v3737_v32 = vmul.f32 %v7750_v7, %v7599_v53  ;;  %v3738_v53 = vmul.f32 %v7761_v3, %v7612_v22 }
 0x2aa   : > { %4019 = vrot.lane.b32.xlu1 %v3924_v46, %s6354_s16  ;;  %v7872_v52 = vpop.eup %6188 }
 0x2ab   : > { %v3922_v16 = vmul.f32 %v7872_v52, %v3856_v0 }
 0x2ae   : > { %4015 = vrot.lane.b32.xlu1 %v3922_v16, %s6354_s16  ;;  %v3739_v16 = vmul.f32 %v7742_v25, %v7616_v15  ;;  %v3740_v15 = vmul.f32 %v7754_v5, %v7626_v62 }
 0x2d9   : > { %v3962_v19 = vpop.permute.xlu0 %3961 }
 0x2da   : > { %v4055_v51 = vadd.f32 %v3962_v19, %v3735_v30 }
 0x2db   : > { %v3964_v46 = vpop.permute.xlu1 %3963 }
 0x2dc   : > { %4313 = vrot.lane.b32.xlu0 %v4055_v51, %s6355_s10  ;;  %v4056_v0 = vadd.f32 %v3964_v46, %v3736_v23  ;;  %6190 = vtanh.f32 %v4055_v51 }
 0x2dd   : > { %v3958_v14 = vpop.permute.xlu0 %3957 }
 0x2de   : > { %v4053_v35 = vadd.f32 %v3958_v14, %v3733_v12  ;;  %4315 = vrot.lane.b32.xlu1 %v4056_v0, %s6355_s10 }
 0x2e0   : > { %4309 = vrot.lane.b32.xlu0 %v4053_v35, %s6355_s10  ;;  %6192 = vtanh.f32 %v4053_v35 }
 0x2e1   : > { %v3970_v61 = vpop.permute.xlu0 %3969  ;;  %6194 = vtanh.f32 %v4056_v0  ;;  %v3743_v0 = vmul.f32 %v7763_v60, %v7646_v37 }
 0x2e2   : > { %v3960_v30 = vpop.permute.xlu1 %3959  ;;  %v4059_v19 = vadd.f32 %v3970_v61, %v3739_v16 }
 0x2e3   : > { %v4054_v6 = vadd.f32 %v3960_v30, %v3734_v17 }
 0x2e4   : > { %4321 = vrot.lane.b32.xlu0 %v4059_v19, %s6355_s10 }
 0x2e5   : > { %4311 = vrot.lane.b32.xlu1 %v4054_v6, %s6355_s10  ;;  %v3966_v12 = vpop.permute.xlu0 %3965  ;;  %6196 = vtanh.f32 %v4054_v6  ;;  %v3741_v6 = vmul.f32 %v7771_v48, %v7632_v26 }
 0x2e6   : > { %v3972_v40 = vpop.permute.xlu1 %3971  ;;  %v4057_v51 = vadd.f32 %v3966_v12, %v3737_v32  ;;  %v6191_v14 = vpop.eup %6190  ;;  %6198 = vtanh.f32 %v4059_v19  ;;  %v3744_v32 = vmul.f32 %v7776_v50, %v7652_v36  ;;  %v3742_v12 = vmul.f32 %v7781_v34, %v7644_v59 }
 0x2e7   : > { %v4060_v23 = vadd.f32 %v3972_v40, %v3740_v15 }
 0x2e8   : > { %4317 = vrot.lane.b32.xlu0 %v4057_v51, %s6355_s10  ;;  %6200 = vtanh.f32 %v4057_v51 }
 0x2e9   : > { %4323 = vrot.lane.b32.xlu1 %v4060_v23, %s6355_s10  ;;  %v3978_v62 = vpop.permute.xlu0 %3977  ;;  %6202 = vtanh.f32 %v4060_v23  ;;  %v3747_v23 = vmul.f32 %v7785_v1, %v7662_v58 }
 0x2ea   : > { %v3968_v46 = vpop.permute.xlu1 %3967  ;;  %v6193_v35 = vpop.eup %6192  ;;  %v4063_v61 = vadd.f32 %v3978_v62, %v3743_v0  ;;  %v3748_v0 = vmul.f32 %v7794_v55, %v7668_v56 }
 0x2eb   : > { %v4058_v16 = vadd.f32 %v3968_v46, %v3738_v53  ;;  %v6195_v17 = vpop.eup %6194 }
 0x2ec   : > { %4153 = vrot.lane.b32.xlu0 %v6191_v14, %s6354_s16 }
 0x2ed   : > { %4319 = vrot.lane.b32.xlu1 %v4058_v16, %s6355_s10  ;;  %v3974_v22 = vpop.permute.xlu0 %3973  ;;  %6204 = vtanh.f32 %v4058_v16  ;;  %v3745_v16 = vmul.f32 %v7790_v29, %v7654_v24 }
 0x2ee   : > { %v3980_v15 = vpop.permute.xlu1 %3979  ;;  %v4061_v37 = vadd.f32 %v3974_v22, %v3741_v6  ;;  %6206 = vtanh.f32 %v4063_v61  ;;  %v3746_v22 = vmul.f32 %v7801_v63, %v7660_v13 }
 0x2ef   : > { %v6197_v30 = vpop.eup %6196  ;;  %v4064_v19 = vadd.f32 %v3980_v15, %v3744_v32  ;;  %v3751_v32 = vmul.f32 %v7806_v20, %v7678_v49 }
 0x2f0   : > { %4149 = vrot.lane.b32.xlu0 %v6193_v35, %s6354_s16  ;;  %v6199_v26 = vpop.eup %6198  ;;  %6208 = vtanh.f32 %v4061_v37 }
 0x2f1   : > { %4155 = vrot.lane.b32.xlu1 %v6195_v17, %s6354_s16  ;;  %6210 = vtanh.f32 %v4064_v19 }
 0x2f2   : > { %v3976_v40 = vpop.permute.xlu1 %3975  ;;  %v3986_v36 = vpop.permute.xlu0 %3985 }
 0x2f3   : > { %v4062_v51 = vadd.f32 %v3976_v40, %v3742_v12  ;;  %v6201_v53 = vpop.eup %6200  ;;  %v4067_v59 = vadd.f32 %v3986_v36, %v3747_v23  ;;  %v3749_v12 = vmul.f32 %v7812_v44, %v7670_v2 }
 0x2f4   : > { %4329 = vrot.lane.b32.xlu0 %v4063_v61, %s6355_s10  ;;  %v6203_v14 = vpop.eup %6202 }
 0x2f5   : > { %4151 = vrot.lane.b32.xlu1 %v6197_v30, %s6354_s16  ;;  %6212 = vtanh.f32 %v4062_v51 }
 0x2f6   : > { %v3988_v46 = vpop.permute.xlu1 %3987  ;;  %v3982_v62 = vpop.permute.xlu0 %3981  ;;  %6214 = vtanh.f32 %v4067_v59 }
 0x2f7   : > { %v6205_v35 = vpop.eup %6204  ;;  %v4065_v58 = vadd.f32 %v3982_v62, %v3745_v16  ;;  %v4068_v17 = vadd.f32 %v3988_v46, %v3748_v0 }
 0x2f8   : > { %4325 = vrot.lane.b32.xlu0 %v4061_v37, %s6355_s10  ;;  %v6207_v24 = vpop.eup %6206 }
 0x2f9   : > { %4331 = vrot.lane.b32.xlu1 %v4064_v19, %s6355_s10  ;;  %6216 = vtanh.f32 %v4065_v58 }
 0x2fa   : > { %v3984_v61 = vpop.permute.xlu1 %3983  ;;  %v6209_v56 = vpop.eup %6208  ;;  %6218 = vtanh.f32 %v4068_v17 }
 0x2fb   : > { %v4066_v6 = vadd.f32 %v3984_v61, %v3746_v22  ;;  %v3994_v30 = vpop.permute.xlu0 %3993  ;;  %v6211_v15 = vpop.eup %6210  ;;  %v3754_v22 = vmul.f32 %v7840_v21, %v7692_v45 }
 0x2fc   : > { %4161 = vrot.lane.b32.xlu0 %v6199_v26, %s6354_s16  ;;  %v4071_v37 = vadd.f32 %v3994_v30, %v3751_v32  ;;  %v3752_v26 = vmul.f32 %v7816_v31, %v7684_v11  ;;  %v8352_v30 = vld [vmem:[#allocation16_spill] sm:$0xff] }
 0x2fd   : > { %4327 = vrot.lane.b32.xlu1 %v4062_v51, %s6355_s10  ;;  %6220 = vtanh.f32 %v4066_v6 }
 0x2fe   : > { %6222 = vtanh.f32 %v4071_v37 }
 0x2ff   : > { %v3990_v19 = vpop.permute.xlu0 %3989  ;;  %v6213_v40 = vpop.eup %6212 }
 0x300   : > { %4157 = vrot.lane.b32.xlu0 %v6201_v53, %s6354_s16  ;;  %v3996_v13 = vpop.permute.xlu1 %3995  ;;  %v4069_v49 = vadd.f32 %v3990_v19, %v3749_v12  ;;  %v3750_v53 = vmul.f32 %v7822_v41, %v7676_v27  ;;  %v6215_v2 = vpop.eup %6214 }
 0x301   : > { %4163 = vrot.lane.b32.xlu1 %v6203_v14, %s6354_s16  ;;  %v4072_v51 = vadd.f32 %v3996_v13, %v3752_v26  ;;  %v8353_v13 = vld [vmem:[#allocation14_spill] sm:$0xff] }
 0x302   : > { %6224 = vtanh.f32 %v4069_v49  ;;  %v3757_v19 = vmul.f32 %v7848_v28, %v8353_v13 }
 0x303   : > { %v6217_v11 = vpop.eup %6216  ;;  %6226 = vtanh.f32 %v4072_v51 }
 0x304   : > { %4337 = vrot.lane.b32.xlu0 %v4067_v59, %s6355_s10  ;;  %v3992_v36 = vpop.permute.xlu1 %3991  ;;  %v3755_v59 = vmul.f32 %v7826_v8, %v7694_v39  ;;  %v6219_v46 = vpop.eup %6218 }
 0x305   : > { %4159 = vrot.lane.b32.xlu1 %v6205_v35, %s6354_s16  ;;  %v4070_v23 = vadd.f32 %v3992_v36, %v3750_v53  ;;  %v4002_v14 = vpop.permute.xlu0 %4001  ;;  %v3753_v35 = vmul.f32 %v7832_v43, %v7686_v33  ;;  %v8355_v53 = vld [vmem:[#allocation21_spill] sm:$0xff] }
 0x306   : > { %v4075_v62 = vadd.f32 %v4002_v14, %v3755_v59 }
 0x307   : > { %v6221_v0 = vpop.eup %6220  ;;  %6228 = vtanh.f32 %v4070_v23 }
 0x308   : > { %4333 = vrot.lane.b32.xlu0 %v4065_v58, %s6355_s10  ;;  %v3756_v58 = vmul.f32 %v7835_v9, %v7701_v57  ;;  %v6223_v33 = vpop.eup %6222  ;;  %6230 = vtanh.f32 %v4075_v62 }
 0x309   : > { %4339 = vrot.lane.b32.xlu1 %v4068_v17, %s6355_s10  ;;  %v4004_v27 = vpop.permute.xlu1 %4003  ;;  %v3998_v16 = vpop.permute.xlu0 %3997 }
 0x30a   : > { %v4073_v39 = vadd.f32 %v3998_v16, %v3753_v35  ;;  %v4076_v17 = vadd.f32 %v4004_v27, %v3756_v58  ;;  %v8357_v58 = vld [vmem:[#allocation17_spill] sm:$0xff] }
 0x30c   : > { %4169 = vrot.lane.b32.xlu0 %v6207_v24, %s6354_s16  ;;  %v6225_v57 = vpop.eup %6224  ;;  %6232 = vtanh.f32 %v4073_v39 }
 0x30d   : > { %4335 = vrot.lane.b32.xlu1 %v4066_v6, %s6355_s10  ;;  %v4000_v61 = vpop.permute.xlu1 %3999  ;;  %v6227_v32 = vpop.eup %6226  ;;  %6234 = vtanh.f32 %v4076_v17 }
 0x30e   : > { %v4074_v24 = vadd.f32 %v4000_v61, %v3754_v22  ;;  %v4010_v6 = vpop.permute.xlu0 %4009  ;;  %v8359_v22 = vld [vmem:[#allocation19_spill] sm:$0xff] }
 0x310   : > { %4165 = vrot.lane.b32.xlu0 %v6209_v56, %s6354_s16  ;;  %v3759_v56 = vmul.f32 %v7843_v38, %v8352_v30  ;;  %6236 = vtanh.f32 %v4074_v24 }
 0x311   : > { %4171 = vrot.lane.b32.xlu1 %v6211_v15, %s6354_s16  ;;  %v6229_v12 = vpop.eup %6228 }
 0x312   : > { %v4079_v15 = vadd.f32 %v4010_v6, %v3759_v56  ;;  %v8361_v56 = vld [vmem:[#allocation6_spill] sm:$0xff] }
 0x313   : > { %v4012_v45 = vpop.permute.xlu1 %4011 }
 0x314   : > { %4345 = vrot.lane.b32.xlu0 %v4071_v37, %s6355_s10  ;;  %v4006_v37 = vpop.permute.xlu0 %4005  ;;  %6238 = vtanh.f32 %v4079_v15 }
 0x315   : > { %4167 = vrot.lane.b32.xlu1 %v6213_v40, %s6354_s16  ;;  %v8354_v40 = vld [vmem:[#allocation22_spill] sm:$0xff] }
 0x316   : > { %v3760_v26 = vmul.f32 %v7851_v47, %v8354_v40 }
 0x317   : > { %v4008_v36 = vpop.permute.xlu1 %4007 }
 0x318   : > { %4341 = vrot.lane.b32.xlu0 %v4069_v49, %s6355_s10  ;;  %v4077_v49 = vadd.f32 %v4006_v37, %v3757_v19 }
 0x319   : > { %4347 = vrot.lane.b32.xlu1 %v4072_v51, %s6355_s10  ;;  %v4080_v51 = vadd.f32 %v4012_v45, %v3760_v26 }
 0x31a   : > { %6240 = vtanh.f32 %v4077_v49 }
 0x31b   : > { %6242 = vtanh.f32 %v4080_v51 }
 0x31c   : > { %4177 = vrot.lane.b32.xlu0 %v6215_v2, %s6354_s16  ;;  %v3758_v2 = vmul.f32 %v7856_v54, %v8355_v53  ;;  %v4020_v35 = vpop.permute.xlu1 %4019 }
 0x31d   : > { %4343 = vrot.lane.b32.xlu1 %v4070_v23, %s6355_s10  ;;  %v6231_v23 = vpop.eup %6230 }
 0x31e   : > { %v4078_v14 = vadd.f32 %v4008_v36, %v3758_v2  ;;  %v6233_v59 = vpop.eup %6232 }
 0x31f   : > { %v6235_v27 = vpop.eup %6234 }
 0x320   : > { %4173 = vrot.lane.b32.xlu0 %v6217_v11, %s6354_s16  ;;  %v4018_v11 = vpop.permute.xlu0 %4017  ;;  %v6237_v61 = vpop.eup %6236 }
 0x321   : > { %4179 = vrot.lane.b32.xlu1 %v6219_v46, %s6354_s16  ;;  %v8356_v46 = vld [vmem:[#allocation18_spill] sm:$0xff]  ;;  %v4016_v30 = vpop.permute.xlu1 %4015 }
 0x324   : > { %4353 = vrot.lane.b32.xlu0 %v4075_v62, %s6355_s10  ;;  %v3763_v62 = vmul.f32 %v7859_v4, %v8356_v46 }
 0x325   : > { %4175 = vrot.lane.b32.xlu1 %v6221_v0, %s6354_s16  ;;  %v4014_v0 = vpop.permute.xlu0 %4013 }
 0x326   : > { %v4083_v16 = vadd.f32 %v4018_v11, %v3763_v62 }
 0x328   : > { %4349 = vrot.lane.b32.xlu0 %v4073_v39, %s6355_s10  ;;  %v8358_v39 = vld [vmem:[#allocation8_spill] sm:$0xff]  ;;  %6244 = vtanh.f32 %v4083_v16 }
 0x329   : > { %4355 = vrot.lane.b32.xlu1 %v4076_v17, %s6355_s10  ;;  %v3761_v17 = vmul.f32 %v8358_v39, %v8357_v58  ;;  %6246 = vtanh.f32 %v4078_v14 }
 0x32b   : > { %v4081_v6 = vadd.f32 %v4014_v0, %v3761_v17 }
 0x32c   : > { %4185 = vrot.lane.b32.xlu0 %v6223_v33, %s6354_s16  ;;  %v8360_v33 = vld [vmem:[#allocation9_spill] sm:$0xff] }
 0x32d   : > { %4351 = vrot.lane.b32.xlu1 %v4074_v24, %s6355_s10  ;;  %v3764_v24 = vmul.f32 %v8360_v33, %v8359_v22  ;;  %6248 = vtanh.f32 %v4081_v6 }
 0x330   : > { %4181 = vrot.lane.b32.xlu0 %v6225_v57, %s6354_s16  ;;  %v4084_v57 = vadd.f32 %v4020_v35, %v3764_v24 }
 0x331   : > { %4187 = vrot.lane.b32.xlu1 %v6227_v32, %s6354_s16  ;;  %v3762_v32 = vmul.f32 %v7872_v52, %v8361_v56 }
 0x332   : > { %6250 = vtanh.f32 %v4084_v57 }
 0x333   : > { %v4082_v45 = vadd.f32 %v4016_v30, %v3762_v32 }
 0x334   : > { %4361 = vrot.lane.b32.xlu0 %v4079_v15, %s6355_s10  ;;  %v6239_v15 = vpop.eup %6238 }
 0x335   : > { %4183 = vrot.lane.b32.xlu1 %v6229_v12, %s6354_s16  ;;  %v6241_v13 = vpop.eup %6240  ;;  %6252 = vtanh.f32 %v4082_v45 }
 0x336   : > { %v6243_v19 = vpop.eup %6242 }
 0x337   : > { %v6245_v40 = vpop.eup %6244 }
 0x338   : > { %4357 = vrot.lane.b32.xlu0 %v4077_v49, %s6355_s10  ;;  %v6247_v49 = vpop.eup %6246 }
 0x339   : > { %4363 = vrot.lane.b32.xlu1 %v4080_v51, %s6355_s10  ;;  %v6249_v36 = vpop.eup %6248 }
 0x33c   : > { %4193 = vrot.lane.b32.xlu0 %v6231_v23, %s6354_s16  ;;  %v6251_v2 = vpop.eup %6250 }
 0x33d   : > { %4359 = vrot.lane.b32.xlu1 %v4078_v14, %s6355_s10 }
 0x33f   : > { %v6253_v11 = vpop.eup %6252 }
 0x340   : > { %4189 = vrot.lane.b32.xlu0 %v6233_v59, %s6354_s16 }
 0x341   : > { %4195 = vrot.lane.b32.xlu1 %v6235_v27, %s6354_s16 }
 0x344   : > { %4369 = vrot.lane.b32.xlu0 %v4083_v16, %s6355_s10  ;;  %v8362_v16 = vld [vmem:[#allocation7_spill] sm:$0xff] }
 0x345   : > { %4191 = vrot.lane.b32.xlu1 %v6237_v61, %s6354_s16 }
 0x348   : > { %4365 = vrot.lane.b32.xlu0 %v4081_v6, %s6355_s10 }
 0x349   : > { %4371 = vrot.lane.b32.xlu1 %v4084_v57, %s6355_s10 }
 0x34c   : > { %4201 = vrot.lane.b32.xlu0 %v6239_v15, %s6354_s16 }
 0x34d   : > { %4367 = vrot.lane.b32.xlu1 %v4082_v45, %s6355_s10  ;;  %s6278_s10 = sshll.u32 %s6357_s9, 4  ;;  %s6279_s10 = int_to_ptr.vmem [resolvable:$false] %s6278_s10 }
 0x34e   : > { %v4314_v37 = vpop.permute.xlu0 %4313  ;;  %s6280_s11 = scalar_lea.vmem %s6279_s10, 8192  ;;  %p6281_p2 = scmp.lt.s32.totalorder %s8213_s17, %s6279_s10 }
 0x34f   : > { %4408 = vst.msk [vmem:[%s8000_s13 + $0x10] sm:$0xff] %vm4405_vm8, %v4314_v37 }
 0x350   : > { %4197 = vrot.lane.b32.xlu0 %v6241_v13, %s6354_s16  ;;  %v4316_v26 = vpop.permute.xlu1 %4315 }
 0x351   : > { %4203 = vrot.lane.b32.xlu1 %v6243_v19, %s6354_s16  ;;  %4409 = vst.msk [vmem:[%s8000_s13 + $0x18] sm:$0xff] %vm4405_vm8, %v4316_v26 }
 0x352   : > { %v4310_v12 = vpop.permute.xlu0 %4309 }
 0x353   : > { %4406 = vst.msk [vmem:[%s8000_s13] sm:$0xff] %vm4405_vm8, %v4310_v12 }
 0x354   : > { %4209 = vrot.lane.b32.xlu0 %v6245_v40, %s6354_s16 }
 0x355   : > { %4199 = vrot.lane.b32.xlu1 %v6247_v49, %s6354_s16 }
 0x356   : > { %v4322_v51 = vpop.permute.xlu0 %4321 }
 0x357   : > { %v4312_v53 = vpop.permute.xlu1 %4311  ;;  %4412 = vst.msk [vmem:[%s8000_s13 + $0x30] sm:$0xff] %vm4405_vm8, %v4322_v51 }
 0x358   : > { %4407 = vst.msk [vmem:[%s8000_s13 + $0x8] sm:$0xff] %vm4405_vm8, %v4312_v53  ;;  %4205 = vrot.lane.b32.xlu0 %v6249_v36, %s6354_s16 }
 0x359   : > { %4211 = vrot.lane.b32.xlu1 %v6251_v2, %s6354_s16 }
 0x35a   : > { %v4318_v23 = vpop.permute.xlu0 %4317 }
 0x35b   : > { %v4324_v14 = vpop.permute.xlu1 %4323  ;;  %4410 = vst.msk [vmem:[%s8000_s13 + $0x20] sm:$0xff] %vm4405_vm8, %v4318_v23 }
 0x35c   : > { %4413 = vst.msk [vmem:[%s8000_s13 + $0x38] sm:$0xff] %vm4405_vm8, %v4324_v14 }
 0x35d   : > { %4207 = vrot.lane.b32.xlu1 %v6253_v11, %s6354_s16  ;;  %s5074_s16 = sshll.u32 %s6344_s21, 12  ;;  %s6274_s21 = scalar_lea.vmem %s8213_s17, 4096 }
 0x35e   : > { %v4154_v59 = vpop.permute.xlu0 %4153  ;;  %s8211_s27 = scalar_lea.hbm %s8269_s4, %s5074_s16  ;;  %p6275_p13 = scmp.ne.s32.totalorder %s8213_s17, %s6274_s21 }
 0x35f   : > { %v4247_v46 = vmul.f32 %v7725_v10, %v4154_v59  ;;  %v4320_v62 = vpop.permute.xlu1 %4319  ;;  %p6282_p3 = scmp.lt.s32.totalorder %s6280_s11, %s6274_s21 }
 0x360   : > { %4411 = vst.msk [vmem:[%s8000_s13 + $0x28] sm:$0xff] %vm4405_vm8, %v4320_v62  ;;  %p6276_p0 = pnand %p6275_p13, %p6430_p4 }
 0x361   : > { %4474 = vrot.lane.b32.xlu0 %v4247_v46, %s6356_s29  ;;  %p6283_p5 = por %p6282_p3, %p6281_p2 }
 0x362   : > { %v4150_v27 = vpop.permute.xlu0 %4149  ;;  %p6277_p1 = pneg %p6276_p0 }
 0x363   : > { %v4245_v35 = vmul.f32 %v8362_v16, %v4150_v27  ;;  %v4156_v0 = vpop.permute.xlu1 %4155 }
 0x364   : > { %v4248_v58 = vmul.f32 %v7735_v18, %v4156_v0  ;;  %p6284_p6 = pnand %p6283_p5, %p6277_p1 }
 0x365   : > { %4470 = vrot.lane.b32.xlu0 %v4245_v35, %s6356_s29 }
 0x366   : > { %v4330_v17 = vpop.permute.xlu0 %4329  ;;  %4476 = vrot.lane.b32.xlu1 %v4248_v58, %s6356_s29 }
 0x367   : > { %4416 = vst.msk [vmem:[%s8000_s13 + $0x50] sm:$0xff] %vm4405_vm8, %v4330_v17  ;;  %v4152_v10 = vpop.permute.xlu1 %4151 }
 0x368   : > { %v4246_v61 = vmul.f32 %v7745_v42, %v4152_v10 }
 0x36a   : > { %v4326_v22 = vpop.permute.xlu0 %4325  ;;  %4472 = vrot.lane.b32.xlu1 %v4246_v61, %s6356_s29 }
 0x36b   : > { %4414 = vst.msk [vmem:[%s8000_s13 + $0x40] sm:$0xff] %vm4405_vm8, %v4326_v22  ;;  %v4332_v24 = vpop.permute.xlu1 %4331 }
 0x36c   : > { %4417 = vst.msk [vmem:[%s8000_s13 + $0x58] sm:$0xff] %vm4405_vm8, %v4332_v24 }
 0x36e   : > { %v4162_v18 = vpop.permute.xlu0 %4161 }
 0x36f   : > { %v4251_v6 = vmul.f32 %v7742_v25, %v4162_v18  ;;  %v4328_v57 = vpop.permute.xlu1 %4327 }
 0x370   : > { %4415 = vst.msk [vmem:[%s8000_s13 + $0x48] sm:$0xff] %vm4405_vm8, %v4328_v57 }
 0x371   : > { %4482 = vrot.lane.b32.xlu0 %v4251_v6, %s6356_s29 }
 0x372   : > { %v4158_v42 = vpop.permute.xlu0 %4157 }
 0x373   : > { %v4249_v30 = vmul.f32 %v7750_v7, %v4158_v42  ;;  %v4164_v56 = vpop.permute.xlu1 %4163 }
 0x374   : > { %v4252_v32 = vmul.f32 %v7754_v5, %v4164_v56 }
 0x375   : > { %4478 = vrot.lane.b32.xlu0 %v4249_v30, %s6356_s29 }
 0x376   : > { %v4338_v15 = vpop.permute.xlu0 %4337  ;;  %4484 = vrot.lane.b32.xlu1 %v4252_v32, %s6356_s29 }
 0x377   : > { %4420 = vst.msk [vmem:[%s8000_s13 + $0x70] sm:$0xff] %vm4405_vm8, %v4338_v15  ;;  %v4160_v25 = vpop.permute.xlu1 %4159 }
 0x378   : > { %v4250_v45 = vmul.f32 %v7761_v3, %v4160_v25 }
 0x37a   : > { %v4334_v37 = vpop.permute.xlu0 %4333  ;;  %4480 = vrot.lane.b32.xlu1 %v4250_v45, %s6356_s29 }
 0x37b   : > { %4418 = vst.msk [vmem:[%s8000_s13 + $0x60] sm:$0xff] %vm4405_vm8, %v4334_v37  ;;  %v4340_v7 = vpop.permute.xlu1 %4339 }
 0x37c   : > { %4421 = vst.msk [vmem:[%s8000_s13 + $0x78] sm:$0xff] %vm4405_vm8, %v4340_v7 }
 0x37e   : > { %v4170_v5 = vpop.permute.xlu0 %4169 }
 0x37f   : > { %v4255_v13 = vmul.f32 %v7763_v60, %v4170_v5  ;;  %v4336_v19 = vpop.permute.xlu1 %4335 }
 0x380   : > { %4419 = vst.msk [vmem:[%s8000_s13 + $0x68] sm:$0xff] %vm4405_vm8, %v4336_v19 }
 0x381   : > { %4490 = vrot.lane.b32.xlu0 %v4255_v13, %s6356_s29 }
 0x382   : > { %v4166_v3 = vpop.permute.xlu0 %4165 }
 0x383   : > { %v4253_v12 = vmul.f32 %v7771_v48, %v4166_v3  ;;  %v4172_v40 = vpop.permute.xlu1 %4171 }
 0x384   : > { %v4256_v26 = vmul.f32 %v7776_v50, %v4172_v40 }
 0x385   : > { %4486 = vrot.lane.b32.xlu0 %v4253_v12, %s6356_s29 }
 0x386   : > { %v4346_v49 = vpop.permute.xlu0 %4345  ;;  %4492 = vrot.lane.b32.xlu1 %v4256_v26, %s6356_s29 }
 0x387   : > { %4424 = vst.msk [vmem:[%s8000_s13 + $0x90] sm:$0xff] %vm4405_vm8, %v4346_v49  ;;  %v4168_v60 = vpop.permute.xlu1 %4167 }
 0x388   : > { %v4254_v51 = vmul.f32 %v7781_v34, %v4168_v60 }
 0x38a   : > { %v4342_v36 = vpop.permute.xlu0 %4341  ;;  %4488 = vrot.lane.b32.xlu1 %v4254_v51, %s6356_s29 }
 0x38b   : > { %4422 = vst.msk [vmem:[%s8000_s13 + $0x80] sm:$0xff] %vm4405_vm8, %v4342_v36  ;;  %v4348_v48 = vpop.permute.xlu1 %4347 }
 0x38c   : > { %4425 = vst.msk [vmem:[%s8000_s13 + $0x98] sm:$0xff] %vm4405_vm8, %v4348_v48 }
 0x38e   : > { %v4178_v50 = vpop.permute.xlu0 %4177 }
 0x38f   : > { %v4259_v53 = vmul.f32 %v7785_v1, %v4178_v50  ;;  %v4344_v2 = vpop.permute.xlu1 %4343 }
 0x390   : > { %4423 = vst.msk [vmem:[%s8000_s13 + $0x88] sm:$0xff] %vm4405_vm8, %v4344_v2 }
 0x391   : > { %4498 = vrot.lane.b32.xlu0 %v4259_v53, %s6356_s29 }
 0x392   : > { %v4174_v34 = vpop.permute.xlu0 %4173 }
 0x393   : > { %v4257_v23 = vmul.f32 %v7790_v29, %v4174_v34  ;;  %v4180_v14 = vpop.permute.xlu1 %4179 }
 0x394   : > { %v4260_v11 = vmul.f32 %v7794_v55, %v4180_v14 }
 0x395   : > { %4494 = vrot.lane.b32.xlu0 %v4257_v23, %s6356_s29 }
 0x396   : > { %v4354_v59 = vpop.permute.xlu0 %4353  ;;  %4500 = vrot.lane.b32.xlu1 %v4260_v11, %s6356_s29 }
 0x397   : > { %4428 = vst.msk [vmem:[%s8000_s13 + $0xb0] sm:$0xff] %vm4405_vm8, %v4354_v59  ;;  %v4176_v1 = vpop.permute.xlu1 %4175 }
 0x398   : > { %v4258_v46 = vmul.f32 %v7801_v63, %v4176_v1 }
 0x39a   : > { %v4350_v62 = vpop.permute.xlu0 %4349  ;;  %4496 = vrot.lane.b32.xlu1 %v4258_v46, %s6356_s29 }
 0x39b   : > { %4426 = vst.msk [vmem:[%s8000_s13 + $0xa0] sm:$0xff] %vm4405_vm8, %v4350_v62  ;;  %v4356_v29 = vpop.permute.xlu1 %4355 }
 0x39c   : > { %4429 = vst.msk [vmem:[%s8000_s13 + $0xb8] sm:$0xff] %vm4405_vm8, %v4356_v29 }
 0x39e   : > { %v4186_v55 = vpop.permute.xlu0 %4185 }
 0x39f   : > { %v4263_v27 = vmul.f32 %v7806_v20, %v4186_v55  ;;  %v4352_v16 = vpop.permute.xlu1 %4351 }
 0x3a0   : > { %4427 = vst.msk [vmem:[%s8000_s13 + $0xa8] sm:$0xff] %vm4405_vm8, %v4352_v16 }
 0x3a1   : > { %4506 = vrot.lane.b32.xlu0 %v4263_v27, %s6356_s29 }
 0x3a2   : > { %v4182_v63 = vpop.permute.xlu0 %4181 }
 0x3a3   : > { %v4261_v35 = vmul.f32 %v7812_v44, %v4182_v63  ;;  %v4188_v0 = vpop.permute.xlu1 %4187 }
 0x3a4   : > { %v4264_v58 = vmul.f32 %v7816_v31, %v4188_v0 }
 0x3a5   : > { %4502 = vrot.lane.b32.xlu0 %v4261_v35, %s6356_s29 }
 0x3a6   : > { %v4362_v17 = vpop.permute.xlu0 %4361  ;;  %4508 = vrot.lane.b32.xlu1 %v4264_v58, %s6356_s29 }
 0x3a7   : > { %4432 = vst.msk [vmem:[%s8000_s13 + $0xd0] sm:$0xff] %vm4405_vm8, %v4362_v17  ;;  %v4184_v20 = vpop.permute.xlu1 %4183 }
 0x3a8   : > { %v4262_v10 = vmul.f32 %v7822_v41, %v4184_v20 }
 0x3aa   : > { %v4358_v61 = vpop.permute.xlu0 %4357  ;;  %4504 = vrot.lane.b32.xlu1 %v4262_v10, %s6356_s29 }
 0x3ab   : > { %4430 = vst.msk [vmem:[%s8000_s13 + $0xc0] sm:$0xff] %vm4405_vm8, %v4358_v61  ;;  %v4364_v44 = vpop.permute.xlu1 %4363 }
 0x3ac   : > { %4433 = vst.msk [vmem:[%s8000_s13 + $0xd8] sm:$0xff] %vm4405_vm8, %v4364_v44 }
 0x3ae   : > { %v4194_v31 = vpop.permute.xlu0 %4193 }
 0x3af   : > { %v4267_v22 = vmul.f32 %v7826_v8, %v4194_v31  ;;  %v4360_v24 = vpop.permute.xlu1 %4359 }
 0x3b0   : > { %4431 = vst.msk [vmem:[%s8000_s13 + $0xc8] sm:$0xff] %vm4405_vm8, %v4360_v24 }
 0x3b1   : > { %4514 = vrot.lane.b32.xlu0 %v4267_v22, %s6356_s29 }
 0x3b2   : > { %v4190_v41 = vpop.permute.xlu0 %4189 }
 0x3b3   : > { %v4265_v18 = vmul.f32 %v7832_v43, %v4190_v41  ;;  %v4196_v6 = vpop.permute.xlu1 %4195 }
 0x3b4   : > { %v4268_v57 = vmul.f32 %v7835_v9, %v4196_v6 }
 0x3b5   : > { %4510 = vrot.lane.b32.xlu0 %v4265_v18, %s6356_s29 }
 0x3b6   : > { %v4370_v42 = vpop.permute.xlu0 %4369  ;;  %4516 = vrot.lane.b32.xlu1 %v4268_v57, %s6356_s29 }
 0x3b7   : > { %4436 = vst.msk [vmem:[%s8000_s13 + $0xf0] sm:$0xff] %vm4405_vm8, %v4370_v42  ;;  %v4192_v8 = vpop.permute.xlu1 %4191 }
 0x3b8   : > { %v4266_v30 = vmul.f32 %v7840_v21, %v4192_v8 }
 0x3ba   : > { %v4366_v56 = vpop.permute.xlu0 %4365  ;;  %4512 = vrot.lane.b32.xlu1 %v4266_v30, %s6356_s29 }
 0x3bb   : > { %4434 = vst.msk [vmem:[%s8000_s13 + $0xe0] sm:$0xff] %vm4405_vm8, %v4366_v56  ;;  %v4372_v43 = vpop.permute.xlu1 %4371 }
 0x3bc   : > { %4437 = vst.msk [vmem:[%s8000_s13 + $0xf8] sm:$0xff] %vm4405_vm8, %v4372_v43 }
 0x3be   : > { %v4202_v32 = vpop.permute.xlu0 %4201 }
 0x3bf   : > { %v4271_v9 = vmul.f32 %v7843_v38, %v4202_v32  ;;  %v4368_v15 = vpop.permute.xlu1 %4367 }
 0x3c0   : > { %4435 = vst.msk [vmem:[%s8000_s13 + $0xe8] sm:$0xff] %vm4405_vm8, %v4368_v15 }
 0x3c1   : > { %4522 = vrot.lane.b32.xlu0 %v4271_v9, %s6356_s29 }
 0x3c2   : > { %v4198_v25 = vpop.permute.xlu0 %4197 }
 0x3c3   : > { %v4269_v21 = vmul.f32 %v7848_v28, %v4198_v25  ;;  %v4204_v45 = vpop.permute.xlu1 %4203 }
 0x3c4   : > { %v4272_v37 = vmul.f32 %v7851_v47, %v4204_v45 }
 0x3c5   : > { %4518 = vrot.lane.b32.xlu0 %v4269_v21, %s6356_s29 }
 0x3c6   : > { %v4210_v7 = vpop.permute.xlu0 %4209  ;;  %4524 = vrot.lane.b32.xlu1 %v4272_v37, %s6356_s29 }
 0x3c7   : > { %v4200_v5 = vpop.permute.xlu1 %4199  ;;  %v4275_v47 = vmul.f32 %v7859_v4, %v4210_v7 }
 0x3c8   : > { %v4270_v38 = vmul.f32 %v7856_v54, %v4200_v5 }
 0x3ca   : > { %v4206_v13 = vpop.permute.xlu0 %4205  ;;  %4520 = vrot.lane.b32.xlu1 %v4270_v38, %s6356_s29 }
 0x3cb   : > { %v4273_v19 = vmul.f32 %v8358_v39, %v4206_v13  ;;  %v4212_v3 = vpop.permute.xlu1 %4211 }
 0x3cc   : > { %v4276_v4 = vmul.f32 %v8360_v33, %v4212_v3 }
 0x3cd   : > { %4526 = vrot.lane.b32.xlu0 %v4273_v19, %s6356_s29 }
 0x3cf   : > { %v4208_v28 = vpop.permute.xlu1 %4207 }
 0x3d0   : > { %v4274_v12 = vmul.f32 %v7872_v52, %v4208_v28 }
 0x3d1   : > { %4530 = vrot.lane.b32.xlu0 %v4275_v47, %s6356_s29 }
 0x3d2   : > { %4528 = vrot.lane.b32.xlu1 %v4274_v12, %s6356_s29 }
 0x3d3   : > { %v4475_v54 = vpop.permute.xlu0 %4474 }
 0x3d4   : > { %4568 = vst.msk [vmem:[%s8140_s15 + $0x10] sm:$0xff] %vm4405_vm8, %v4475_v54 }
 0x3d6   : > { %4532 = vrot.lane.b32.xlu1 %v4276_v4, %s6356_s29 }
 0x3d7   : > { %v4471_v52 = vpop.permute.xlu0 %4470 }
 0x3d8   : > { %4566 = vst.msk [vmem:[%s8140_s15] sm:$0xff] %vm4405_vm8, %v4471_v52  ;;  %v4477_v39 = vpop.permute.xlu1 %4476 }
 0x3d9   : > { %4569 = vst.msk [vmem:[%s8140_s15 + $0x18] sm:$0xff] %vm4405_vm8, %v4477_v39 }
 0x3dc   : > { %v4473_v40 = vpop.permute.xlu1 %4472 }
 0x3dd   : > { %4567 = vst.msk [vmem:[%s8140_s15 + $0x8] sm:$0xff] %vm4405_vm8, %v4473_v40 }
 0x3e3   : > { %v4483_v26 = vpop.permute.xlu0 %4482 }
 0x3e4   : > { %4572 = vst.msk [vmem:[%s8140_s15 + $0x30] sm:$0xff] %vm4405_vm8, %v4483_v26 }
 0x3e7   : > { %v4479_v33 = vpop.permute.xlu0 %4478 }
 0x3e8   : > { %4570 = vst.msk [vmem:[%s8140_s15 + $0x20] sm:$0xff] %vm4405_vm8, %v4479_v33  ;;  %v4485_v49 = vpop.permute.xlu1 %4484 }
 0x3e9   : > { %4573 = vst.msk [vmem:[%s8140_s15 + $0x38] sm:$0xff] %vm4405_vm8, %v4485_v49 }
 0x3ec   : > { %v4481_v60 = vpop.permute.xlu1 %4480 }
 0x3ed   : > { %4571 = vst.msk [vmem:[%s8140_s15 + $0x28] sm:$0xff] %vm4405_vm8, %v4481_v60 }
 0x3f3   : > { %v4491_v51 = vpop.permute.xlu0 %4490 }
 0x3f4   : > { %4576 = vst.msk [vmem:[%s8140_s15 + $0x50] sm:$0xff] %vm4405_vm8, %v4491_v51 }
 0x3f7   : > { %v4487_v36 = vpop.permute.xlu0 %4486 }
 0x3f8   : > { %4574 = vst.msk [vmem:[%s8140_s15 + $0x40] sm:$0xff] %vm4405_vm8, %v4487_v36  ;;  %v4493_v48 = vpop.permute.xlu1 %4492 }
 0x3f9   : > { %4577 = vst.msk [vmem:[%s8140_s15 + $0x58] sm:$0xff] %vm4405_vm8, %v4493_v48 }
 0x3fc   : > { %v4489_v50 = vpop.permute.xlu1 %4488 }
 0x3fd   : > { %4575 = vst.msk [vmem:[%s8140_s15 + $0x48] sm:$0xff] %vm4405_vm8, %v4489_v50 }
 0x403   : > { %v4499_v53 = vpop.permute.xlu0 %4498 }
 0x404   : > { %4580 = vst.msk [vmem:[%s8140_s15 + $0x70] sm:$0xff] %vm4405_vm8, %v4499_v53 }
 0x407   : > { %v4495_v2 = vpop.permute.xlu0 %4494 }
 0x408   : > { %4578 = vst.msk [vmem:[%s8140_s15 + $0x60] sm:$0xff] %vm4405_vm8, %v4495_v2  ;;  %v4501_v34 = vpop.permute.xlu1 %4500 }
 0x409   : > { %4581 = vst.msk [vmem:[%s8140_s15 + $0x78] sm:$0xff] %vm4405_vm8, %v4501_v34 }
 0x40c   : > { %v4497_v23 = vpop.permute.xlu1 %4496 }
 0x40d   : > { %4579 = vst.msk [vmem:[%s8140_s15 + $0x68] sm:$0xff] %vm4405_vm8, %v4497_v23 }
 0x413   : > { %v4507_v14 = vpop.permute.xlu0 %4506 }
 0x414   : > { %4584 = vst.msk [vmem:[%s8140_s15 + $0x90] sm:$0xff] %vm4405_vm8, %v4507_v14 }
 0x417   : > { %v4503_v11 = vpop.permute.xlu0 %4502 }
 0x418   : > { %4582 = vst.msk [vmem:[%s8140_s15 + $0x80] sm:$0xff] %vm4405_vm8, %v4503_v11  ;;  %v4509_v59 = vpop.permute.xlu1 %4508 }
 0x419   : > { %4585 = vst.msk [vmem:[%s8140_s15 + $0x98] sm:$0xff] %vm4405_vm8, %v4509_v59 }
 0x41c   : > { %v4505_v1 = vpop.permute.xlu1 %4504 }
 0x41d   : > { %4583 = vst.msk [vmem:[%s8140_s15 + $0x88] sm:$0xff] %vm4405_vm8, %v4505_v1 }
 0x423   : > { %v4515_v46 = vpop.permute.xlu0 %4514 }
 0x424   : > { %4588 = vst.msk [vmem:[%s8140_s15 + $0xb0] sm:$0xff] %vm4405_vm8, %v4515_v46 }
 0x427   : > { %v4511_v62 = vpop.permute.xlu0 %4510 }
 0x428   : > { %4586 = vst.msk [vmem:[%s8140_s15 + $0xa0] sm:$0xff] %vm4405_vm8, %v4511_v62  ;;  %v4517_v29 = vpop.permute.xlu1 %4516 }
 0x429   : > { %4589 = vst.msk [vmem:[%s8140_s15 + $0xb8] sm:$0xff] %vm4405_vm8, %v4517_v29 }
 0x42c   : > { %v4513_v55 = vpop.permute.xlu1 %4512 }
 0x42d   : > { %4587 = vst.msk [vmem:[%s8140_s15 + $0xa8] sm:$0xff] %vm4405_vm8, %v4513_v55 }
 0x433   : > { %v4523_v27 = vpop.permute.xlu0 %4522 }
 0x434   : > { %4592 = vst.msk [vmem:[%s8140_s15 + $0xd0] sm:$0xff] %vm4405_vm8, %v4523_v27 }
 0x437   : > { %v4519_v16 = vpop.permute.xlu0 %4518 }
 0x438   : > { %4590 = vst.msk [vmem:[%s8140_s15 + $0xc0] sm:$0xff] %vm4405_vm8, %v4519_v16  ;;  %v4525_v63 = vpop.permute.xlu1 %4524 }
 0x439   : > { %4593 = vst.msk [vmem:[%s8140_s15 + $0xd8] sm:$0xff] %vm4405_vm8, %v4525_v63 }
 0x43c   : > { %v4521_v35 = vpop.permute.xlu1 %4520 }
 0x43d   : > { %4591 = vst.msk [vmem:[%s8140_s15 + $0xc8] sm:$0xff] %vm4405_vm8, %v4521_v35 }
 0x43f   : > { %v4527_v0 = vpop.permute.xlu0 %4526 }
 0x440   : > { %4594 = vst.msk [vmem:[%s8140_s15 + $0xe0] sm:$0xff] %vm4405_vm8, %v4527_v0 }
 0x443   : > { %v4531_v58 = vpop.permute.xlu0 %4530 }
 0x444   : > { %4596 = vst.msk [vmem:[%s8140_s15 + $0xf0] sm:$0xff] %vm4405_vm8, %v4531_v58  ;;  %v4529_v17 = vpop.permute.xlu1 %4528 }
 0x445   : > { %4595 = vst.msk [vmem:[%s8140_s15 + $0xe8] sm:$0xff] %vm4405_vm8, %v4529_v17 }
 0x448   : > { %v4533_v20 = vpop.permute.xlu1 %4532 }
 0x449   : > { %4597 = vst.msk [vmem:[%s8140_s15 + $0xf8] sm:$0xff] %vm4405_vm8, %v4533_v20 }
 0x44a   : > { %6287 = shalt.err (!%p6284_p6)
}
 0x44b   : > { %s6288_s12 = scalar_lea.hbm %s8211_s27, 4096  ;;  %s6292_s7 = scalar_lea.hbm %s8269_s4, 8192 }
 0x44c   : > { %p6289_p7 = scmp.ne.s32.totalorder %s8211_s27, %s6288_s12  ;;  %p6293_p11 = scmp.lt.u32.totalorder %s8211_s27, %s8269_s4 }
 0x44d   : > { %p6294_p12 = scmp.lt.u32.totalorder %s6292_s7, %s6288_s12  ;;  %p6296_p0 = scmp.lt.u32.totalorder %s6288_s12, %s8211_s27 }
 0x44e   : > { %p6290_p9 = pnand %p6289_p7, %p6430_p4 }
 0x44f   : > { %p6295_p13 = por %p6294_p12, %p6293_p11 }
 0x450   : > { %p6291_p10 = pneg %p6290_p9 }
 0x451   : > { %p6297_p1 = por %p6296_p0, %p6295_p13 }
 0x453   : > { %p6298_p2 = pnand %p6297_p1, %p6291_p10 }
 0x455   : > { %6301 = shalt.err (!%p6298_p2)
}
 0x456   : > { %s6358_s16 = smov 128   ;;  %s6359_s24 = smov 8  }
 0x457   : > { %5893 = dma.vmem_to_hbm [thread:$0]  (%p6430_p4), %s8213_s17, 4096, %s8211_s27, %s8219_s8, %s6358_s16, %s6358_s16, %s6359_s24  }
 0x458 PF: > { %p5899_p3 = scmp.ge.s32.totalorder %s6352_s23, 2  ;;  %s4639_s25 = sand.u32 1, %s6332_s18  }
 0x459   : > { %s4640_s21 = scalar_lea.sflag [#allocation3], %s4639_s25 }
 0x45a   : > { %p5896_p5 = pnand %p5899_p3, %p6437_p8 }
 0x45c   : > { %6327 = dma.done.wait (!%p5896_p5), %s4640_s21, 4096  }
 0x45d   : > { %6329 = vsyncadd (!%p5896_p5), %s4640_s21, 4294963200  ;;  %s19_s23 = sadd.s32 1, %s6352_s23   ;;  %s8363_s18 = smov %s6336_s19 }
 0x45e   : > { %p16_p6 = scmp.ge.s32.totalorder %s19_s23, 4   ;;  %s8364_s19 = smov %s6340_s20 }
 0x45f   : > { %s8365_s20 = smov %s6443_s6  ;;  %s8366_s21 = smov %s6348_s22 }
 0x460   : > { %s8367_s22 = smov %s8369_s26  ;;  %18 = sbr.rel (!%p16_p6) target bundleno = 4 (0x4), region = 94 }
 0x467   :  { %4654 = vsyncpa [#allocation3], 1 }
 0x468   :  { %4656 = vsyncpa [#allocation3 + $0x1], 1 }

</bundles_post_ra>
